<compile_context>
chip_gen: v6e
topology: v6e:2x2x1
jax: 0.10.0
libtpu: 0.0.40
codegen_flags: <defaults>
</compile_context>

<pallas_src>
import jax
import jax.numpy as jnp
from jax.experimental import pallas as pl
from jax.experimental.pallas import tpu as pltpu

# ---- small, forward-consistent shapes ---------------------------------------
SEQ_LEN = 8
INPUT_SIZE = 8
HIDDEN = 32
NUM_LAYERS = 2
NUM_CLASSES = 8
FC1 = 512
FC2 = 256
BN_EPS = 1e-5

_PER_LAYER = 10          # w_ir, w_iz, w_in, w_hr, w_hz, w_hn, b_r, b_z, b_in, b_hn
_HEAD = 10               # fc1_w, fc1_b, bn1_s, bn1_o, fc2_w, fc2_b, bn2_s, bn2_o, fc3_w, fc3_b


# ---- fused forward kernel -----------------------------------------------------
def gru_kernel(*refs):
    x_ref = refs[0]
    idx = 1
    layers = []
    for _ in range(NUM_LAYERS):
        layers.append(refs[idx:idx + _PER_LAYER])
        idx += _PER_LAYER
    (fc1_w, fc1_b, bn1_s, bn1_o,
     fc2_w, fc2_b, bn2_s, bn2_o,
     fc3_w, fc3_b) = refs[idx:idx + _HEAD]
    out_ref = refs[idx + _HEAD]
    seq_scratch = refs[idx + _HEAD + 1]          # VMEM (SEQ_LEN, HIDDEN)

    # ---------------- multi-layer GRU (batch_first, batch = 1) ----------------
    layer_in = x_ref[...]                        # (SEQ_LEN, in_dim)
    h = jnp.zeros((1, HIDDEN), jnp.float32)
    for l in range(NUM_LAYERS):
        (w_ir, w_iz, w_in_, w_hr, w_hz, w_hn,
         b_r, b_z, b_in_, b_hn) = layers[l]

        # Hoisted input GEMMs: one batched M=SEQ_LEN matmul per gate (instead of
        # SEQ_LEN M=1 matmuls on the recurrent critical path).
        xr = jnp.dot(layer_in, w_ir[...], preferred_element_type=jnp.float32) + b_r[...]
        xz = jnp.dot(layer_in, w_iz[...], preferred_element_type=jnp.float32) + b_z[...]
        xn = jnp.dot(layer_in, w_in_[...], preferred_element_type=jnp.float32) + b_in_[...]

        whr = w_hr[...]
        whz = w_hz[...]
        whn = w_hn[...]
        bhn = b_hn[...]

        h = jnp.zeros((1, HIDDEN), jnp.float32)  # h0 = zeros per layer
        last_layer = (l == NUM_LAYERS - 1)
        for t in range(SEQ_LEN):                 # static unroll (tiny trip count)
            r = jax.nn.sigmoid(
                xr[t:t + 1, :] + jnp.dot(h, whr, preferred_element_type=jnp.float32))
            z = jax.nn.sigmoid(
                xz[t:t + 1, :] + jnp.dot(h, whz, preferred_element_type=jnp.float32))
            n = jnp.tanh(
                xn[t:t + 1, :]
                + r * (jnp.dot(h, whn, preferred_element_type=jnp.float32) + bhn))
            h = (1.0 - z) * n + z * h
            if not last_layer:
                seq_scratch[t:t + 1, :] = h      # feed the next layer's input GEMM

        if not last_layer:
            layer_in = seq_scratch[...]
            # TODO(synk): nn.GRU inter-layer dropout(0.2) is train-mode only; omitted (eval).

    # final_state = hn[-1]  (last layer's final hidden state), shape (1, HIDDEN)

    # ---------------- MLP head: fc -> BN(eval) -> Dropout(id) -> ReLU ----------
    x0 = jnp.dot(h, fc1_w[...], preferred_element_type=jnp.float32) + fc1_b[...]
    x0 = jnp.maximum(x0 * bn1_s[...] + bn1_o[...], 0.0)
    x1 = jnp.dot(x0, fc2_w[...], preferred_element_type=jnp.float32) + fc2_b[...]
    x1 = jnp.maximum(x1 * bn2_s[...] + bn2_o[...], 0.0)
    out_ref[...] = (jnp.dot(x1, fc3_w[...], preferred_element_type=jnp.float32)
                    + fc3_b[...])


# ---- wrapper: reshape / split weights and call the kernel ----------------------
def gru_forward(x, params):
    x2d = jnp.reshape(x, (SEQ_LEN, INPUT_SIZE)).astype(jnp.float32)
    flat = [x2d]

    for (w_ih, w_hh, b_ih, b_hh) in params["gru"]:
        # PyTorch GRU gate order: r, z, n
        w_ir, w_iz, w_in_ = jnp.split(w_ih, 3, axis=0)
        w_hr, w_hz, w_hn = jnp.split(w_hh, 3, axis=0)
        b_ir, b_iz, b_in_ = jnp.split(b_ih, 3)
        b_hr, b_hz, b_hn = jnp.split(b_hh, 3)
        flat += [w_ir.T, w_iz.T, w_in_.T,
                 w_hr.T, w_hz.T, w_hn.T,
                 (b_ir + b_hr).reshape(1, HIDDEN),
                 (b_iz + b_hz).reshape(1, HIDDEN),
                 b_in_.reshape(1, HIDDEN),
                 b_hn.reshape(1, HIDDEN)]

    def bn_fold(gamma, beta, mean, var):
        s = gamma / jnp.sqrt(var + BN_EPS)
        return s.reshape(1, -1), (beta - mean * s).reshape(1, -1)

    s1, o1 = bn_fold(*params["bn1"])
    s2, o2 = bn_fold(*params["bn2"])
    flat += [params["fc1"][0].T, params["fc1"][1].reshape(1, FC1), s1, o1,
             params["fc2"][0].T, params["fc2"][1].reshape(1, FC2), s2, o2,
             params["fc3"][0].T, params["fc3"][1].reshape(1, NUM_CLASSES)]

    return pl.pallas_call(
        gru_kernel,
        out_shape=jax.ShapeDtypeStruct((1, NUM_CLASSES), jnp.float32),
        in_specs=[pl.BlockSpec(memory_space=pltpu.MemorySpace.VMEM)] * len(flat),
        out_specs=pl.BlockSpec(memory_space=pltpu.MemorySpace.VMEM),
        scratch_shapes=[pltpu.VMEM((SEQ_LEN, HIDDEN), jnp.float32)],
    )(*flat)


# ---- deterministic PyTorch-style parameter init --------------------------------
def init_params(key):
    keys = jax.random.split(key, 64)
    it = iter(keys)

    def u(shape, bound):
        return jax.random.uniform(next(it), shape, jnp.float32, -bound, bound)

    kh = 1.0 / float(HIDDEN) ** 0.5
    gru = []
    for l in range(NUM_LAYERS):
        in_dim = INPUT_SIZE if l == 0 else HIDDEN
        gru.append((u((3 * HIDDEN, in_dim), kh),   # weight_ih_l{l}
                    u((3 * HIDDEN, HIDDEN), kh),   # weight_hh_l{l}
                    u((3 * HIDDEN,), kh),          # bias_ih_l{l}
                    u((3 * HIDDEN,), kh)))         # bias_hh_l{l}

    def linear(out_f, in_f):
        kb = 1.0 / float(in_f) ** 0.5
        return (u((out_f, in_f), kb), u((out_f,), kb))

    fc1 = linear(FC1, HIDDEN)
    fc2 = linear(FC2, FC1)
    fc3 = linear(NUM_CLASSES, FC2)

    def bn(n):
        gamma = 1.0 + 0.1 * jax.random.normal(next(it), (n,), jnp.float32)
        beta = 0.1 * jax.random.normal(next(it), (n,), jnp.float32)
        mean = 0.1 * jax.random.normal(next(it), (n,), jnp.float32)
        var = jax.random.uniform(next(it), (n,), jnp.float32, 0.5, 1.5)
        return (gamma, beta, mean, var)

    return {"gru": gru, "fc1": fc1, "bn1": bn(FC1),
            "fc2": fc2, "bn2": bn(FC2), "fc3": fc3}


# ---- pure-JAX reference (standard PyTorch GRU math, eval-mode head) -------------
def reference_forward(x, params):
    x2d = jnp.reshape(x, (SEQ_LEN, INPUT_SIZE)).astype(jnp.float32)
    H = HIDDEN
    layer_in = x2d
    h_final = None
    for (w_ih, w_hh, b_ih, b_hh) in params["gru"]:
        h = jnp.zeros((1, H), jnp.float32)
        outs = []
        for t in range(SEQ_LEN):
            xt = layer_in[t:t + 1]
            gi = xt @ w_ih.T + b_ih
            gh = h @ w_hh.T + b_hh
            r = jax.nn.sigmoid(gi[:, :H] + gh[:, :H])
            z = jax.nn.sigmoid(gi[:, H:2 * H] + gh[:, H:2 * H])
            n = jnp.tanh(gi[:, 2 * H:] + r * gh[:, 2 * H:])
            h = (1.0 - z) * n + z * h
            outs.append(h)
        layer_in = jnp.concatenate(outs, axis=0)
        h_final = h

    def bn(y, gamma, beta, mean, var):
        return (y - mean) / jnp.sqrt(var + BN_EPS) * gamma + beta

    fc1_w, fc1_b = params["fc1"]
    fc2_w, fc2_b = params["fc2"]
    fc3_w, fc3_b = params["fc3"]
    y = jax.nn.relu(bn(h_final @ fc1_w.T + fc1_b, *params["bn1"]))
    y = jax.nn.relu(bn(y @ fc2_w.T + fc2_b, *params["bn2"]))
    return y @ fc3_w.T + fc3_b


if __name__ == "__main__":
    root = jax.random.PRNGKey(0)
    kx, kp = jax.random.split(root)
    x = jax.random.normal(kx, (1, SEQ_LEN, INPUT_SIZE), jnp.float32)
    params = init_params(kp)

    out = jax.block_until_ready(gru_forward(x, params))
    assert out.shape == (1, NUM_CLASSES)

    ref = jax.block_until_ready(reference_forward(x, params))
    assert jnp.allclose(out, ref, rtol=1e-3, atol=1e-3), (out, ref)

    print("KERNEL_OK")
</pallas_src>

<mosaic_0001>
module attributes {stable_mosaic.version = 11 : i64} {
  func.func @gru_kernel(%arg0: memref<8x8xf32, #tpu.memory_space<vmem>>, %arg1: memref<8x32xf32, #tpu.memory_space<vmem>>, %arg2: memref<8x32xf32, #tpu.memory_space<vmem>>, %arg3: memref<8x32xf32, #tpu.memory_space<vmem>>, %arg4: memref<32x32xf32, #tpu.memory_space<vmem>>, %arg5: memref<32x32xf32, #tpu.memory_space<vmem>>, %arg6: memref<32x32xf32, #tpu.memory_space<vmem>>, %arg7: memref<1x32xf32, #tpu.memory_space<vmem>>, %arg8: memref<1x32xf32, #tpu.memory_space<vmem>>, %arg9: memref<1x32xf32, #tpu.memory_space<vmem>>, %arg10: memref<1x32xf32, #tpu.memory_space<vmem>>, %arg11: memref<32x32xf32, #tpu.memory_space<vmem>>, %arg12: memref<32x32xf32, #tpu.memory_space<vmem>>, %arg13: memref<32x32xf32, #tpu.memory_space<vmem>>, %arg14: memref<32x32xf32, #tpu.memory_space<vmem>>, %arg15: memref<32x32xf32, #tpu.memory_space<vmem>>, %arg16: memref<32x32xf32, #tpu.memory_space<vmem>>, %arg17: memref<1x32xf32, #tpu.memory_space<vmem>>, %arg18: memref<1x32xf32, #tpu.memory_space<vmem>>, %arg19: memref<1x32xf32, #tpu.memory_space<vmem>>, %arg20: memref<1x32xf32, #tpu.memory_space<vmem>>, %arg21: memref<32x512xf32, #tpu.memory_space<vmem>>, %arg22: memref<1x512xf32, #tpu.memory_space<vmem>>, %arg23: memref<1x512xf32, #tpu.memory_space<vmem>>, %arg24: memref<1x512xf32, #tpu.memory_space<vmem>>, %arg25: memref<512x256xf32, #tpu.memory_space<vmem>>, %arg26: memref<1x256xf32, #tpu.memory_space<vmem>>, %arg27: memref<1x256xf32, #tpu.memory_space<vmem>>, %arg28: memref<1x256xf32, #tpu.memory_space<vmem>>, %arg29: memref<256x8xf32, #tpu.memory_space<vmem>>, %arg30: memref<1x8xf32, #tpu.memory_space<vmem>>, %arg31: memref<1x8xf32, #tpu.memory_space<vmem>>, %arg32: memref<8x32xf32, #tpu.memory_space<vmem>>) attributes {dimension_semantics = [], scalar_prefetch = 0 : i64, scratch_operands = 1 : i64, tpu.core_type = #tpu.core_type<tc>} {
    %c0 = arith.constant 0 : index
    %c0_0 = arith.constant 0 : index
    %0 = vector.load %arg0[%c0, %c0_0] : memref<8x8xf32, #tpu.memory_space<vmem>>, vector<8x8xf32>
    %c0_1 = arith.constant 0 : index
    %c0_2 = arith.constant 0 : index
    %1 = vector.load %arg1[%c0_1, %c0_2] : memref<8x32xf32, #tpu.memory_space<vmem>>, vector<8x32xf32>
    %cst = arith.constant dense<0.000000e+00> : vector<8x32xf32>
    %2 = tpu.matmul %0, %1, %cst {dimension_numbers = #tpu.dot_dimension_numbers<[1], [0], [0], [1], [0, 0, 1, 1], [], []>} : vector<8x8xf32>, vector<8x32xf32>, vector<8x32xf32> -> vector<8x32xf32>
    %c0_3 = arith.constant 0 : index
    %c0_4 = arith.constant 0 : index
    %3 = vector.load %arg7[%c0_3, %c0_4] : memref<1x32xf32, #tpu.memory_space<vmem>>, vector<1x32xf32>
    %4 = vector.broadcast %3 : vector<1x32xf32> to vector<8x32xf32>
    %5 = arith.addf %2, %4 : vector<8x32xf32>
    %c0_5 = arith.constant 0 : index
    %c0_6 = arith.constant 0 : index
    %6 = vector.load %arg2[%c0_5, %c0_6] : memref<8x32xf32, #tpu.memory_space<vmem>>, vector<8x32xf32>
    %cst_7 = arith.constant dense<0.000000e+00> : vector<8x32xf32>
    %7 = tpu.matmul %0, %6, %cst_7 {dimension_numbers = #tpu.dot_dimension_numbers<[1], [0], [0], [1], [0, 0, 1, 1], [], []>} : vector<8x8xf32>, vector<8x32xf32>, vector<8x32xf32> -> vector<8x32xf32>
    %c0_8 = arith.constant 0 : index
    %c0_9 = arith.constant 0 : index
    %8 = vector.load %arg8[%c0_8, %c0_9] : memref<1x32xf32, #tpu.memory_space<vmem>>, vector<1x32xf32>
    %9 = vector.broadcast %8 : vector<1x32xf32> to vector<8x32xf32>
    %10 = arith.addf %7, %9 : vector<8x32xf32>
    %c0_10 = arith.constant 0 : index
    %c0_11 = arith.constant 0 : index
    %11 = vector.load %arg3[%c0_10, %c0_11] : memref<8x32xf32, #tpu.memory_space<vmem>>, vector<8x32xf32>
    %cst_12 = arith.constant dense<0.000000e+00> : vector<8x32xf32>
    %12 = tpu.matmul %0, %11, %cst_12 {dimension_numbers = #tpu.dot_dimension_numbers<[1], [0], [0], [1], [0, 0, 1, 1], [], []>} : vector<8x8xf32>, vector<8x32xf32>, vector<8x32xf32> -> vector<8x32xf32>
    %c0_13 = arith.constant 0 : index
    %c0_14 = arith.constant 0 : index
    %13 = vector.load %arg9[%c0_13, %c0_14] : memref<1x32xf32, #tpu.memory_space<vmem>>, vector<1x32xf32>
    %14 = vector.broadcast %13 : vector<1x32xf32> to vector<8x32xf32>
    %15 = arith.addf %12, %14 : vector<8x32xf32>
    %c0_15 = arith.constant 0 : index
    %c0_16 = arith.constant 0 : index
    %16 = vector.load %arg4[%c0_15, %c0_16] : memref<32x32xf32, #tpu.memory_space<vmem>>, vector<32x32xf32>
    %c0_17 = arith.constant 0 : index
    %c0_18 = arith.constant 0 : index
    %17 = vector.load %arg5[%c0_17, %c0_18] : memref<32x32xf32, #tpu.memory_space<vmem>>, vector<32x32xf32>
    %c0_19 = arith.constant 0 : index
    %c0_20 = arith.constant 0 : index
    %18 = vector.load %arg6[%c0_19, %c0_20] : memref<32x32xf32, #tpu.memory_space<vmem>>, vector<32x32xf32>
    %c0_21 = arith.constant 0 : index
    %c0_22 = arith.constant 0 : index
    %19 = vector.load %arg10[%c0_21, %c0_22] : memref<1x32xf32, #tpu.memory_space<vmem>>, vector<1x32xf32>
    %cst_23 = arith.constant 0.000000e+00 : f32
    %20 = vector.broadcast %cst_23 : f32 to vector<1x32xf32>
    %21 = vector.extract_strided_slice %5 {offsets = [0, 0], sizes = [1, 32], strides = [1, 1]} : vector<8x32xf32> to vector<1x32xf32>
    %cst_24 = arith.constant dense<0.000000e+00> : vector<1x32xf32>
    %22 = tpu.matmul %20, %16, %cst_24 {dimension_numbers = #tpu.dot_dimension_numbers<[1], [0], [0], [1], [0, 0, 1, 1], [], []>} : vector<1x32xf32>, vector<32x32xf32>, vector<1x32xf32> -> vector<1x32xf32>
    %23 = arith.addf %21, %22 : vector<1x32xf32>
    %24 = arith.negf %23 : vector<1x32xf32>
    %25 = math.exp %24 : vector<1x32xf32>
    %cst_25 = arith.constant 1.000000e+00 : f32
    %26 = vector.broadcast %cst_25 : f32 to vector<1x32xf32>
    %27 = arith.addf %26, %25 : vector<1x32xf32>
    %28 = arith.divf %26, %27 : vector<1x32xf32>
    %29 = vector.extract_strided_slice %10 {offsets = [0, 0], sizes = [1, 32], strides = [1, 1]} : vector<8x32xf32> to vector<1x32xf32>
    %cst_26 = arith.constant dense<0.000000e+00> : vector<1x32xf32>
    %30 = tpu.matmul %20, %17, %cst_26 {dimension_numbers = #tpu.dot_dimension_numbers<[1], [0], [0], [1], [0, 0, 1, 1], [], []>} : vector<1x32xf32>, vector<32x32xf32>, vector<1x32xf32> -> vector<1x32xf32>
    %31 = arith.addf %29, %30 : vector<1x32xf32>
    %32 = arith.negf %31 : vector<1x32xf32>
    %33 = math.exp %32 : vector<1x32xf32>
    %cst_27 = arith.constant 1.000000e+00 : f32
    %34 = vector.broadcast %cst_27 : f32 to vector<1x32xf32>
    %35 = arith.addf %34, %33 : vector<1x32xf32>
    %36 = arith.divf %34, %35 : vector<1x32xf32>
    %37 = vector.extract_strided_slice %15 {offsets = [0, 0], sizes = [1, 32], strides = [1, 1]} : vector<8x32xf32> to vector<1x32xf32>
    %cst_28 = arith.constant dense<0.000000e+00> : vector<1x32xf32>
    %38 = tpu.matmul %20, %18, %cst_28 {dimension_numbers = #tpu.dot_dimension_numbers<[1], [0], [0], [1], [0, 0, 1, 1], [], []>} : vector<1x32xf32>, vector<32x32xf32>, vector<1x32xf32> -> vector<1x32xf32>
    %39 = arith.addf %38, %19 : vector<1x32xf32>
    %40 = arith.mulf %28, %39 : vector<1x32xf32>
    %41 = arith.addf %37, %40 : vector<1x32xf32>
    %42 = math.tanh %41 : vector<1x32xf32>
    %cst_29 = arith.constant 1.000000e+00 : f32
    %43 = vector.broadcast %cst_29 : f32 to vector<1x32xf32>
    %44 = arith.subf %43, %36 : vector<1x32xf32>
    %45 = arith.mulf %44, %42 : vector<1x32xf32>
    %46 = arith.mulf %36, %20 : vector<1x32xf32>
    %47 = arith.addf %45, %46 : vector<1x32xf32>
    %c0_30 = arith.constant 0 : index
    %c0_31 = arith.constant 0 : index
    %48 = vector.load %arg32[%c0_30, %c0_31] : memref<8x32xf32, #tpu.memory_space<vmem>>, vector<1x32xf32>
    tpu.vector_store %arg32[%c0_30, %c0_31], %47 {strides = array<i32>} : memref<8x32xf32, #tpu.memory_space<vmem>>, vector<1x32xf32>,
    %49 = vector.extract_strided_slice %5 {offsets = [1, 0], sizes = [1, 32], strides = [1, 1]} : vector<8x32xf32> to vector<1x32xf32>
    %cst_32 = arith.constant dense<0.000000e+00> : vector<1x32xf32>
    %50 = tpu.matmul %47, %16, %cst_32 {dimension_numbers = #tpu.dot_dimension_numbers<[1], [0], [0], [1], [0, 0, 1, 1], [], []>} : vector<1x32xf32>, vector<32x32xf32>, vector<1x32xf32> -> vector<1x32xf32>
    %51 = arith.addf %49, %50 : vector<1x32xf32>
    %52 = arith.negf %51 : vector<1x32xf32>
    %53 = math.exp %52 : vector<1x32xf32>
    %cst_33 = arith.constant 1.000000e+00 : f32
    %54 = vector.broadcast %cst_33 : f32 to vector<1x32xf32>
    %55 = arith.addf %54, %53 : vector<1x32xf32>
    %56 = arith.divf %54, %55 : vector<1x32xf32>
    %57 = vector.extract_strided_slice %10 {offsets = [1, 0], sizes = [1, 32], strides = [1, 1]} : vector<8x32xf32> to vector<1x32xf32>
    %cst_34 = arith.constant dense<0.000000e+00> : vector<1x32xf32>
    %58 = tpu.matmul %47, %17, %cst_34 {dimension_numbers = #tpu.dot_dimension_numbers<[1], [0], [0], [1], [0, 0, 1, 1], [], []>} : vector<1x32xf32>, vector<32x32xf32>, vector<1x32xf32> -> vector<1x32xf32>
    %59 = arith.addf %57, %58 : vector<1x32xf32>
    %60 = arith.negf %59 : vector<1x32xf32>
    %61 = math.exp %60 : vector<1x32xf32>
    %cst_35 = arith.constant 1.000000e+00 : f32
    %62 = vector.broadcast %cst_35 : f32 to vector<1x32xf32>
    %63 = arith.addf %62, %61 : vector<1x32xf32>
    %64 = arith.divf %62, %63 : vector<1x32xf32>
    %65 = vector.extract_strided_slice %15 {offsets = [1, 0], sizes = [1, 32], strides = [1, 1]} : vector<8x32xf32> to vector<1x32xf32>
    %cst_36 = arith.constant dense<0.000000e+00> : vector<1x32xf32>
    %66 = tpu.matmul %47, %18, %cst_36 {dimension_numbers = #tpu.dot_dimension_numbers<[1], [0], [0], [1], [0, 0, 1, 1], [], []>} : vector<1x32xf32>, vector<32x32xf32>, vector<1x32xf32> -> vector<1x32xf32>
    %67 = arith.addf %66, %19 : vector<1x32xf32>
    %68 = arith.mulf %56, %67 : vector<1x32xf32>
    %69 = arith.addf %65, %68 : vector<1x32xf32>
    %70 = math.tanh %69 : vector<1x32xf32>
    %cst_37 = arith.constant 1.000000e+00 : f32
    %71 = vector.broadcast %cst_37 : f32 to vector<1x32xf32>
    %72 = arith.subf %71, %64 : vector<1x32xf32>
    %73 = arith.mulf %72, %70 : vector<1x32xf32>
    %74 = arith.mulf %64, %47 : vector<1x32xf32>
    %75 = arith.addf %73, %74 : vector<1x32xf32>
    %c1 = arith.constant 1 : index
    %c0_38 = arith.constant 0 : index
    %76 = vector.load %arg32[%c1, %c0_38] : memref<8x32xf32, #tpu.memory_space<vmem>>, vector<1x32xf32>
    tpu.vector_store %arg32[%c1, %c0_38], %75 {strides = array<i32>} : memref<8x32xf32, #tpu.memory_space<vmem>>, vector<1x32xf32>,
    %77 = vector.extract_strided_slice %5 {offsets = [2, 0], sizes = [1, 32], strides = [1, 1]} : vector<8x32xf32> to vector<1x32xf32>
    %cst_39 = arith.constant dense<0.000000e+00> : vector<1x32xf32>
    %78 = tpu.matmul %75, %16, %cst_39 {dimension_numbers = #tpu.dot_dimension_numbers<[1], [0], [0], [1], [0, 0, 1, 1], [], []>} : vector<1x32xf32>, vector<32x32xf32>, vector<1x32xf32> -> vector<1x32xf32>
    %79 = arith.addf %77, %78 : vector<1x32xf32>
    %80 = arith.negf %79 : vector<1x32xf32>
    %81 = math.exp %80 : vector<1x32xf32>
    %cst_40 = arith.constant 1.000000e+00 : f32
    %82 = vector.broadcast %cst_40 : f32 to vector<1x32xf32>
    %83 = arith.addf %82, %81 : vector<1x32xf32>
    %84 = arith.divf %82, %83 : vector<1x32xf32>
    %85 = vector.extract_strided_slice %10 {offsets = [2, 0], sizes = [1, 32], strides = [1, 1]} : vector<8x32xf32> to vector<1x32xf32>
    %cst_41 = arith.constant dense<0.000000e+00> : vector<1x32xf32>
    %86 = tpu.matmul %75, %17, %cst_41 {dimension_numbers = #tpu.dot_dimension_numbers<[1], [0], [0], [1], [0, 0, 1, 1], [], []>} : vector<1x32xf32>, vector<32x32xf32>, vector<1x32xf32> -> vector<1x32xf32>
    %87 = arith.addf %85, %86 : vector<1x32xf32>
    %88 = arith.negf %87 : vector<1x32xf32>
    %89 = math.exp %88 : vector<1x32xf32>
    %cst_42 = arith.constant 1.000000e+00 : f32
    %90 = vector.broadcast %cst_42 : f32 to vector<1x32xf32>
    %91 = arith.addf %90, %89 : vector<1x32xf32>
    %92 = arith.divf %90, %91 : vector<1x32xf32>
    %93 = vector.extract_strided_slice %15 {offsets = [2, 0], sizes = [1, 32], strides = [1, 1]} : vector<8x32xf32> to vector<1x32xf32>
    %cst_43 = arith.constant dense<0.000000e+00> : vector<1x32xf32>
    %94 = tpu.matmul %75, %18, %cst_43 {dimension_numbers = #tpu.dot_dimension_numbers<[1], [0], [0], [1], [0, 0, 1, 1], [], []>} : vector<1x32xf32>, vector<32x32xf32>, vector<1x32xf32> -> vector<1x32xf32>
    %95 = arith.addf %94, %19 : vector<1x32xf32>
    %96 = arith.mulf %84, %95 : vector<1x32xf32>
    %97 = arith.addf %93, %96 : vector<1x32xf32>
    %98 = math.tanh %97 : vector<1x32xf32>
    %cst_44 = arith.constant 1.000000e+00 : f32
    %99 = vector.broadcast %cst_44 : f32 to vector<1x32xf32>
    %100 = arith.subf %99, %92 : vector<1x32xf32>
    %101 = arith.mulf %100, %98 : vector<1x32xf32>
    %102 = arith.mulf %92, %75 : vector<1x32xf32>
    %103 = arith.addf %101, %102 : vector<1x32xf32>
    %c2 = arith.constant 2 : index
    %c0_45 = arith.constant 0 : index
    %104 = vector.load %arg32[%c2, %c0_45] : memref<8x32xf32, #tpu.memory_space<vmem>>, vector<1x32xf32>
    tpu.vector_store %arg32[%c2, %c0_45], %103 {strides = array<i32>} : memref<8x32xf32, #tpu.memory_space<vmem>>, vector<1x32xf32>,
    %105 = vector.extract_strided_slice %5 {offsets = [3, 0], sizes = [1, 32], strides = [1, 1]} : vector<8x32xf32> to vector<1x32xf32>
    %cst_46 = arith.constant dense<0.000000e+00> : vector<1x32xf32>
    %106 = tpu.matmul %103, %16, %cst_46 {dimension_numbers = #tpu.dot_dimension_numbers<[1], [0], [0], [1], [0, 0, 1, 1], [], []>} : vector<1x32xf32>, vector<32x32xf32>, vector<1x32xf32> -> vector<1x32xf32>
    %107 = arith.addf %105, %106 : vector<1x32xf32>
    %108 = arith.negf %107 : vector<1x32xf32>
    %109 = math.exp %108 : vector<1x32xf32>
    %cst_47 = arith.constant 1.000000e+00 : f32
    %110 = vector.broadcast %cst_47 : f32 to vector<1x32xf32>
    %111 = arith.addf %110, %109 : vector<1x32xf32>
    %112 = arith.divf %110, %111 : vector<1x32xf32>
    %113 = vector.extract_strided_slice %10 {offsets = [3, 0], sizes = [1, 32], strides = [1, 1]} : vector<8x32xf32> to vector<1x32xf32>
    %cst_48 = arith.constant dense<0.000000e+00> : vector<1x32xf32>
    %114 = tpu.matmul %103, %17, %cst_48 {dimension_numbers = #tpu.dot_dimension_numbers<[1], [0], [0], [1], [0, 0, 1, 1], [], []>} : vector<1x32xf32>, vector<32x32xf32>, vector<1x32xf32> -> vector<1x32xf32>
    %115 = arith.addf %113, %114 : vector<1x32xf32>
    %116 = arith.negf %115 : vector<1x32xf32>
    %117 = math.exp %116 : vector<1x32xf32>
    %cst_49 = arith.constant 1.000000e+00 : f32
    %118 = vector.broadcast %cst_49 : f32 to vector<1x32xf32>
    %119 = arith.addf %118, %117 : vector<1x32xf32>
    %120 = arith.divf %118, %119 : vector<1x32xf32>
    %121 = vector.extract_strided_slice %15 {offsets = [3, 0], sizes = [1, 32], strides = [1, 1]} : vector<8x32xf32> to vector<1x32xf32>
    %cst_50 = arith.constant dense<0.000000e+00> : vector<1x32xf32>
    %122 = tpu.matmul %103, %18, %cst_50 {dimension_numbers = #tpu.dot_dimension_numbers<[1], [0], [0], [1], [0, 0, 1, 1], [], []>} : vector<1x32xf32>, vector<32x32xf32>, vector<1x32xf32> -> vector<1x32xf32>
    %123 = arith.addf %122, %19 : vector<1x32xf32>
    %124 = arith.mulf %112, %123 : vector<1x32xf32>
    %125 = arith.addf %121, %124 : vector<1x32xf32>
    %126 = math.tanh %125 : vector<1x32xf32>
    %cst_51 = arith.constant 1.000000e+00 : f32
    %127 = vector.broadcast %cst_51 : f32 to vector<1x32xf32>
    %128 = arith.subf %127, %120 : vector<1x32xf32>
    %129 = arith.mulf %128, %126 : vector<1x32xf32>
    %130 = arith.mulf %120, %103 : vector<1x32xf32>
    %131 = arith.addf %129, %130 : vector<1x32xf32>
    %c3 = arith.constant 3 : index
    %c0_52 = arith.constant 0 : index
    %132 = vector.load %arg32[%c3, %c0_52] : memref<8x32xf32, #tpu.memory_space<vmem>>, vector<1x32xf32>
    tpu.vector_store %arg32[%c3, %c0_52], %131 {strides = array<i32>} : memref<8x32xf32, #tpu.memory_space<vmem>>, vector<1x32xf32>,
    %133 = vector.extract_strided_slice %5 {offsets = [4, 0], sizes = [1, 32], strides = [1, 1]} : vector<8x32xf32> to vector<1x32xf32>
    %cst_53 = arith.constant dense<0.000000e+00> : vector<1x32xf32>
    %134 = tpu.matmul %131, %16, %cst_53 {dimension_numbers = #tpu.dot_dimension_numbers<[1], [0], [0], [1], [0, 0, 1, 1], [], []>} : vector<1x32xf32>, vector<32x32xf32>, vector<1x32xf32> -> vector<1x32xf32>
    %135 = arith.addf %133, %134 : vector<1x32xf32>
    %136 = arith.negf %135 : vector<1x32xf32>
    %137 = math.exp %136 : vector<1x32xf32>
    %cst_54 = arith.constant 1.000000e+00 : f32
    %138 = vector.broadcast %cst_54 : f32 to vector<1x32xf32>
    %139 = arith.addf %138, %137 : vector<1x32xf32>
    %140 = arith.divf %138, %139 : vector<1x32xf32>
    %141 = vector.extract_strided_slice %10 {offsets = [4, 0], sizes = [1, 32], strides = [1, 1]} : vector<8x32xf32> to vector<1x32xf32>
    %cst_55 = arith.constant dense<0.000000e+00> : vector<1x32xf32>
    %142 = tpu.matmul %131, %17, %cst_55 {dimension_numbers = #tpu.dot_dimension_numbers<[1], [0], [0], [1], [0, 0, 1, 1], [], []>} : vector<1x32xf32>, vector<32x32xf32>, vector<1x32xf32> -> vector<1x32xf32>
    %143 = arith.addf %141, %142 : vector<1x32xf32>
    %144 = arith.negf %143 : vector<1x32xf32>
    %145 = math.exp %144 : vector<1x32xf32>
    %cst_56 = arith.constant 1.000000e+00 : f32
    %146 = vector.broadcast %cst_56 : f32 to vector<1x32xf32>
    %147 = arith.addf %146, %145 : vector<1x32xf32>
    %148 = arith.divf %146, %147 : vector<1x32xf32>
    %149 = vector.extract_strided_slice %15 {offsets = [4, 0], sizes = [1, 32], strides = [1, 1]} : vector<8x32xf32> to vector<1x32xf32>
    %cst_57 = arith.constant dense<0.000000e+00> : vector<1x32xf32>
    %150 = tpu.matmul %131, %18, %cst_57 {dimension_numbers = #tpu.dot_dimension_numbers<[1], [0], [0], [1], [0, 0, 1, 1], [], []>} : vector<1x32xf32>, vector<32x32xf32>, vector<1x32xf32> -> vector<1x32xf32>
    %151 = arith.addf %150, %19 : vector<1x32xf32>
    %152 = arith.mulf %140, %151 : vector<1x32xf32>
    %153 = arith.addf %149, %152 : vector<1x32xf32>
    %154 = math.tanh %153 : vector<1x32xf32>
    %cst_58 = arith.constant 1.000000e+00 : f32
    %155 = vector.broadcast %cst_58 : f32 to vector<1x32xf32>
    %156 = arith.subf %155, %148 : vector<1x32xf32>
    %157 = arith.mulf %156, %154 : vector<1x32xf32>
    %158 = arith.mulf %148, %131 : vector<1x32xf32>
    %159 = arith.addf %157, %158 : vector<1x32xf32>
    %c4 = arith.constant 4 : index
    %c0_59 = arith.constant 0 : index
    %160 = vector.load %arg32[%c4, %c0_59] : memref<8x32xf32, #tpu.memory_space<vmem>>, vector<1x32xf32>
    tpu.vector_store %arg32[%c4, %c0_59], %159 {strides = array<i32>} : memref<8x32xf32, #tpu.memory_space<vmem>>, vector<1x32xf32>,
    %161 = vector.extract_strided_slice %5 {offsets = [5, 0], sizes = [1, 32], strides = [1, 1]} : vector<8x32xf32> to vector<1x32xf32>
    %cst_60 = arith.constant dense<0.000000e+00> : vector<1x32xf32>
    %162 = tpu.matmul %159, %16, %cst_60 {dimension_numbers = #tpu.dot_dimension_numbers<[1], [0], [0], [1], [0, 0, 1, 1], [], []>} : vector<1x32xf32>, vector<32x32xf32>, vector<1x32xf32> -> vector<1x32xf32>
    %163 = arith.addf %161, %162 : vector<1x32xf32>
    %164 = arith.negf %163 : vector<1x32xf32>
    %165 = math.exp %164 : vector<1x32xf32>
    %cst_61 = arith.constant 1.000000e+00 : f32
    %166 = vector.broadcast %cst_61 : f32 to vector<1x32xf32>
    %167 = arith.addf %166, %165 : vector<1x32xf32>
    %168 = arith.divf %166, %167 : vector<1x32xf32>
    %169 = vector.extract_strided_slice %10 {offsets = [5, 0], sizes = [1, 32], strides = [1, 1]} : vector<8x32xf32> to vector<1x32xf32>
    %cst_62 = arith.constant dense<0.000000e+00> : vector<1x32xf32>
    %170 = tpu.matmul %159, %17, %cst_62 {dimension_numbers = #tpu.dot_dimension_numbers<[1], [0], [0], [1], [0, 0, 1, 1], [], []>} : vector<1x32xf32>, vector<32x32xf32>, vector<1x32xf32> -> vector<1x32xf32>
    %171 = arith.addf %169, %170 : vector<1x32xf32>
    %172 = arith.negf %171 : vector<1x32xf32>
    %173 = math.exp %172 : vector<1x32xf32>
    %cst_63 = arith.constant 1.000000e+00 : f32
    %174 = vector.broadcast %cst_63 : f32 to vector<1x32xf32>
    %175 = arith.addf %174, %173 : vector<1x32xf32>
    %176 = arith.divf %174, %175 : vector<1x32xf32>
    %177 = vector.extract_strided_slice %15 {offsets = [5, 0], sizes = [1, 32], strides = [1, 1]} : vector<8x32xf32> to vector<1x32xf32>
    %cst_64 = arith.constant dense<0.000000e+00> : vector<1x32xf32>
    %178 = tpu.matmul %159, %18, %cst_64 {dimension_numbers = #tpu.dot_dimension_numbers<[1], [0], [0], [1], [0, 0, 1, 1], [], []>} : vector<1x32xf32>, vector<32x32xf32>, vector<1x32xf32> -> vector<1x32xf32>
    %179 = arith.addf %178, %19 : vector<1x32xf32>
    %180 = arith.mulf %168, %179 : vector<1x32xf32>
    %181 = arith.addf %177, %180 : vector<1x32xf32>
    %182 = math.tanh %181 : vector<1x32xf32>
    %cst_65 = arith.constant 1.000000e+00 : f32
    %183 = vector.broadcast %cst_65 : f32 to vector<1x32xf32>
    %184 = arith.subf %183, %176 : vector<1x32xf32>
    %185 = arith.mulf %184, %182 : vector<1x32xf32>
    %186 = arith.mulf %176, %159 : vector<1x32xf32>
    %187 = arith.addf %185, %186 : vector<1x32xf32>
    %c5 = arith.constant 5 : index
    %c0_66 = arith.constant 0 : index
    %188 = vector.load %arg32[%c5, %c0_66] : memref<8x32xf32, #tpu.memory_space<vmem>>, vector<1x32xf32>
    tpu.vector_store %arg32[%c5, %c0_66], %187 {strides = array<i32>} : memref<8x32xf32, #tpu.memory_space<vmem>>, vector<1x32xf32>,
    %189 = vector.extract_strided_slice %5 {offsets = [6, 0], sizes = [1, 32], strides = [1, 1]} : vector<8x32xf32> to vector<1x32xf32>
    %cst_67 = arith.constant dense<0.000000e+00> : vector<1x32xf32>
    %190 = tpu.matmul %187, %16, %cst_67 {dimension_numbers = #tpu.dot_dimension_numbers<[1], [0], [0], [1], [0, 0, 1, 1], [], []>} : vector<1x32xf32>, vector<32x32xf32>, vector<1x32xf32> -> vector<1x32xf32>
    %191 = arith.addf %189, %190 : vector<1x32xf32>
    %192 = arith.negf %191 : vector<1x32xf32>
    %193 = math.exp %192 : vector<1x32xf32>
    %cst_68 = arith.constant 1.000000e+00 : f32
    %194 = vector.broadcast %cst_68 : f32 to vector<1x32xf32>
    %195 = arith.addf %194, %193 : vector<1x32xf32>
    %196 = arith.divf %194, %195 : vector<1x32xf32>
    %197 = vector.extract_strided_slice %10 {offsets = [6, 0], sizes = [1, 32], strides = [1, 1]} : vector<8x32xf32> to vector<1x32xf32>
    %cst_69 = arith.constant dense<0.000000e+00> : vector<1x32xf32>
    %198 = tpu.matmul %187, %17, %cst_69 {dimension_numbers = #tpu.dot_dimension_numbers<[1], [0], [0], [1], [0, 0, 1, 1], [], []>} : vector<1x32xf32>, vector<32x32xf32>, vector<1x32xf32> -> vector<1x32xf32>
    %199 = arith.addf %197, %198 : vector<1x32xf32>
    %200 = arith.negf %199 : vector<1x32xf32>
    %201 = math.exp %200 : vector<1x32xf32>
    %cst_70 = arith.constant 1.000000e+00 : f32
    %202 = vector.broadcast %cst_70 : f32 to vector<1x32xf32>
    %203 = arith.addf %202, %201 : vector<1x32xf32>
    %204 = arith.divf %202, %203 : vector<1x32xf32>
    %205 = vector.extract_strided_slice %15 {offsets = [6, 0], sizes = [1, 32], strides = [1, 1]} : vector<8x32xf32> to vector<1x32xf32>
    %cst_71 = arith.constant dense<0.000000e+00> : vector<1x32xf32>
    %206 = tpu.matmul %187, %18, %cst_71 {dimension_numbers = #tpu.dot_dimension_numbers<[1], [0], [0], [1], [0, 0, 1, 1], [], []>} : vector<1x32xf32>, vector<32x32xf32>, vector<1x32xf32> -> vector<1x32xf32>
    %207 = arith.addf %206, %19 : vector<1x32xf32>
    %208 = arith.mulf %196, %207 : vector<1x32xf32>
    %209 = arith.addf %205, %208 : vector<1x32xf32>
    %210 = math.tanh %209 : vector<1x32xf32>
    %cst_72 = arith.constant 1.000000e+00 : f32
    %211 = vector.broadcast %cst_72 : f32 to vector<1x32xf32>
    %212 = arith.subf %211, %204 : vector<1x32xf32>
    %213 = arith.mulf %212, %210 : vector<1x32xf32>
    %214 = arith.mulf %204, %187 : vector<1x32xf32>
    %215 = arith.addf %213, %214 : vector<1x32xf32>
    %c6 = arith.constant 6 : index
    %c0_73 = arith.constant 0 : index
    %216 = vector.load %arg32[%c6, %c0_73] : memref<8x32xf32, #tpu.memory_space<vmem>>, vector<1x32xf32>
    tpu.vector_store %arg32[%c6, %c0_73], %215 {strides = array<i32>} : memref<8x32xf32, #tpu.memory_space<vmem>>, vector<1x32xf32>,
    %217 = vector.extract_strided_slice %5 {offsets = [7, 0], sizes = [1, 32], strides = [1, 1]} : vector<8x32xf32> to vector<1x32xf32>
    %cst_74 = arith.constant dense<0.000000e+00> : vector<1x32xf32>
    %218 = tpu.matmul %215, %16, %cst_74 {dimension_numbers = #tpu.dot_dimension_numbers<[1], [0], [0], [1], [0, 0, 1, 1], [], []>} : vector<1x32xf32>, vector<32x32xf32>, vector<1x32xf32> -> vector<1x32xf32>
    %219 = arith.addf %217, %218 : vector<1x32xf32>
    %220 = arith.negf %219 : vector<1x32xf32>
    %221 = math.exp %220 : vector<1x32xf32>
    %cst_75 = arith.constant 1.000000e+00 : f32
    %222 = vector.broadcast %cst_75 : f32 to vector<1x32xf32>
    %223 = arith.addf %222, %221 : vector<1x32xf32>
    %224 = arith.divf %222, %223 : vector<1x32xf32>
    %225 = vector.extract_strided_slice %10 {offsets = [7, 0], sizes = [1, 32], strides = [1, 1]} : vector<8x32xf32> to vector<1x32xf32>
    %cst_76 = arith.constant dense<0.000000e+00> : vector<1x32xf32>
    %226 = tpu.matmul %215, %17, %cst_76 {dimension_numbers = #tpu.dot_dimension_numbers<[1], [0], [0], [1], [0, 0, 1, 1], [], []>} : vector<1x32xf32>, vector<32x32xf32>, vector<1x32xf32> -> vector<1x32xf32>
    %227 = arith.addf %225, %226 : vector<1x32xf32>
    %228 = arith.negf %227 : vector<1x32xf32>
    %229 = math.exp %228 : vector<1x32xf32>
    %cst_77 = arith.constant 1.000000e+00 : f32
    %230 = vector.broadcast %cst_77 : f32 to vector<1x32xf32>
    %231 = arith.addf %230, %229 : vector<1x32xf32>
    %232 = arith.divf %230, %231 : vector<1x32xf32>
    %233 = vector.extract_strided_slice %15 {offsets = [7, 0], sizes = [1, 32], strides = [1, 1]} : vector<8x32xf32> to vector<1x32xf32>
    %cst_78 = arith.constant dense<0.000000e+00> : vector<1x32xf32>
    %234 = tpu.matmul %215, %18, %cst_78 {dimension_numbers = #tpu.dot_dimension_numbers<[1], [0], [0], [1], [0, 0, 1, 1], [], []>} : vector<1x32xf32>, vector<32x32xf32>, vector<1x32xf32> -> vector<1x32xf32>
    %235 = arith.addf %234, %19 : vector<1x32xf32>
    %236 = arith.mulf %224, %235 : vector<1x32xf32>
    %237 = arith.addf %233, %236 : vector<1x32xf32>
    %238 = math.tanh %237 : vector<1x32xf32>
    %cst_79 = arith.constant 1.000000e+00 : f32
    %239 = vector.broadcast %cst_79 : f32 to vector<1x32xf32>
    %240 = arith.subf %239, %232 : vector<1x32xf32>
    %241 = arith.mulf %240, %238 : vector<1x32xf32>
    %242 = arith.mulf %232, %215 : vector<1x32xf32>
    %243 = arith.addf %241, %242 : vector<1x32xf32>
    %c7 = arith.constant 7 : index
    %c0_80 = arith.constant 0 : index
    %244 = vector.load %arg32[%c7, %c0_80] : memref<8x32xf32, #tpu.memory_space<vmem>>, vector<1x32xf32>
    tpu.vector_store %arg32[%c7, %c0_80], %243 {strides = array<i32>} : memref<8x32xf32, #tpu.memory_space<vmem>>, vector<1x32xf32>,
    %c0_81 = arith.constant 0 : index
    %c0_82 = arith.constant 0 : index
    %245 = vector.load %arg32[%c0_81, %c0_82] : memref<8x32xf32, #tpu.memory_space<vmem>>, vector<8x32xf32>
    %c0_83 = arith.constant 0 : index
    %c0_84 = arith.constant 0 : index
    %246 = vector.load %arg11[%c0_83, %c0_84] : memref<32x32xf32, #tpu.memory_space<vmem>>, vector<32x32xf32>
    %cst_85 = arith.constant dense<0.000000e+00> : vector<8x32xf32>
    %247 = tpu.matmul %245, %246, %cst_85 {dimension_numbers = #tpu.dot_dimension_numbers<[1], [0], [0], [1], [0, 0, 1, 1], [], []>} : vector<8x32xf32>, vector<32x32xf32>, vector<8x32xf32> -> vector<8x32xf32>
    %c0_86 = arith.constant 0 : index
    %c0_87 = arith.constant 0 : index
    %248 = vector.load %arg17[%c0_86, %c0_87] : memref<1x32xf32, #tpu.memory_space<vmem>>, vector<1x32xf32>
    %249 = vector.broadcast %248 : vector<1x32xf32> to vector<8x32xf32>
    %250 = arith.addf %247, %249 : vector<8x32xf32>
    %c0_88 = arith.constant 0 : index
    %c0_89 = arith.constant 0 : index
    %251 = vector.load %arg12[%c0_88, %c0_89] : memref<32x32xf32, #tpu.memory_space<vmem>>, vector<32x32xf32>
    %cst_90 = arith.constant dense<0.000000e+00> : vector<8x32xf32>
    %252 = tpu.matmul %245, %251, %cst_90 {dimension_numbers = #tpu.dot_dimension_numbers<[1], [0], [0], [1], [0, 0, 1, 1], [], []>} : vector<8x32xf32>, vector<32x32xf32>, vector<8x32xf32> -> vector<8x32xf32>
    %c0_91 = arith.constant 0 : index
    %c0_92 = arith.constant 0 : index
    %253 = vector.load %arg18[%c0_91, %c0_92] : memref<1x32xf32, #tpu.memory_space<vmem>>, vector<1x32xf32>
    %254 = vector.broadcast %253 : vector<1x32xf32> to vector<8x32xf32>
    %255 = arith.addf %252, %254 : vector<8x32xf32>
    %c0_93 = arith.constant 0 : index
    %c0_94 = arith.constant 0 : index
    %256 = vector.load %arg13[%c0_93, %c0_94] : memref<32x32xf32, #tpu.memory_space<vmem>>, vector<32x32xf32>
    %cst_95 = arith.constant dense<0.000000e+00> : vector<8x32xf32>
    %257 = tpu.matmul %245, %256, %cst_95 {dimension_numbers = #tpu.dot_dimension_numbers<[1], [0], [0], [1], [0, 0, 1, 1], [], []>} : vector<8x32xf32>, vector<32x32xf32>, vector<8x32xf32> -> vector<8x32xf32>
    %c0_96 = arith.constant 0 : index
    %c0_97 = arith.constant 0 : index
    %258 = vector.load %arg19[%c0_96, %c0_97] : memref<1x32xf32, #tpu.memory_space<vmem>>, vector<1x32xf32>
    %259 = vector.broadcast %258 : vector<1x32xf32> to vector<8x32xf32>
    %260 = arith.addf %257, %259 : vector<8x32xf32>
    %c0_98 = arith.constant 0 : index
    %c0_99 = arith.constant 0 : index
    %261 = vector.load %arg14[%c0_98, %c0_99] : memref<32x32xf32, #tpu.memory_space<vmem>>, vector<32x32xf32>
    %c0_100 = arith.constant 0 : index
    %c0_101 = arith.constant 0 : index
    %262 = vector.load %arg15[%c0_100, %c0_101] : memref<32x32xf32, #tpu.memory_space<vmem>>, vector<32x32xf32>
    %c0_102 = arith.constant 0 : index
    %c0_103 = arith.constant 0 : index
    %263 = vector.load %arg16[%c0_102, %c0_103] : memref<32x32xf32, #tpu.memory_space<vmem>>, vector<32x32xf32>
    %c0_104 = arith.constant 0 : index
    %c0_105 = arith.constant 0 : index
    %264 = vector.load %arg20[%c0_104, %c0_105] : memref<1x32xf32, #tpu.memory_space<vmem>>, vector<1x32xf32>
    %cst_106 = arith.constant 0.000000e+00 : f32
    %265 = vector.broadcast %cst_106 : f32 to vector<1x32xf32>
    %266 = vector.extract_strided_slice %250 {offsets = [0, 0], sizes = [1, 32], strides = [1, 1]} : vector<8x32xf32> to vector<1x32xf32>
    %cst_107 = arith.constant dense<0.000000e+00> : vector<1x32xf32>
    %267 = tpu.matmul %265, %261, %cst_107 {dimension_numbers = #tpu.dot_dimension_numbers<[1], [0], [0], [1], [0, 0, 1, 1], [], []>} : vector<1x32xf32>, vector<32x32xf32>, vector<1x32xf32> -> vector<1x32xf32>
    %268 = arith.addf %266, %267 : vector<1x32xf32>
    %269 = arith.negf %268 : vector<1x32xf32>
    %270 = math.exp %269 : vector<1x32xf32>
    %cst_108 = arith.constant 1.000000e+00 : f32
    %271 = vector.broadcast %cst_108 : f32 to vector<1x32xf32>
    %272 = arith.addf %271, %270 : vector<1x32xf32>
    %273 = arith.divf %271, %272 : vector<1x32xf32>
    %274 = vector.extract_strided_slice %255 {offsets = [0, 0], sizes = [1, 32], strides = [1, 1]} : vector<8x32xf32> to vector<1x32xf32>
    %cst_109 = arith.constant dense<0.000000e+00> : vector<1x32xf32>
    %275 = tpu.matmul %265, %262, %cst_109 {dimension_numbers = #tpu.dot_dimension_numbers<[1], [0], [0], [1], [0, 0, 1, 1], [], []>} : vector<1x32xf32>, vector<32x32xf32>, vector<1x32xf32> -> vector<1x32xf32>
    %276 = arith.addf %274, %275 : vector<1x32xf32>
    %277 = arith.negf %276 : vector<1x32xf32>
    %278 = math.exp %277 : vector<1x32xf32>
    %cst_110 = arith.constant 1.000000e+00 : f32
    %279 = vector.broadcast %cst_110 : f32 to vector<1x32xf32>
    %280 = arith.addf %279, %278 : vector<1x32xf32>
    %281 = arith.divf %279, %280 : vector<1x32xf32>
    %282 = vector.extract_strided_slice %260 {offsets = [0, 0], sizes = [1, 32], strides = [1, 1]} : vector<8x32xf32> to vector<1x32xf32>
    %cst_111 = arith.constant dense<0.000000e+00> : vector<1x32xf32>
    %283 = tpu.matmul %265, %263, %cst_111 {dimension_numbers = #tpu.dot_dimension_numbers<[1], [0], [0], [1], [0, 0, 1, 1], [], []>} : vector<1x32xf32>, vector<32x32xf32>, vector<1x32xf32> -> vector<1x32xf32>
    %284 = arith.addf %283, %264 : vector<1x32xf32>
    %285 = arith.mulf %273, %284 : vector<1x32xf32>
    %286 = arith.addf %282, %285 : vector<1x32xf32>
    %287 = math.tanh %286 : vector<1x32xf32>
    %cst_112 = arith.constant 1.000000e+00 : f32
    %288 = vector.broadcast %cst_112 : f32 to vector<1x32xf32>
    %289 = arith.subf %288, %281 : vector<1x32xf32>
    %290 = arith.mulf %289, %287 : vector<1x32xf32>
    %291 = arith.mulf %281, %265 : vector<1x32xf32>
    %292 = arith.addf %290, %291 : vector<1x32xf32>
    %293 = vector.extract_strided_slice %250 {offsets = [1, 0], sizes = [1, 32], strides = [1, 1]} : vector<8x32xf32> to vector<1x32xf32>
    %cst_113 = arith.constant dense<0.000000e+00> : vector<1x32xf32>
    %294 = tpu.matmul %292, %261, %cst_113 {dimension_numbers = #tpu.dot_dimension_numbers<[1], [0], [0], [1], [0, 0, 1, 1], [], []>} : vector<1x32xf32>, vector<32x32xf32>, vector<1x32xf32> -> vector<1x32xf32>
    %295 = arith.addf %293, %294 : vector<1x32xf32>
    %296 = arith.negf %295 : vector<1x32xf32>
    %297 = math.exp %296 : vector<1x32xf32>
    %cst_114 = arith.constant 1.000000e+00 : f32
    %298 = vector.broadcast %cst_114 : f32 to vector<1x32xf32>
    %299 = arith.addf %298, %297 : vector<1x32xf32>
    %300 = arith.divf %298, %299 : vector<1x32xf32>
    %301 = vector.extract_strided_slice %255 {offsets = [1, 0], sizes = [1, 32], strides = [1, 1]} : vector<8x32xf32> to vector<1x32xf32>
    %cst_115 = arith.constant dense<0.000000e+00> : vector<1x32xf32>
    %302 = tpu.matmul %292, %262, %cst_115 {dimension_numbers = #tpu.dot_dimension_numbers<[1], [0], [0], [1], [0, 0, 1, 1], [], []>} : vector<1x32xf32>, vector<32x32xf32>, vector<1x32xf32> -> vector<1x32xf32>
    %303 = arith.addf %301, %302 : vector<1x32xf32>
    %304 = arith.negf %303 : vector<1x32xf32>
    %305 = math.exp %304 : vector<1x32xf32>
    %cst_116 = arith.constant 1.000000e+00 : f32
    %306 = vector.broadcast %cst_116 : f32 to vector<1x32xf32>
    %307 = arith.addf %306, %305 : vector<1x32xf32>
    %308 = arith.divf %306, %307 : vector<1x32xf32>
    %309 = vector.extract_strided_slice %260 {offsets = [1, 0], sizes = [1, 32], strides = [1, 1]} : vector<8x32xf32> to vector<1x32xf32>
    %cst_117 = arith.constant dense<0.000000e+00> : vector<1x32xf32>
    %310 = tpu.matmul %292, %263, %cst_117 {dimension_numbers = #tpu.dot_dimension_numbers<[1], [0], [0], [1], [0, 0, 1, 1], [], []>} : vector<1x32xf32>, vector<32x32xf32>, vector<1x32xf32> -> vector<1x32xf32>
    %311 = arith.addf %310, %264 : vector<1x32xf32>
    %312 = arith.mulf %300, %311 : vector<1x32xf32>
    %313 = arith.addf %309, %312 : vector<1x32xf32>
    %314 = math.tanh %313 : vector<1x32xf32>
    %cst_118 = arith.constant 1.000000e+00 : f32
    %315 = vector.broadcast %cst_118 : f32 to vector<1x32xf32>
    %316 = arith.subf %315, %308 : vector<1x32xf32>
    %317 = arith.mulf %316, %314 : vector<1x32xf32>
    %318 = arith.mulf %308, %292 : vector<1x32xf32>
    %319 = arith.addf %317, %318 : vector<1x32xf32>
    %320 = vector.extract_strided_slice %250 {offsets = [2, 0], sizes = [1, 32], strides = [1, 1]} : vector<8x32xf32> to vector<1x32xf32>
    %cst_119 = arith.constant dense<0.000000e+00> : vector<1x32xf32>
    %321 = tpu.matmul %319, %261, %cst_119 {dimension_numbers = #tpu.dot_dimension_numbers<[1], [0], [0], [1], [0, 0, 1, 1], [], []>} : vector<1x32xf32>, vector<32x32xf32>, vector<1x32xf32> -> vector<1x32xf32>
    %322 = arith.addf %320, %321 : vector<1x32xf32>
    %323 = arith.negf %322 : vector<1x32xf32>
    %324 = math.exp %323 : vector<1x32xf32>
    %cst_120 = arith.constant 1.000000e+00 : f32
    %325 = vector.broadcast %cst_120 : f32 to vector<1x32xf32>
    %326 = arith.addf %325, %324 : vector<1x32xf32>
    %327 = arith.divf %325, %326 : vector<1x32xf32>
    %328 = vector.extract_strided_slice %255 {offsets = [2, 0], sizes = [1, 32], strides = [1, 1]} : vector<8x32xf32> to vector<1x32xf32>
    %cst_121 = arith.constant dense<0.000000e+00> : vector<1x32xf32>
    %329 = tpu.matmul %319, %262, %cst_121 {dimension_numbers = #tpu.dot_dimension_numbers<[1], [0], [0], [1], [0, 0, 1, 1], [], []>} : vector<1x32xf32>, vector<32x32xf32>, vector<1x32xf32> -> vector<1x32xf32>
    %330 = arith.addf %328, %329 : vector<1x32xf32>
    %331 = arith.negf %330 : vector<1x32xf32>
    %332 = math.exp %331 : vector<1x32xf32>
    %cst_122 = arith.constant 1.000000e+00 : f32
    %333 = vector.broadcast %cst_122 : f32 to vector<1x32xf32>
    %334 = arith.addf %333, %332 : vector<1x32xf32>
    %335 = arith.divf %333, %334 : vector<1x32xf32>
    %336 = vector.extract_strided_slice %260 {offsets = [2, 0], sizes = [1, 32], strides = [1, 1]} : vector<8x32xf32> to vector<1x32xf32>
    %cst_123 = arith.constant dense<0.000000e+00> : vector<1x32xf32>
    %337 = tpu.matmul %319, %263, %cst_123 {dimension_numbers = #tpu.dot_dimension_numbers<[1], [0], [0], [1], [0, 0, 1, 1], [], []>} : vector<1x32xf32>, vector<32x32xf32>, vector<1x32xf32> -> vector<1x32xf32>
    %338 = arith.addf %337, %264 : vector<1x32xf32>
    %339 = arith.mulf %327, %338 : vector<1x32xf32>
    %340 = arith.addf %336, %339 : vector<1x32xf32>
    %341 = math.tanh %340 : vector<1x32xf32>
    %cst_124 = arith.constant 1.000000e+00 : f32
    %342 = vector.broadcast %cst_124 : f32 to vector<1x32xf32>
    %343 = arith.subf %342, %335 : vector<1x32xf32>
    %344 = arith.mulf %343, %341 : vector<1x32xf32>
    %345 = arith.mulf %335, %319 : vector<1x32xf32>
    %346 = arith.addf %344, %345 : vector<1x32xf32>
    %347 = vector.extract_strided_slice %250 {offsets = [3, 0], sizes = [1, 32], strides = [1, 1]} : vector<8x32xf32> to vector<1x32xf32>
    %cst_125 = arith.constant dense<0.000000e+00> : vector<1x32xf32>
    %348 = tpu.matmul %346, %261, %cst_125 {dimension_numbers = #tpu.dot_dimension_numbers<[1], [0], [0], [1], [0, 0, 1, 1], [], []>} : vector<1x32xf32>, vector<32x32xf32>, vector<1x32xf32> -> vector<1x32xf32>
    %349 = arith.addf %347, %348 : vector<1x32xf32>
    %350 = arith.negf %349 : vector<1x32xf32>
    %351 = math.exp %350 : vector<1x32xf32>
    %cst_126 = arith.constant 1.000000e+00 : f32
    %352 = vector.broadcast %cst_126 : f32 to vector<1x32xf32>
    %353 = arith.addf %352, %351 : vector<1x32xf32>
    %354 = arith.divf %352, %353 : vector<1x32xf32>
    %355 = vector.extract_strided_slice %255 {offsets = [3, 0], sizes = [1, 32], strides = [1, 1]} : vector<8x32xf32> to vector<1x32xf32>
    %cst_127 = arith.constant dense<0.000000e+00> : vector<1x32xf32>
    %356 = tpu.matmul %346, %262, %cst_127 {dimension_numbers = #tpu.dot_dimension_numbers<[1], [0], [0], [1], [0, 0, 1, 1], [], []>} : vector<1x32xf32>, vector<32x32xf32>, vector<1x32xf32> -> vector<1x32xf32>
    %357 = arith.addf %355, %356 : vector<1x32xf32>
    %358 = arith.negf %357 : vector<1x32xf32>
    %359 = math.exp %358 : vector<1x32xf32>
    %cst_128 = arith.constant 1.000000e+00 : f32
    %360 = vector.broadcast %cst_128 : f32 to vector<1x32xf32>
    %361 = arith.addf %360, %359 : vector<1x32xf32>
    %362 = arith.divf %360, %361 : vector<1x32xf32>
    %363 = vector.extract_strided_slice %260 {offsets = [3, 0], sizes = [1, 32], strides = [1, 1]} : vector<8x32xf32> to vector<1x32xf32>
    %cst_129 = arith.constant dense<0.000000e+00> : vector<1x32xf32>
    %364 = tpu.matmul %346, %263, %cst_129 {dimension_numbers = #tpu.dot_dimension_numbers<[1], [0], [0], [1], [0, 0, 1, 1], [], []>} : vector<1x32xf32>, vector<32x32xf32>, vector<1x32xf32> -> vector<1x32xf32>
    %365 = arith.addf %364, %264 : vector<1x32xf32>
    %366 = arith.mulf %354, %365 : vector<1x32xf32>
    %367 = arith.addf %363, %366 : vector<1x32xf32>
    %368 = math.tanh %367 : vector<1x32xf32>
    %cst_130 = arith.constant 1.000000e+00 : f32
    %369 = vector.broadcast %cst_130 : f32 to vector<1x32xf32>
    %370 = arith.subf %369, %362 : vector<1x32xf32>
    %371 = arith.mulf %370, %368 : vector<1x32xf32>
    %372 = arith.mulf %362, %346 : vector<1x32xf32>
    %373 = arith.addf %371, %372 : vector<1x32xf32>
    %374 = vector.extract_strided_slice %250 {offsets = [4, 0], sizes = [1, 32], strides = [1, 1]} : vector<8x32xf32> to vector<1x32xf32>
    %cst_131 = arith.constant dense<0.000000e+00> : vector<1x32xf32>
    %375 = tpu.matmul %373, %261, %cst_131 {dimension_numbers = #tpu.dot_dimension_numbers<[1], [0], [0], [1], [0, 0, 1, 1], [], []>} : vector<1x32xf32>, vector<32x32xf32>, vector<1x32xf32> -> vector<1x32xf32>
    %376 = arith.addf %374, %375 : vector<1x32xf32>
    %377 = arith.negf %376 : vector<1x32xf32>
    %378 = math.exp %377 : vector<1x32xf32>
    %cst_132 = arith.constant 1.000000e+00 : f32
    %379 = vector.broadcast %cst_132 : f32 to vector<1x32xf32>
    %380 = arith.addf %379, %378 : vector<1x32xf32>
    %381 = arith.divf %379, %380 : vector<1x32xf32>
    %382 = vector.extract_strided_slice %255 {offsets = [4, 0], sizes = [1, 32], strides = [1, 1]} : vector<8x32xf32> to vector<1x32xf32>
    %cst_133 = arith.constant dense<0.000000e+00> : vector<1x32xf32>
    %383 = tpu.matmul %373, %262, %cst_133 {dimension_numbers = #tpu.dot_dimension_numbers<[1], [0], [0], [1], [0, 0, 1, 1], [], []>} : vector<1x32xf32>, vector<32x32xf32>, vector<1x32xf32> -> vector<1x32xf32>
    %384 = arith.addf %382, %383 : vector<1x32xf32>
    %385 = arith.negf %384 : vector<1x32xf32>
    %386 = math.exp %385 : vector<1x32xf32>
    %cst_134 = arith.constant 1.000000e+00 : f32
    %387 = vector.broadcast %cst_134 : f32 to vector<1x32xf32>
    %388 = arith.addf %387, %386 : vector<1x32xf32>
    %389 = arith.divf %387, %388 : vector<1x32xf32>
    %390 = vector.extract_strided_slice %260 {offsets = [4, 0], sizes = [1, 32], strides = [1, 1]} : vector<8x32xf32> to vector<1x32xf32>
    %cst_135 = arith.constant dense<0.000000e+00> : vector<1x32xf32>
    %391 = tpu.matmul %373, %263, %cst_135 {dimension_numbers = #tpu.dot_dimension_numbers<[1], [0], [0], [1], [0, 0, 1, 1], [], []>} : vector<1x32xf32>, vector<32x32xf32>, vector<1x32xf32> -> vector<1x32xf32>
    %392 = arith.addf %391, %264 : vector<1x32xf32>
    %393 = arith.mulf %381, %392 : vector<1x32xf32>
    %394 = arith.addf %390, %393 : vector<1x32xf32>
    %395 = math.tanh %394 : vector<1x32xf32>
    %cst_136 = arith.constant 1.000000e+00 : f32
    %396 = vector.broadcast %cst_136 : f32 to vector<1x32xf32>
    %397 = arith.subf %396, %389 : vector<1x32xf32>
    %398 = arith.mulf %397, %395 : vector<1x32xf32>
    %399 = arith.mulf %389, %373 : vector<1x32xf32>
    %400 = arith.addf %398, %399 : vector<1x32xf32>
    %401 = vector.extract_strided_slice %250 {offsets = [5, 0], sizes = [1, 32], strides = [1, 1]} : vector<8x32xf32> to vector<1x32xf32>
    %cst_137 = arith.constant dense<0.000000e+00> : vector<1x32xf32>
    %402 = tpu.matmul %400, %261, %cst_137 {dimension_numbers = #tpu.dot_dimension_numbers<[1], [0], [0], [1], [0, 0, 1, 1], [], []>} : vector<1x32xf32>, vector<32x32xf32>, vector<1x32xf32> -> vector<1x32xf32>
    %403 = arith.addf %401, %402 : vector<1x32xf32>
    %404 = arith.negf %403 : vector<1x32xf32>
    %405 = math.exp %404 : vector<1x32xf32>
    %cst_138 = arith.constant 1.000000e+00 : f32
    %406 = vector.broadcast %cst_138 : f32 to vector<1x32xf32>
    %407 = arith.addf %406, %405 : vector<1x32xf32>
    %408 = arith.divf %406, %407 : vector<1x32xf32>
    %409 = vector.extract_strided_slice %255 {offsets = [5, 0], sizes = [1, 32], strides = [1, 1]} : vector<8x32xf32> to vector<1x32xf32>
    %cst_139 = arith.constant dense<0.000000e+00> : vector<1x32xf32>
    %410 = tpu.matmul %400, %262, %cst_139 {dimension_numbers = #tpu.dot_dimension_numbers<[1], [0], [0], [1], [0, 0, 1, 1], [], []>} : vector<1x32xf32>, vector<32x32xf32>, vector<1x32xf32> -> vector<1x32xf32>
    %411 = arith.addf %409, %410 : vector<1x32xf32>
    %412 = arith.negf %411 : vector<1x32xf32>
    %413 = math.exp %412 : vector<1x32xf32>
    %cst_140 = arith.constant 1.000000e+00 : f32
    %414 = vector.broadcast %cst_140 : f32 to vector<1x32xf32>
    %415 = arith.addf %414, %413 : vector<1x32xf32>
    %416 = arith.divf %414, %415 : vector<1x32xf32>
    %417 = vector.extract_strided_slice %260 {offsets = [5, 0], sizes = [1, 32], strides = [1, 1]} : vector<8x32xf32> to vector<1x32xf32>
    %cst_141 = arith.constant dense<0.000000e+00> : vector<1x32xf32>
    %418 = tpu.matmul %400, %263, %cst_141 {dimension_numbers = #tpu.dot_dimension_numbers<[1], [0], [0], [1], [0, 0, 1, 1], [], []>} : vector<1x32xf32>, vector<32x32xf32>, vector<1x32xf32> -> vector<1x32xf32>
    %419 = arith.addf %418, %264 : vector<1x32xf32>
    %420 = arith.mulf %408, %419 : vector<1x32xf32>
    %421 = arith.addf %417, %420 : vector<1x32xf32>
    %422 = math.tanh %421 : vector<1x32xf32>
    %cst_142 = arith.constant 1.000000e+00 : f32
    %423 = vector.broadcast %cst_142 : f32 to vector<1x32xf32>
    %424 = arith.subf %423, %416 : vector<1x32xf32>
    %425 = arith.mulf %424, %422 : vector<1x32xf32>
    %426 = arith.mulf %416, %400 : vector<1x32xf32>
    %427 = arith.addf %425, %426 : vector<1x32xf32>
    %428 = vector.extract_strided_slice %250 {offsets = [6, 0], sizes = [1, 32], strides = [1, 1]} : vector<8x32xf32> to vector<1x32xf32>
    %cst_143 = arith.constant dense<0.000000e+00> : vector<1x32xf32>
    %429 = tpu.matmul %427, %261, %cst_143 {dimension_numbers = #tpu.dot_dimension_numbers<[1], [0], [0], [1], [0, 0, 1, 1], [], []>} : vector<1x32xf32>, vector<32x32xf32>, vector<1x32xf32> -> vector<1x32xf32>
    %430 = arith.addf %428, %429 : vector<1x32xf32>
    %431 = arith.negf %430 : vector<1x32xf32>
    %432 = math.exp %431 : vector<1x32xf32>
    %cst_144 = arith.constant 1.000000e+00 : f32
    %433 = vector.broadcast %cst_144 : f32 to vector<1x32xf32>
    %434 = arith.addf %433, %432 : vector<1x32xf32>
    %435 = arith.divf %433, %434 : vector<1x32xf32>
    %436 = vector.extract_strided_slice %255 {offsets = [6, 0], sizes = [1, 32], strides = [1, 1]} : vector<8x32xf32> to vector<1x32xf32>
    %cst_145 = arith.constant dense<0.000000e+00> : vector<1x32xf32>
    %437 = tpu.matmul %427, %262, %cst_145 {dimension_numbers = #tpu.dot_dimension_numbers<[1], [0], [0], [1], [0, 0, 1, 1], [], []>} : vector<1x32xf32>, vector<32x32xf32>, vector<1x32xf32> -> vector<1x32xf32>
    %438 = arith.addf %436, %437 : vector<1x32xf32>
    %439 = arith.negf %438 : vector<1x32xf32>
    %440 = math.exp %439 : vector<1x32xf32>
    %cst_146 = arith.constant 1.000000e+00 : f32
    %441 = vector.broadcast %cst_146 : f32 to vector<1x32xf32>
    %442 = arith.addf %441, %440 : vector<1x32xf32>
    %443 = arith.divf %441, %442 : vector<1x32xf32>
    %444 = vector.extract_strided_slice %260 {offsets = [6, 0], sizes = [1, 32], strides = [1, 1]} : vector<8x32xf32> to vector<1x32xf32>
    %cst_147 = arith.constant dense<0.000000e+00> : vector<1x32xf32>
    %445 = tpu.matmul %427, %263, %cst_147 {dimension_numbers = #tpu.dot_dimension_numbers<[1], [0], [0], [1], [0, 0, 1, 1], [], []>} : vector<1x32xf32>, vector<32x32xf32>, vector<1x32xf32> -> vector<1x32xf32>
    %446 = arith.addf %445, %264 : vector<1x32xf32>
    %447 = arith.mulf %435, %446 : vector<1x32xf32>
    %448 = arith.addf %444, %447 : vector<1x32xf32>
    %449 = math.tanh %448 : vector<1x32xf32>
    %cst_148 = arith.constant 1.000000e+00 : f32
    %450 = vector.broadcast %cst_148 : f32 to vector<1x32xf32>
    %451 = arith.subf %450, %443 : vector<1x32xf32>
    %452 = arith.mulf %451, %449 : vector<1x32xf32>
    %453 = arith.mulf %443, %427 : vector<1x32xf32>
    %454 = arith.addf %452, %453 : vector<1x32xf32>
    %455 = vector.extract_strided_slice %250 {offsets = [7, 0], sizes = [1, 32], strides = [1, 1]} : vector<8x32xf32> to vector<1x32xf32>
    %cst_149 = arith.constant dense<0.000000e+00> : vector<1x32xf32>
    %456 = tpu.matmul %454, %261, %cst_149 {dimension_numbers = #tpu.dot_dimension_numbers<[1], [0], [0], [1], [0, 0, 1, 1], [], []>} : vector<1x32xf32>, vector<32x32xf32>, vector<1x32xf32> -> vector<1x32xf32>
    %457 = arith.addf %455, %456 : vector<1x32xf32>
    %458 = arith.negf %457 : vector<1x32xf32>
    %459 = math.exp %458 : vector<1x32xf32>
    %cst_150 = arith.constant 1.000000e+00 : f32
    %460 = vector.broadcast %cst_150 : f32 to vector<1x32xf32>
    %461 = arith.addf %460, %459 : vector<1x32xf32>
    %462 = arith.divf %460, %461 : vector<1x32xf32>
    %463 = vector.extract_strided_slice %255 {offsets = [7, 0], sizes = [1, 32], strides = [1, 1]} : vector<8x32xf32> to vector<1x32xf32>
    %cst_151 = arith.constant dense<0.000000e+00> : vector<1x32xf32>
    %464 = tpu.matmul %454, %262, %cst_151 {dimension_numbers = #tpu.dot_dimension_numbers<[1], [0], [0], [1], [0, 0, 1, 1], [], []>} : vector<1x32xf32>, vector<32x32xf32>, vector<1x32xf32> -> vector<1x32xf32>
    %465 = arith.addf %463, %464 : vector<1x32xf32>
    %466 = arith.negf %465 : vector<1x32xf32>
    %467 = math.exp %466 : vector<1x32xf32>
    %cst_152 = arith.constant 1.000000e+00 : f32
    %468 = vector.broadcast %cst_152 : f32 to vector<1x32xf32>
    %469 = arith.addf %468, %467 : vector<1x32xf32>
    %470 = arith.divf %468, %469 : vector<1x32xf32>
    %471 = vector.extract_strided_slice %260 {offsets = [7, 0], sizes = [1, 32], strides = [1, 1]} : vector<8x32xf32> to vector<1x32xf32>
    %cst_153 = arith.constant dense<0.000000e+00> : vector<1x32xf32>
    %472 = tpu.matmul %454, %263, %cst_153 {dimension_numbers = #tpu.dot_dimension_numbers<[1], [0], [0], [1], [0, 0, 1, 1], [], []>} : vector<1x32xf32>, vector<32x32xf32>, vector<1x32xf32> -> vector<1x32xf32>
    %473 = arith.addf %472, %264 : vector<1x32xf32>
    %474 = arith.mulf %462, %473 : vector<1x32xf32>
    %475 = arith.addf %471, %474 : vector<1x32xf32>
    %476 = math.tanh %475 : vector<1x32xf32>
    %cst_154 = arith.constant 1.000000e+00 : f32
    %477 = vector.broadcast %cst_154 : f32 to vector<1x32xf32>
    %478 = arith.subf %477, %470 : vector<1x32xf32>
    %479 = arith.mulf %478, %476 : vector<1x32xf32>
    %480 = arith.mulf %470, %454 : vector<1x32xf32>
    %481 = arith.addf %479, %480 : vector<1x32xf32>
    %c0_155 = arith.constant 0 : index
    %c0_156 = arith.constant 0 : index
    %482 = vector.load %arg21[%c0_155, %c0_156] : memref<32x512xf32, #tpu.memory_space<vmem>>, vector<32x512xf32>
    %cst_157 = arith.constant dense<0.000000e+00> : vector<1x512xf32>
    %483 = tpu.matmul %481, %482, %cst_157 {dimension_numbers = #tpu.dot_dimension_numbers<[1], [0], [0], [1], [0, 0, 1, 1], [], []>} : vector<1x32xf32>, vector<32x512xf32>, vector<1x512xf32> -> vector<1x512xf32>
    %c0_158 = arith.constant 0 : index
    %c0_159 = arith.constant 0 : index
    %484 = vector.load %arg22[%c0_158, %c0_159] : memref<1x512xf32, #tpu.memory_space<vmem>>, vector<1x512xf32>
    %485 = arith.addf %483, %484 : vector<1x512xf32>
    %c0_160 = arith.constant 0 : index
    %c0_161 = arith.constant 0 : index
    %486 = vector.load %arg23[%c0_160, %c0_161] : memref<1x512xf32, #tpu.memory_space<vmem>>, vector<1x512xf32>
    %487 = arith.mulf %485, %486 : vector<1x512xf32>
    %c0_162 = arith.constant 0 : index
    %c0_163 = arith.constant 0 : index
    %488 = vector.load %arg24[%c0_162, %c0_163] : memref<1x512xf32, #tpu.memory_space<vmem>>, vector<1x512xf32>
    %489 = arith.addf %487, %488 : vector<1x512xf32>
    %cst_164 = arith.constant 0.000000e+00 : f32
    %490 = vector.broadcast %cst_164 : f32 to vector<1x512xf32>
    %491 = arith.maximumf %489, %490 : vector<1x512xf32>
    %c0_165 = arith.constant 0 : index
    %c0_166 = arith.constant 0 : index
    %492 = vector.load %arg25[%c0_165, %c0_166] : memref<512x256xf32, #tpu.memory_space<vmem>>, vector<512x256xf32>
    %cst_167 = arith.constant dense<0.000000e+00> : vector<1x256xf32>
    %493 = tpu.matmul %491, %492, %cst_167 {dimension_numbers = #tpu.dot_dimension_numbers<[1], [0], [0], [1], [0, 0, 1, 1], [], []>} : vector<1x512xf32>, vector<512x256xf32>, vector<1x256xf32> -> vector<1x256xf32>
    %c0_168 = arith.constant 0 : index
    %c0_169 = arith.constant 0 : index
    %494 = vector.load %arg26[%c0_168, %c0_169] : memref<1x256xf32, #tpu.memory_space<vmem>>, vector<1x256xf32>
    %495 = arith.addf %493, %494 : vector<1x256xf32>
    %c0_170 = arith.constant 0 : index
    %c0_171 = arith.constant 0 : index
    %496 = vector.load %arg27[%c0_170, %c0_171] : memref<1x256xf32, #tpu.memory_space<vmem>>, vector<1x256xf32>
    %497 = arith.mulf %495, %496 : vector<1x256xf32>
    %c0_172 = arith.constant 0 : index
    %c0_173 = arith.constant 0 : index
    %498 = vector.load %arg28[%c0_172, %c0_173] : memref<1x256xf32, #tpu.memory_space<vmem>>, vector<1x256xf32>
    %499 = arith.addf %497, %498 : vector<1x256xf32>
    %cst_174 = arith.constant 0.000000e+00 : f32
    %500 = vector.broadcast %cst_174 : f32 to vector<1x256xf32>
    %501 = arith.maximumf %499, %500 : vector<1x256xf32>
    %c0_175 = arith.constant 0 : index
    %c0_176 = arith.constant 0 : index
    %502 = vector.load %arg29[%c0_175, %c0_176] : memref<256x8xf32, #tpu.memory_space<vmem>>, vector<256x8xf32>
    %cst_177 = arith.constant dense<0.000000e+00> : vector<1x8xf32>
    %503 = tpu.matmul %501, %502, %cst_177 {dimension_numbers = #tpu.dot_dimension_numbers<[1], [0], [0], [1], [0, 0, 1, 1], [], []>} : vector<1x256xf32>, vector<256x8xf32>, vector<1x8xf32> -> vector<1x8xf32>
    %c0_178 = arith.constant 0 : index
    %c0_179 = arith.constant 0 : index
    %504 = vector.load %arg30[%c0_178, %c0_179] : memref<1x8xf32, #tpu.memory_space<vmem>>, vector<1x8xf32>
    %505 = arith.addf %503, %504 : vector<1x8xf32>
    %c0_180 = arith.constant 0 : index
    %c0_181 = arith.constant 0 : index
    %506 = vector.load %arg31[%c0_180, %c0_181] : memref<1x8xf32, #tpu.memory_space<vmem>>, vector<1x8xf32>
    tpu.vector_store %arg31[%c0_180, %c0_181], %505 {strides = array<i32>} : memref<1x8xf32, #tpu.memory_space<vmem>>, vector<1x8xf32>,
    return
  }
}

</mosaic_0001>

<bundles_post_ra>
// kernel: tpu_custom_call.1
= control target key start
LH: loop header
LB: loop body
LE: loop exit
PB: predicated region body
PF: predicated region fallthrough
CT: control target
= control target key end

     0   :  { %s7075_s6 = smov 1   ;;  %s7076_s10 = smov 2   ;;  %s8177_s0 = inlined_call_operand.smem [shape: u32[32], index: -1, kind: input, shape index: {}] }
   0x1   :  { %s7139_s5 = sld [smem:[%s8177_s0]]   ;;  %s7077_s14 = smov 3  }
   0x2   :  { %s7144_s9 = sld [smem:[%s8177_s0 + %s7075_s6]]   ;;  %s7078_s18 = smov 4  }
   0x3   :  { %s7149_s13 = sld [smem:[%s8177_s0 + %s7076_s10]]   ;;  %s7079_s22 = smov 5  }
   0x4   :  { %s7154_s17 = sld [smem:[%s8177_s0 + %s7077_s14]]   ;;  %s7080_s26 = smov 6  }
   0x5   :  { %s7159_s21 = sld [smem:[%s8177_s0 + %s7078_s18]]   ;;  %s7081_s30 = smov 7  }
   0x6   :  { %s7164_s25 = sld [smem:[%s8177_s0 + %s7079_s22]]   ;;  %s7082_s4 = smov 8  }
   0x7   :  { %s7169_s29 = sld [smem:[%s8177_s0 + %s7080_s26]]   ;;  %s7083_s10 = smov 9  }
   0x8   :  { %s7174_s3 = sld [smem:[%s8177_s0 + %s7081_s30]]   ;;  %s7084_s15 = smov 10  }
   0x9   :  { %s7179_s8 = sld [smem:[%s8177_s0 + %s7082_s4]]   ;;  %s7085_s20 = smov 11  }
   0xa   :  { %s7184_s14 = sld [smem:[%s8177_s0 + %s7083_s10]]   ;;  %s7086_s26 = smov 12  }
   0xb   :  { %8184 = sst [smem:[#allocation44_spill]] %s7159_s21  ;;  %s7087_s1 = smov 13  }
   0xc   :  { %8185 = sst [smem:[#allocation45_spill]] %s7164_s25  ;;  %s7088_s7 = smov 14  }
   0xd   :  { %8186 = sst [smem:[#allocation46_spill]] %s7169_s29  ;;  %s7090_s22 = smov 16  }
   0xe   :  { %s7189_s19 = sld [smem:[%s8177_s0 + %s7084_s15]]   ;;  %s7089_s15 = smov 15  }
   0xf   :  { %s7194_s24 = sld [smem:[%s8177_s0 + %s7085_s20]]   ;;  %s7091_s28 = smov 17  }
  0x10   :  { %s7199_s30 = sld [smem:[%s8177_s0 + %s7086_s26]]  }
  0x11   :  { %s7204_s6 = sld [smem:[%s8177_s0 + %s7087_s1]]  }
  0x12   :  { %s7209_s12 = sld [smem:[%s8177_s0 + %s7088_s7]]   ;;  %s7092_s7 = smov 18  }
  0x13   :  { %s7214_s20 = sld [smem:[%s8177_s0 + %s7089_s15]]   ;;  %s7093_s15 = smov 19  }
  0x14   :  { %s7219_s27 = sld [smem:[%s8177_s0 + %s7090_s22]]   ;;  %s7094_s22 = smov 20  }
  0x15   :  { %8187 = sst [smem:[#allocation47_spill]] %s7194_s24 }
  0x16   :  { %8188 = sst [smem:[#allocation48_spill]] %s7199_s30 }
  0x17   :  { %s7224_s4 = sld [smem:[%s8177_s0 + %s7091_s28]]   ;;  %s7095_s28 = smov 21  }
  0x18   :  { %s7229_s30 = sld [smem:[%s8177_s0 + %s7092_s7]]   ;;  %s7096_s7 = smov 22  }
  0x19   :  { %s7234_s24 = sld [smem:[%s8177_s0 + %s7093_s15]]   ;;  %s7097_s15 = smov 23  }
  0x1a   :  { %s7239_s29 = sld [smem:[%s8177_s0 + %s7094_s22]]   ;;  %s7098_s22 = smov 24  }
  0x1b   :  { %s7244_s25 = sld [smem:[%s8177_s0 + %s7095_s28]]   ;;  %s7099_s28 = smov 25  }
  0x1c   :  { %s7249_s21 = sld [smem:[%s8177_s0 + %s7096_s7]]   ;;  %s7100_s7 = smov 26  }
  0x1d   :  { %8189 = sst [smem:[#allocation49_spill]] %s7224_s4 }
  0x1e   :  { %s7259_s4 = sld [smem:[%s8177_s0 + %s7098_s22]]   ;;  %s7102_s22 = smov 28  }
  0x1f   :  { %8190 = sst [smem:[#allocation50_spill]] %s7234_s24 }
  0x20   :  { %s7254_s24 = sld [smem:[%s8177_s0 + %s7097_s15]]   ;;  %s7101_s15 = smov 27  }
  0x21   :  { %8191 = sst [smem:[#allocation51_spill]] %s7244_s25 }
  0x22   :  { %8192 = sst [smem:[#allocation52_spill]] %s7249_s21 }
  0x23   :  { %s7264_s25 = sld [smem:[%s8177_s0 + %s7099_s28]]   ;;  %s7103_s28 = smov 29  }
  0x24   :  { %8194 = sst [smem:[#allocation54_spill]] %s7259_s4 }
  0x25   :  { %s7269_s21 = sld [smem:[%s8177_s0 + %s7100_s7]]   ;;  %s7104_s7 = smov 30  }
  0x26   :  { %8193 = sst [smem:[#allocation53_spill]] %s7254_s24 }
  0x27   :  { %s7274_s24 = sld [smem:[%s8177_s0 + %s7101_s15]]   ;;  %s7105_s15 = smov 31  }
  0x28   :  { %s7279_s4 = sld [smem:[%s8177_s0 + %s7102_s22]]  }
  0x29   :  { %8195 = sst [smem:[#allocation55_spill]] %s7264_s25 }
  0x2a   :  { %s7284_s25 = sld [smem:[%s8177_s0 + %s7103_s28]]  }
  0x2b   :  { %8196 = sst [smem:[#allocation56_spill]] %s7269_s21 }
  0x2c   :  { %s7289_s21 = sld [smem:[%s8177_s0 + %s7104_s7]]  }
  0x2d   :  { %8197 = sst [smem:[#allocation57_spill]] %s7274_s24 }
  0x2e   :  { %s7294_s24 = sld [smem:[%s8177_s0 + %s7105_s15]]  }
  0x2f   :  { %68 = vsyncpa [#allocation4], 0 }
  0x30   :  { %69 = vsyncpa [#allocation7], 0 }
  0x31   :  { %70 = vsyncpa [#allocation10], 0 }
  0x32   :  { %71 = vsyncpa [#allocation13], 0 }
  0x33   :  { %72 = vsyncpa [#allocation16], 0 }
  0x34   :  { %73 = vsyncpa [#allocation19], 0 }
  0x35   :  { %74 = vsyncpa [#allocation22], 0 }
  0x36   :  { %75 = vsyncpa [#allocation25], 0 }
  0x37   :  { %76 = vsyncpa [#allocation28], 0 }
  0x38   :  { %77 = vsyncpa [#allocation31], 0 }
  0x39   :  { %78 = vsyncpa [#allocation5], 0  ;;  %s7106_s22 = smov [#allocation6]   ;;  %s7107_s26 = smov [#allocation9]  }
  0x3a   :  { %s95_s23 = sshll.u32 %s7106_s22, 4  ;;  %s115_s28 = sshll.u32 %s7107_s26, 4  ;;  %s96_s23 = int_to_ptr.vmem [resolvable:$true] %s95_s23  ;;  %s116_s28 = int_to_ptr.vmem [resolvable:$true] %s115_s28 }
  0x3b   :  { %s6681_s1 = scalar_lea.vmem %s96_s23, 128  ;;  %p6686_p1 = scmp.lt.s32.totalorder %s96_s23, %s96_s23 }
  0x3c   :  { %p6682_p0 = scmp.ne.s32.totalorder %s96_s23, %s6681_s1  ;;  %p6687_p2 = scmp.lt.s32.totalorder %s6681_s1, %s6681_s1 }
  0x3e   :  { %p6688_p3 = por %p6687_p2, %p6686_p1 }
  0x40   :  { %p6689_p4 = pnand %p6688_p3, %p6682_p0 }
  0x42   :  { %6692 = shalt.err (!%p6689_p4)
}
  0x43   :  { %98 = dma.hbm_to_vmem [thread:$0]  %s7144_s9, 128, %s96_s23, [#allocation7]  }
  0x44   :  { %s6701_s0 = scalar_lea.vmem %s116_s28, 128  ;;  %p6706_p6 = scmp.lt.s32.totalorder %s116_s28, %s116_s28 }
  0x45   :  { %p6702_p5 = scmp.ne.s32.totalorder %s116_s28, %s6701_s0  ;;  %p6707_p7 = scmp.lt.s32.totalorder %s6701_s0, %s6701_s0 }
  0x47   :  { %p6708_p8 = por %p6707_p7, %p6706_p6 }
  0x49   :  { %p6709_p9 = pnand %p6708_p8, %p6702_p5 }
  0x4b   :  { %6712 = shalt.err (!%p6709_p9)
}
  0x4c   :  { %118 = dma.hbm_to_vmem [thread:$0]  %s7154_s17, 128, %s116_s28, [#allocation10]  }
  0x4d   :  { %s7108_s2 = smov [#allocation12]   ;;  %s7109_s10 = smov [#allocation15]  }
  0x4e   :  { %s141_s7 = sshll.u32 %s7108_s2, 4  ;;  %s161_s11 = sshll.u32 %s7109_s10, 4  ;;  %s142_s7 = int_to_ptr.vmem [resolvable:$true] %s141_s7  ;;  %s162_s11 = int_to_ptr.vmem [resolvable:$true] %s161_s11 }
  0x4f   :  { %s6721_s15 = scalar_lea.vmem %s142_s7, 16  ;;  %s6725_s16 = scalar_lea.vmem %s142_s7, 32 }
  0x50   :  { %p6722_p10 = scmp.ne.s32.totalorder %s142_s7, %s6721_s15  ;;  %p6726_p11 = scmp.lt.s32.totalorder %s142_s7, %s142_s7 }
  0x51   :  { %p6727_p12 = scmp.lt.s32.totalorder %s6725_s16, %s6721_s15 }
  0x53   :  { %p6728_p13 = por %p6727_p12, %p6726_p11 }
  0x55   :  { %p6729_p0 = pnand %p6728_p13, %p6722_p10 }
  0x57   :  { %6732 = shalt.err (!%p6729_p0)
}
  0x58   :  { %144 = dma.hbm_to_vmem [thread:$0]  %s7179_s8, 16, %s142_s7, [#allocation13]  }
  0x59   :  { %s6741_s9 = scalar_lea.vmem %s162_s11, 16  ;;  %s6745_s18 = scalar_lea.vmem %s162_s11, 32 }
  0x5a   :  { %p6742_p1 = scmp.ne.s32.totalorder %s162_s11, %s6741_s9  ;;  %p6746_p2 = scmp.lt.s32.totalorder %s162_s11, %s162_s11 }
  0x5b   :  { %p6747_p3 = scmp.lt.s32.totalorder %s6745_s18, %s6741_s9 }
  0x5d   :  { %p6748_p4 = por %p6747_p3, %p6746_p2 }
  0x5f   :  { %p6749_p5 = pnand %p6748_p4, %p6742_p1 }
  0x61   :  { %6752 = shalt.err (!%p6749_p5)
}
  0x62   :  { %164 = dma.hbm_to_vmem [thread:$0]  %s7189_s19, 16, %s162_s11, [#allocation16]  }
  0x63   :  { %s7110_s17 = smov [#allocation18]   ;;  %s7111_s23 = smov [#allocation21]  }
  0x64   :  { %s186_s22 = sshll.u32 %s7110_s17, 4  ;;  %s210_s26 = sshll.u32 %s7111_s23, 4  ;;  %s187_s22 = int_to_ptr.vmem [resolvable:$true] %s186_s22  ;;  %s211_s26 = int_to_ptr.vmem [resolvable:$true] %s210_s26 }
  0x65   :  { %s6761_s28 = scalar_lea.vmem %s187_s22, 512  ;;  %p6766_p7 = scmp.lt.s32.totalorder %s187_s22, %s187_s22 }
  0x66   :  { %p6762_p6 = scmp.ne.s32.totalorder %s187_s22, %s6761_s28  ;;  %p6767_p8 = scmp.lt.s32.totalorder %s6761_s28, %s6761_s28 }
  0x68   :  { %p6768_p9 = por %p6767_p8, %p6766_p7 }
  0x6a   :  { %p6769_p10 = pnand %p6768_p9, %p6762_p6 }
  0x6c   :  { %6772 = shalt.err (!%p6769_p10)
}
  0x6d   :  { %s7112_s8 = smov 128   ;;  %s7113_s1 = smov 8  }
  0x6e   :  { %192 = dma.hbm_to_vmem [thread:$0]  %s7209_s12, 512, %s187_s22, [#allocation19], %s7112_s8, %s7112_s8, %s7113_s1  }
  0x6f   :  { %s6781_s19 = scalar_lea.vmem %s211_s26, 512  ;;  %p6786_p12 = scmp.lt.s32.totalorder %s211_s26, %s211_s26 }
  0x70   :  { %p6782_p11 = scmp.ne.s32.totalorder %s211_s26, %s6781_s19  ;;  %p6787_p13 = scmp.lt.s32.totalorder %s6781_s19, %s6781_s19 }
  0x72   :  { %p6788_p0 = por %p6787_p13, %p6786_p12 }
  0x74   :  { %p6789_p1 = pnand %p6788_p0, %p6782_p11 }
  0x76   :  { %6792 = shalt.err (!%p6789_p1)
}
  0x77   :  { %216 = dma.hbm_to_vmem [thread:$0]  %s7219_s27, 512, %s211_s26, [#allocation22], %s7112_s8, %s7112_s8, %s7113_s1  }
  0x78   :  { %s7114_s0 = smov [#allocation24]   ;;  %s7115_s7 = smov [#allocation27]  }
  0x79   :  { %s233_s2 = sshll.u32 %s7114_s0, 4  ;;  %s253_s10 = sshll.u32 %s7115_s7, 4  ;;  %s234_s2 = int_to_ptr.vmem [resolvable:$true] %s233_s2  ;;  %s254_s10 = int_to_ptr.vmem [resolvable:$true] %s253_s10 }
  0x7a   :  { %s6801_s11 = scalar_lea.vmem %s234_s2, 16  ;;  %s6805_s12 = scalar_lea.vmem %s234_s2, 32 }
  0x7b   :  { %p6802_p2 = scmp.ne.s32.totalorder %s234_s2, %s6801_s11  ;;  %p6806_p3 = scmp.lt.s32.totalorder %s234_s2, %s234_s2 }
  0x7c   :  { %p6807_p4 = scmp.lt.s32.totalorder %s6805_s12, %s6801_s11 }
  0x7e   :  { %p6808_p5 = por %p6807_p4, %p6806_p3 }
  0x80   :  { %p6809_p6 = pnand %p6808_p5, %p6802_p2 }
  0x82   :  { %6812 = shalt.err (!%p6809_p6)
}
  0x83   :  { %236 = dma.hbm_to_vmem [thread:$0]  %s7229_s30, 16, %s234_s2, [#allocation25]  }
  0x84   :  { %s6821_s15 = scalar_lea.vmem %s254_s10, 16  ;;  %s6825_s16 = scalar_lea.vmem %s254_s10, 32 }
  0x85   :  { %p6822_p7 = scmp.ne.s32.totalorder %s254_s10, %s6821_s15  ;;  %p6826_p8 = scmp.lt.s32.totalorder %s254_s10, %s254_s10 }
  0x86   :  { %p6827_p9 = scmp.lt.s32.totalorder %s6825_s16, %s6821_s15 }
  0x88   :  { %p6828_p10 = por %p6827_p9, %p6826_p8 }
  0x8a   :  { %p6829_p11 = pnand %p6828_p10, %p6822_p7 }
  0x8c   :  { %6832 = shalt.err (!%p6829_p11)
}
  0x8d   :  { %256 = dma.hbm_to_vmem [thread:$0]  %s7239_s29, 16, %s254_s10, [#allocation28]  }
  0x8e   :  { %s7116_s27 = smov [#allocation3]   ;;  %s7117_s18 = smov [#allocation8]  }
  0x8f   :  { %s85_s9 = sshll.u32 %s7116_s27, 4  ;;  %s105_s17 = sshll.u32 %s7117_s18, 4  ;;  %s86_s9 = int_to_ptr.vmem [resolvable:$true] %s85_s9  ;;  %s106_s17 = int_to_ptr.vmem [resolvable:$true] %s105_s17 }
  0x90   :  { %s6841_s22 = scalar_lea.vmem %s86_s9, 128  ;;  %p6846_p13 = scmp.lt.s32.totalorder %s86_s9, %s86_s9 }
  0x91   :  { %p6842_p12 = scmp.ne.s32.totalorder %s86_s9, %s6841_s22  ;;  %p6847_p0 = scmp.lt.s32.totalorder %s6841_s22, %s6841_s22 }
  0x93   :  { %p6848_p1 = por %p6847_p0, %p6846_p13 }
  0x95   :  { %p6849_p2 = pnand %p6848_p1, %p6842_p12 }
  0x97   :  { %6852 = shalt.err (!%p6849_p2)
}
  0x98   :  { %88 = dma.hbm_to_vmem [thread:$0]  %s7139_s5, 128, %s86_s9, [#allocation4]  }
  0x99   :  { %s6861_s30 = scalar_lea.vmem %s106_s17, 128  ;;  %p6866_p4 = scmp.lt.s32.totalorder %s106_s17, %s106_s17 }
  0x9a   :  { %p6862_p3 = scmp.ne.s32.totalorder %s106_s17, %s6861_s30  ;;  %p6867_p5 = scmp.lt.s32.totalorder %s6861_s30, %s6861_s30 }
  0x9c   :  { %p6868_p6 = por %p6867_p5, %p6866_p4 }
  0x9e   :  { %p6869_p7 = pnand %p6868_p6, %p6862_p3 }
  0xa0   :  { %6872 = shalt.err (!%p6869_p7)
}
  0xa1   :  { %108 = dma.hbm_to_vmem [thread:$0]  %s7149_s13, 128, %s106_s17, [#allocation7]  }
  0xa2   :  { %s7118_s29 = smov [#allocation11]   ;;  %s7119_s26 = smov [#allocation14]  }
  0xa3   :  { %s131_s23 = sshll.u32 %s7118_s29, 4  ;;  %s151_s28 = sshll.u32 %s7119_s26, 4  ;;  %s132_s23 = int_to_ptr.vmem [resolvable:$true] %s131_s23  ;;  %s152_s28 = int_to_ptr.vmem [resolvable:$true] %s151_s28 }
  0xa4   :  { %s6881_s19 = scalar_lea.vmem %s132_s23, 16  ;;  %s6885_s0 = scalar_lea.vmem %s132_s23, 32 }
  0xa5   :  { %p6882_p8 = scmp.ne.s32.totalorder %s132_s23, %s6881_s19  ;;  %p6886_p9 = scmp.lt.s32.totalorder %s132_s23, %s132_s23 }
  0xa6   :  { %p6887_p10 = scmp.lt.s32.totalorder %s6885_s0, %s6881_s19 }
  0xa8   :  { %p6888_p11 = por %p6887_p10, %p6886_p9 }
  0xaa   :  { %p6889_p12 = pnand %p6888_p11, %p6882_p8 }
  0xac   :  { %6892 = shalt.err (!%p6889_p12)
}
  0xad   :  { %134 = dma.hbm_to_vmem [thread:$0]  %s7174_s3, 16, %s132_s23, [#allocation10]  }
  0xae   :  { %s6901_s5 = scalar_lea.vmem %s152_s28, 16  ;;  %s6905_s2 = scalar_lea.vmem %s152_s28, 32 }
  0xaf   :  { %p6902_p13 = scmp.ne.s32.totalorder %s152_s28, %s6901_s5  ;;  %p6906_p0 = scmp.lt.s32.totalorder %s152_s28, %s152_s28 }
  0xb0   :  { %p6907_p1 = scmp.lt.s32.totalorder %s6905_s2, %s6901_s5 }
  0xb2   :  { %p6908_p2 = por %p6907_p1, %p6906_p0 }
  0xb4   :  { %p6909_p3 = pnand %p6908_p2, %p6902_p13 }
  0xb6   :  { %6912 = shalt.err (!%p6909_p3)
}
  0xb7   :  { %154 = dma.hbm_to_vmem [thread:$0]  %s7184_s14, 16, %s152_s28, [#allocation13]  }
  0xb8   :  { %s7120_s13 = smov [#allocation17]   ;;  %s7121_s10 = smov [#allocation20]  }
  0xb9   :  { %s174_s7 = sshll.u32 %s7120_s13, 4  ;;  %s198_s11 = sshll.u32 %s7121_s10, 4  ;;  %s175_s7 = int_to_ptr.vmem [resolvable:$true] %s174_s7  ;;  %s199_s11 = int_to_ptr.vmem [resolvable:$true] %s198_s11 }
  0xba   :  { %s6921_s12 = scalar_lea.vmem %s175_s7, 512  ;;  %p6926_p5 = scmp.lt.s32.totalorder %s175_s7, %s175_s7 }
  0xbb   :  { %p6922_p4 = scmp.ne.s32.totalorder %s175_s7, %s6921_s12  ;;  %p6927_p6 = scmp.lt.s32.totalorder %s6921_s12, %s6921_s12 }
  0xbd   :  { %p6928_p7 = por %p6927_p6, %p6926_p5 }
  0xbf   :  { %p6929_p8 = pnand %p6928_p7, %p6922_p4 }
  0xc1   :  { %6932 = shalt.err (!%p6929_p8)
}
  0xc2   :  { %180 = dma.hbm_to_vmem [thread:$0]  %s7204_s6, 512, %s175_s7, [#allocation16], %s7112_s8, %s7112_s8, %s7113_s1  }
  0xc3   :  { %s6941_s3 = scalar_lea.vmem %s199_s11, 512  ;;  %p6946_p10 = scmp.lt.s32.totalorder %s199_s11, %s199_s11 }
  0xc4   :  { %p6942_p9 = scmp.ne.s32.totalorder %s199_s11, %s6941_s3  ;;  %p6947_p11 = scmp.lt.s32.totalorder %s6941_s3, %s6941_s3 }
  0xc6   :  { %p6948_p12 = por %p6947_p11, %p6946_p10 }
  0xc8   :  { %p6949_p13 = pnand %p6948_p12, %p6942_p9 }
  0xca   :  { %6952 = shalt.err (!%p6949_p13)
}
  0xcb   :  { %204 = dma.hbm_to_vmem [thread:$0]  %s7214_s20, 512, %s199_s11, [#allocation19], %s7112_s8, %s7112_s8, %s7113_s1  }
  0xcc   :  { %s7122_s14 = smov [#allocation23]   ;;  %s7123_s16 = smov [#allocation26]  }
  0xcd   :  { %s223_s15 = sshll.u32 %s7122_s14, 4  ;;  %s243_s27 = sshll.u32 %s7123_s16, 4  ;;  %s224_s15 = int_to_ptr.vmem [resolvable:$true] %s223_s15  ;;  %s244_s27 = int_to_ptr.vmem [resolvable:$true] %s243_s27 }
  0xce   :  { %s6961_s9 = scalar_lea.vmem %s224_s15, 16  ;;  %s6965_s6 = scalar_lea.vmem %s224_s15, 32 }
  0xcf   :  { %p6962_p0 = scmp.ne.s32.totalorder %s224_s15, %s6961_s9  ;;  %p6966_p1 = scmp.lt.s32.totalorder %s224_s15, %s224_s15 }
  0xd0   :  { %p6967_p2 = scmp.lt.s32.totalorder %s6965_s6, %s6961_s9 }
  0xd2   :  { %p6968_p3 = por %p6967_p2, %p6966_p1 }
  0xd4   :  { %p6969_p4 = pnand %p6968_p3, %p6962_p0 }
  0xd6   :  { %6972 = shalt.err (!%p6969_p4)
}
  0xd7   :  { %s8198_s18 = sld [smem:[#allocation49_spill]]  ;;  %s6981_s17 = scalar_lea.vmem %s244_s27, 16 }
  0xd8   :  { %p6982_p5 = scmp.ne.s32.totalorder %s244_s27, %s6981_s17  ;;  %s6985_s22 = scalar_lea.vmem %s244_s27, 32 }
  0xd9   :  { %p6986_p6 = scmp.lt.s32.totalorder %s244_s27, %s244_s27  ;;  %p6987_p7 = scmp.lt.s32.totalorder %s6985_s22, %s6981_s17 }
  0xdb   :  { %p6988_p8 = por %p6987_p7, %p6986_p6 }
  0xdd   :  { %226 = dma.hbm_to_vmem [thread:$0]  %s8198_s18, 16, %s224_s15, [#allocation22]  }
  0xde   :  { %p6989_p9 = pnand %p6988_p8, %p6982_p5 }
  0xe0   :  { %6992 = shalt.err (!%p6989_p9)
}
  0xe1   :  { %s8199_s20 = sld [smem:[#allocation50_spill]]  ;;  %s7124_s8 = smov [#allocation29]  }
  0xe2   :  { %s269_s1 = sshll.u32 %s7124_s8, 4  ;;  %s7125_s30 = smov [#allocation30]   ;;  %s270_s1 = int_to_ptr.vmem [resolvable:$true] %s269_s1 }
  0xe3   :  { %s278_s29 = sshll.u32 %s7125_s30, 4  ;;  %s7001_s23 = scalar_lea.vmem %s270_s1, 64  ;;  %s279_s29 = int_to_ptr.vmem [resolvable:$true] %s278_s29 }
  0xe4   :  { %p7002_p10 = scmp.ne.s32.totalorder %s270_s1, %s7001_s23  ;;  %p7006_p11 = scmp.lt.s32.totalorder %s270_s1, %s270_s1 }
  0xe5   :  { %p7007_p12 = scmp.lt.s32.totalorder %s7001_s23, %s7001_s23 }
  0xe7   :  { %246 = dma.hbm_to_vmem [thread:$0]  %s8199_s20, 16, %s244_s27, [#allocation25]  }
  0xe8   :  { %p7008_p13 = por %p7007_p12, %p7006_p11 }
  0xea   :  { %p7009_p0 = pnand %p7008_p13, %p7002_p10 }
  0xec   :  { %7012 = shalt.err (!%p7009_p0)
}
  0xed   :  { %s8200_s26 = sld [smem:[#allocation54_spill]]  ;;  %s7021_s28 = scalar_lea.vmem %s279_s29, 16384 }
  0xee   :  { %p7022_p1 = scmp.ne.s32.totalorder %s279_s29, %s7021_s28  ;;  %p7026_p2 = scmp.lt.s32.totalorder %s279_s29, %s279_s29 }
  0xef   :  { %p7027_p3 = scmp.lt.s32.totalorder %s7021_s28, %s7021_s28 }
  0xf1   :  { %p7028_p4 = por %p7027_p3, %p7026_p2 }
  0xf3   :  { %272 = dma.hbm_to_vmem [thread:$0]  %s8200_s26, 64, %s270_s1, [#allocation28]  }
  0xf4   :  { %p7029_p5 = pnand %p7028_p4, %p7022_p1 }
  0xf6   :  { %7032 = shalt.err (!%p7029_p5)
}
  0xf7   :  { %s7126_s19 = smov 256   ;;  %s8201_s0 = sld [smem:[#allocation55_spill]] }
  0xf8   :  { %s7127_s5 = smov 16  }
  0xfd   :  { %284 = dma.hbm_to_vmem [thread:$0]  %s8201_s0, 16384, %s279_s29, [#allocation31], %s7126_s19, %s7126_s19, %s7127_s5  }
  0xfe   :  { %7053 = dma.done.wait [#allocation4], 128  }
  0xff   :  { %7054 = vsyncadd [#allocation4], 4294967168 }
 0x100   :  { %7055 = dma.done.wait [#allocation7], 256  }
 0x101   :  { %7056 = vsyncadd [#allocation7], 4294967040 }
 0x102   :  { %7057 = dma.done.wait [#allocation10], 144  }
 0x103   :  { %7058 = vsyncadd [#allocation10], 4294967152 }
 0x104   :  { %7059 = dma.done.wait [#allocation13], 32  }
 0x105   :  { %7060 = vsyncadd [#allocation13], 4294967264 }
 0x106   :  { %7061 = dma.done.wait [#allocation16], 528  }
 0x107   :  { %7062 = vsyncadd [#allocation16], 4294966768 }
 0x108   :  { %7063 = dma.done.wait [#allocation19], 1024  }
 0x109   :  { %7064 = vsyncadd [#allocation19], 4294966272 }
 0x10a   :  { %7065 = dma.done.wait [#allocation22], 528  }
 0x10b   :  { %7066 = vsyncadd [#allocation22], 4294966768 }
 0x10c   :  { %7067 = dma.done.wait [#allocation25], 32  }
 0x10d   :  { %7068 = vsyncadd [#allocation25], 4294967264 }
 0x10e   :  { %7069 = dma.done.wait [#allocation28], 80  }
 0x10f   :  { %7070 = vsyncadd [#allocation28], 4294967216 }
 0x110   :  { %7071 = dma.done.wait [#allocation31], 16384  }
 0x111   :  { %7072 = vsyncadd [#allocation31], 4294950912  ;;  %v7128_v0 = vmov 0.0   ;;  %s8202_s2 = sld [smem:[#allocation44_spill]]  ;;  %vm7129_vm0 = vmmov 0   ;;  %vm358_vm1 = vcmask 64512  }
 0x112   :  { %5881 = vmatprep.subr.mxu1 %v7128_v0  ;;  %5883 = vmatprep.mubr.msk.f32.mxu1 %vm7129_vm0, %v7128_v0  ;;  %v350_v1 = vld [vmem:[#allocation6] sm:$0xff]  ;;  %v349_v2 = vld [vmem:[#allocation3] sm:$0xff]  ;;  %v432_v3 = vld [vmem:[#allocation8] sm:$0xff]  ;;  %s8203_s13 = sld [smem:[#allocation45_spill]]  ;;  %vm601_vm2 = vcmask 261120   ;;  %vm836_vm3 = vcmask 253952  }
 0x113   :  { %5891 = vmatprep.subr.mxu0 %v7128_v0  ;;  %5893 = vmatprep.mubr.msk.f32.mxu0 %vm7129_vm0, %v7128_v0  ;;  %v510_v5 = vld [vmem:[#allocation9] sm:$0xff]  ;;  %s8204_s7 = sld [smem:[#allocation46_spill]]  ;;  %v5497_v22 = vld [vmem:[#allocation11] ss:$0 sm:$0xff]  ;;  %v5499_v29 = vld [vmem:[#allocation12] ss:$0 sm:$0xff] }
 0x114   :  { %5882 = vmatpush3.msra.mxu1 %v350_v1  ;;  %5892 = vmatpush3.msra.mxu0 %v510_v5  ;;  %v7435_v40 = vld [vmem:[#allocation15] sm:$0x1]  ;;  %v5501_v41 = vld [vmem:[#allocation14] ss:$0 sm:$0xff]  ;;  %vm1083_vm4 = vcmask 254977   ;;  %vm1331_vm5 = vcmask 256002  }
 0x115   :  { %5884 = vmatmul.mubr.msk.f32.vlgmr.msra.gmra.mxu1 %vm358_vm1, %v349_v2  ;;  %5886 = vmatprep.subr.mxu1 %v7128_v0  ;;  %vm1579_vm6 = vcmask 257027   ;;  %vm1827_vm7 = vcmask 258052   ;;  %vm2075_vm8 = vcmask 259077   ;;  %vm2323_vm9 = vcmask 260102   ;;  %s8205_s10 = sld [smem:[#allocation47_spill]] }
 0x116   :  { %5887 = vmatpush3.msra.mxu1 %v432_v3  ;;  %5888 = vmatprep.mubr.msk.f32.mxu1 %vm7129_vm0, %v7128_v0  ;;  %s8206_s11 = sld [smem:[#allocation48_spill]]  ;;  %vm2571_vm10 = vcmask 261127   ;;  %vm5440_vm11 = vcmask 57344  }
 0x117   :  { %5896 = vmatprep.subr.mxu1 %v7128_v0  ;;  %v7338_v4 = vld [vmem:[%s8202_s2 + $0x18] sm:$0xff]  ;;  %v7342_v6 = vld [vmem:[%s8202_s2 + $0x10] sm:$0xff]  ;;  %v7349_v7 = vld [vmem:[%s8202_s2 + $0x8] sm:$0xff]  ;;  %5894 = vmatmul.mubr.msk.f32.vlgmr.msra.gmra.mxu0 %vm358_vm1, %v349_v2  ;;  %s8207_s12 = sld [smem:[#allocation51_spill]] }
 0x118   :  { %5929 = vmatprep.subr.mxu0 %v7128_v0  ;;  %v7356_v8 = vld [vmem:[%s8202_s2] sm:$0xff]  ;;  %v7363_v9 = vld [vmem:[%s8203_s13 + $0x18] sm:$0xff]  ;;  %v7371_v10 = vld [vmem:[%s8203_s13 + $0x10] sm:$0xff]  ;;  %5937 = vmatprep.mubr.msk.f32.mxu0 %vm7129_vm0, %v7128_v0  ;;  %s8208_s3 = sld [smem:[#allocation52_spill]] }
 0x119   :  { %5889 = vmatmul.mubr.msk.f32.vlgmr.msra.gmra.mxu1 %vm358_vm1, %v349_v2  ;;  %5930 = vmatpush3.msra.mxu0 %v7338_v4  ;;  %v7378_v11 = vld [vmem:[%s8203_s13 + $0x8] sm:$0xff]  ;;  %v7385_v12 = vld [vmem:[%s8203_s13] sm:$0xff]  ;;  %v7393_v13 = vld [vmem:[%s8204_s7 + $0x18] sm:$0xff]  ;;  %s8209_s14 = sld [smem:[#allocation53_spill]] }
 0x11a   :  { %5897 = vmatpush3.msra.mxu1 %v7338_v4  ;;  %5904 = vmatprep.mubr.msk.f32.mxu1 %vm7129_vm0, %v7128_v0  ;;  %v7400_v14 = vld [vmem:[%s8204_s7 + $0x10] sm:$0xff]  ;;  %v7407_v15 = vld [vmem:[%s8204_s7 + $0x8] sm:$0xff]  ;;  %v7412_v16 = vld [vmem:[%s8204_s7] sm:$0xff]  ;;  %s8210_s15 = sld [smem:[#allocation56_spill]] }
 0x11b   :  { %5898 = vmatprep.subr.mxu1 %v7128_v0  ;;  %5931 = vmatprep.subr.mxu0 %v7128_v0  ;;  %s8211_s16 = sld [smem:[#allocation57_spill]] }
 0x11c   :  { %5899 = vmatpush3.msra.mxu1 %v7342_v6  ;;  %5932 = vmatpush3.msra.mxu0 %v7342_v6 }
 0x11d   :  { %5900 = vmatprep.subr.mxu1 %v7128_v0  ;;  %5933 = vmatprep.subr.mxu0 %v7128_v0 }
 0x11e   :  { %5901 = vmatpush3.msra.mxu1 %v7349_v7  ;;  %5934 = vmatpush3.msra.mxu0 %v7349_v7 }
 0x11f   :  { %5902 = vmatprep.subr.mxu1 %v7128_v0  ;;  %5935 = vmatprep.subr.mxu0 %v7128_v0 }
 0x120   :  { %5903 = vmatpush3.msra.mxu1 %v7356_v8  ;;  %5936 = vmatpush3.msra.mxu0 %v7356_v8 }
 0x121   :  { %5905 = vmatmul.mubr.f32.vlgmr.msra.gmra.mxu1 %v7128_v0  ;;  %5907 = vmatprep.subr.mxu1 %v7128_v0 }
 0x122   :  { %5908 = vmatpush3.msra.mxu1 %v7363_v9  ;;  %5915 = vmatprep.mubr.msk.f32.mxu1 %vm7129_vm0, %v7128_v0 }
 0x123   :  { %5909 = vmatprep.subr.mxu1 %v7128_v0  ;;  %5951 = vmatprep.subr.mxu0 %v7128_v0 }
 0x124   :  { %5910 = vmatpush3.msra.mxu1 %v7371_v10 }
 0x125   :  { %5911 = vmatprep.subr.mxu1 %v7128_v0 }
 0x126   :  { %5912 = vmatpush3.msra.mxu1 %v7378_v11 }
 0x127   :  { %5913 = vmatprep.subr.mxu1 %v7128_v0 }
 0x128   :  { %5914 = vmatpush3.msra.mxu1 %v7385_v12 }
 0x129   :  { %5916 = vmatmul.mubr.f32.vlgmr.msra.gmra.mxu1 %v7128_v0  ;;  %5918 = vmatprep.subr.mxu1 %v7128_v0 }
 0x12a   :  { %5919 = vmatpush3.msra.mxu1 %v7393_v13  ;;  %5926 = vmatprep.mubr.msk.f32.mxu1 %vm7129_vm0, %v7128_v0 }
 0x12b   :  { %5920 = vmatprep.subr.mxu1 %v7128_v0 }
 0x12c   :  { %5921 = vmatpush3.msra.mxu1 %v7400_v14 }
 0x12d   :  { %5922 = vmatprep.subr.mxu1 %v7128_v0 }
 0x12e   :  { %5923 = vmatpush3.msra.mxu1 %v7407_v15 }
 0x12f   :  { %5924 = vmatprep.subr.mxu1 %v7128_v0 }
 0x130   :  { %5925 = vmatpush3.msra.mxu1 %v7412_v16 }
 0x131   :  { %5927 = vmatmul.mubr.f32.vlgmr.msra.gmra.mxu1 %v7128_v0  ;;  %5940 = vmatprep.subr.mxu1 %v7128_v0 }
 0x132   :  { %5941 = vmatpush3.msra.mxu1 %v7363_v9  ;;  %5948 = vmatprep.mubr.msk.f32.mxu1 %vm7129_vm0, %v7128_v0 }
 0x133   :  { %5942 = vmatprep.subr.mxu1 %v7128_v0 }
 0x134   :  { %5943 = vmatpush3.msra.mxu1 %v7371_v10 }
 0x135   :  { %5944 = vmatprep.subr.mxu1 %v7128_v0 }
 0x136   :  { %5945 = vmatpush3.msra.mxu1 %v7378_v11 }
 0x137   :  { %5946 = vmatprep.subr.mxu1 %v7128_v0 }
 0x138   :  { %5947 = vmatpush3.msra.mxu1 %v7385_v12 }
 0x139   :  { %5962 = vmatprep.subr.mxu1 %v7128_v0 }
 0x1d5   :  { %v428_v17 = vpop.f32.mrf.mxu1 }
 0x1d6   :  { %v7429_v24 = vadd.f32 %v5497_v22, %v428_v17 }
 0x1d7   :  { %v5885_v18 = vpop.f32.mrf.mxu1  ;;  %v584_v21 = vpop.f32.mrf.mxu0 }
 0x1d8   :  { %v7438_v44 = vadd.f32 %v5501_v41, %v584_v21 }
 0x1d9   :  { %v506_v19 = vpop.f32.mrf.mxu1  ;;  %v5895_v23 = vpop.f32.mrf.mxu0 }
 0x1da   :  { %v7432_v30 = vadd.f32 %v5499_v29, %v506_v19 }
 0x1db   :  { %v5890_v20 = vpop.f32.mrf.mxu1 }
 0x1e1   :  { %v671_v25 = vpop.f32.mrf.mxu1 }
 0x1e2   :  { %v675_v26 = vadd.f32 %v671_v25, %v7429_v24 }
 0x1e3   :  { %v5906_v27 = vpop.f32.mrf.mxu1 }
 0x1e4   :  { %v5503_v28 = vmul.f32 -1.442695, %v675_v26 }
 0x1e6   :  { %6513 = vpow2.f32 %v5503_v28 }
 0x1e9   :  { %v748_v31 = vpop.f32.mrf.mxu1 }
 0x1ea   :  { %v752_v32 = vadd.f32 %v748_v31, %v7432_v30 }
 0x1eb   :  { %v5917_v33 = vpop.f32.mrf.mxu1 }
 0x1ec   :  { %v5504_v34 = vmul.f32 -1.442695, %v752_v32 }
 0x1ee   :  { %6515 = vpow2.f32 %v5504_v34 }
 0x1f1   :  { %v825_v35 = vpop.f32.mrf.mxu1 }
 0x1f2   :  { %v826_v43 = vadd.f32 %v825_v35, %v7435_v40 }
 0x1f3   :  { %v6514_v36 = vpop.eup %6513  ;;  %v5928_v37 = vpop.f32.mrf.mxu1 }
 0x1f4   :  { %v679_v38 = vadd.f32 1.0, %v6514_v36 }
 0x1f6   :  { %6517 = vrcp.f32 %v679_v38 }
 0x1fb   :  { %v6516_v39 = vpop.eup %6515 }
 0x1fc   :  { %v756_v42 = vadd.f32 1.0, %v6516_v39 }
 0x1fe   :  { %6519 = vrcp.f32 %v756_v42 }
 0x203   :  { %v6518_v45 = vpop.eup %6517 }
 0x204   :  { %v829_v46 = vmul.f32 %v6518_v45, %v826_v43 }
 0x206   :  { %v830_v47 = vadd.f32 %v829_v46, %v7438_v44 }
 0x208   :  { %6521 = vtanh.f32 %v830_v47 }
 0x20b   :  { %v6520_v48 = vpop.eup %6519 }
 0x20c   :  { %v832_v49 = vsub.f32 1.0, %v6520_v48  ;;  %v834_v52 = vmul.f32 0.0, %v6520_v48 }
 0x215   :  { %v6522_v50 = vpop.eup %6521 }
 0x216   :  { %v833_v51 = vmul.f32 %v6522_v50, %v832_v49 }
 0x218   :  { %v7441_v53 = vadd.f32 %v834_v52, %v833_v51 }
 0x21a   :  { %837 = vst.msk [vmem:[#allocation2] sm:$0x1] %vm836_vm3, %v7441_v53  ;;  %5938 = vmatmul.mubr.msk.f32.vlgmr.msra.gmra.mxu0 %vm601_vm2, %v7441_v53  ;;  %5949 = vmatmul.mubr.msk.f32.vlgmr.msra.gmra.mxu1 %vm601_vm2, %v7441_v53  ;;  %v1079_v27 = vrot.slane %v7441_v53, 7 }
 0x21b   :  { %5952 = vmatpush3.msra.mxu0 %v7393_v13  ;;  %5959 = vmatprep.mubr.msk.f32.mxu0 %vm7129_vm0, %v7128_v0 }
 0x21c   :  { %5953 = vmatprep.subr.mxu0 %v7128_v0  ;;  %5963 = vmatpush3.msra.mxu1 %v7338_v4 }
 0x21d   :  { %5954 = vmatpush3.msra.mxu0 %v7400_v14  ;;  %5964 = vmatprep.subr.mxu1 %v7128_v0 }
 0x21e   :  { %5955 = vmatprep.subr.mxu0 %v7128_v0  ;;  %5965 = vmatpush3.msra.mxu1 %v7342_v6 }
 0x21f   :  { %5956 = vmatpush3.msra.mxu0 %v7407_v15  ;;  %5966 = vmatprep.subr.mxu1 %v7128_v0 }
 0x220   :  { %5957 = vmatprep.subr.mxu0 %v7128_v0  ;;  %5967 = vmatpush3.msra.mxu1 %v7349_v7 }
 0x221   :  { %5958 = vmatpush3.msra.mxu0 %v7412_v16  ;;  %5968 = vmatprep.subr.mxu1 %v7128_v0 }
 0x222   :  { %5960 = vmatmul.mubr.msk.f32.vlgmr.msra.gmra.mxu0 %vm601_vm2, %v7441_v53  ;;  %5973 = vmatprep.subr.mxu0 %v7128_v0 }
 0x223   :  { %5974 = vmatpush3.msra.mxu0 %v7363_v9  ;;  %5969 = vmatpush3.msra.mxu1 %v7356_v8 }
 0x224   :  { %5975 = vmatprep.subr.mxu0 %v7128_v0  ;;  %5970 = vmatprep.mubr.msk.f32.mxu1 %vm7129_vm0, %v7128_v0 }
 0x225   :  { %5976 = vmatpush3.msra.mxu0 %v7371_v10  ;;  %5981 = vmatprep.mubr.msk.f32.mxu0 %vm7129_vm0, %v7128_v0 }
 0x226   :  { %5977 = vmatprep.subr.mxu0 %v7128_v0  ;;  %5984 = vmatprep.subr.mxu1 %v7128_v0 }
 0x227   :  { %5978 = vmatpush3.msra.mxu0 %v7378_v11 }
 0x228   :  { %5979 = vmatprep.subr.mxu0 %v7128_v0 }
 0x229   :  { %5980 = vmatpush3.msra.mxu0 %v7385_v12 }
 0x22a   :  { %5995 = vmatprep.subr.mxu0 %v7128_v0 }
 0x2da   :  { %v907_v54 = vpop.f32.mrf.mxu0  ;;  %v987_v55 = vpop.f32.mrf.mxu1 }
 0x2db   :  { %v912_v56 = vrot.slane %v907_v54, 7  ;;  %v992_v61 = vrot.slane %v987_v55, 7 }
 0x2dc   :  { %v5939_v57 = vpop.f32.mrf.mxu0  ;;  %v5950_v58 = vpop.f32.mrf.mxu1 }
 0x2dd   :  { %v914_v59 = vadd.f32 %v912_v56, %v7429_v24  ;;  %v994_v63 = vadd.f32 %v992_v61, %v7432_v30 }
 0x2df   :  { %v5506_v60 = vmul.f32 -1.442695, %v914_v59  ;;  %v5508_v2 = vmul.f32 -1.442695, %v994_v63 }
 0x2e1   :  { %6523 = vpow2.f32 %v5506_v60 }
 0x2e2   :  { %v1067_v62 = vpop.f32.mrf.mxu0  ;;  %6525 = vpow2.f32 %v5508_v2 }
 0x2e3   :  { %v1068_v18 = vadd.f32 %v1067_v62, %v7435_v40 }
 0x2e4   :  { %v5961_v1 = vpop.f32.mrf.mxu0 }
 0x2e5   :  { %v1072_v20 = vrot.slane %v1068_v18, 7 }
 0x2ee   :  { %v6524_v3 = vpop.eup %6523 }
 0x2ef   :  { %v918_v5 = vadd.f32 1.0, %v6524_v3  ;;  %v6526_v17 = vpop.eup %6525 }
 0x2f0   :  { %v998_v19 = vadd.f32 1.0, %v6526_v17 }
 0x2f1   :  { %6527 = vrcp.f32 %v918_v5 }
 0x2f2   :  { %6529 = vrcp.f32 %v998_v19 }
 0x2fe   :  { %v6528_v21 = vpop.eup %6527 }
 0x2ff   :  { %v1074_v22 = vmul.f32 %v6528_v21, %v1072_v20  ;;  %v6530_v25 = vpop.eup %6529 }
 0x300   :  { %v1077_v26 = vsub.f32 1.0, %v6530_v25  ;;  %v1081_v31 = vmul.f32 %v6530_v25, %v1079_v27 }
 0x301   :  { %v1075_v23 = vadd.f32 %v1074_v22, %v7438_v44 }
 0x303   :  { %6531 = vtanh.f32 %v1075_v23 }
 0x310   :  { %v6532_v28 = vpop.eup %6531 }
 0x311   :  { %v1078_v29 = vmul.f32 %v6532_v28, %v1077_v26 }
 0x313   :  { %v7485_v32 = vadd.f32 %v1081_v31, %v1078_v29 }
 0x315   :  { %1084 = vst.msk [vmem:[#allocation2] sm:$0x2] %vm1083_vm4, %v7485_v32  ;;  %v1086_v33 = vrot.slane %v7485_v32, 1  ;;  %v1327_v59 = vrot.slane %v7485_v32, 7 }
 0x317   :  { %5971 = vmatmul.mubr.msk.f32.vlgmr.msra.gmra.mxu1 %vm601_vm2, %v1086_v33  ;;  %5982 = vmatmul.mubr.msk.f32.vlgmr.msra.gmra.mxu0 %vm601_vm2, %v1086_v33 }
 0x318   :  { %5985 = vmatpush3.msra.mxu1 %v7393_v13  ;;  %5992 = vmatprep.mubr.msk.f32.mxu1 %vm7129_vm0, %v7128_v0 }
 0x319   :  { %5986 = vmatprep.subr.mxu1 %v7128_v0  ;;  %5996 = vmatpush3.msra.mxu0 %v7338_v4 }
 0x31a   :  { %5987 = vmatpush3.msra.mxu1 %v7400_v14  ;;  %5997 = vmatprep.subr.mxu0 %v7128_v0 }
 0x31b   :  { %5988 = vmatprep.subr.mxu1 %v7128_v0  ;;  %5998 = vmatpush3.msra.mxu0 %v7342_v6 }
 0x31c   :  { %5989 = vmatpush3.msra.mxu1 %v7407_v15  ;;  %5999 = vmatprep.subr.mxu0 %v7128_v0 }
 0x31d   :  { %5990 = vmatprep.subr.mxu1 %v7128_v0  ;;  %6000 = vmatpush3.msra.mxu0 %v7349_v7 }
 0x31e   :  { %5991 = vmatpush3.msra.mxu1 %v7412_v16  ;;  %6001 = vmatprep.subr.mxu0 %v7128_v0 }
 0x31f   :  { %5993 = vmatmul.mubr.msk.f32.vlgmr.msra.gmra.mxu1 %vm601_vm2, %v1086_v33  ;;  %6006 = vmatprep.subr.mxu1 %v7128_v0 }
 0x320   :  { %6007 = vmatpush3.msra.mxu1 %v7363_v9  ;;  %6002 = vmatpush3.msra.mxu0 %v7356_v8 }
 0x321   :  { %6008 = vmatprep.subr.mxu1 %v7128_v0  ;;  %6003 = vmatprep.mubr.msk.f32.mxu0 %vm7129_vm0, %v7128_v0 }
 0x322   :  { %6009 = vmatpush3.msra.mxu1 %v7371_v10  ;;  %6014 = vmatprep.mubr.msk.f32.mxu1 %vm7129_vm0, %v7128_v0 }
 0x323   :  { %6010 = vmatprep.subr.mxu1 %v7128_v0  ;;  %6017 = vmatprep.subr.mxu0 %v7128_v0 }
 0x324   :  { %6011 = vmatpush3.msra.mxu1 %v7378_v11 }
 0x325   :  { %6012 = vmatprep.subr.mxu1 %v7128_v0 }
 0x326   :  { %6013 = vmatpush3.msra.mxu1 %v7385_v12 }
 0x327   :  { %6028 = vmatprep.subr.mxu1 %v7128_v0 }
 0x3d7   :  { %v1155_v34 = vpop.f32.mrf.mxu1  ;;  %v1235_v35 = vpop.f32.mrf.mxu0 }
 0x3d8   :  { %v1160_v36 = vrot.slane %v1155_v34, 6  ;;  %v1240_v42 = vrot.slane %v1235_v35, 6 }
 0x3d9   :  { %v5972_v37 = vpop.f32.mrf.mxu1  ;;  %v5983_v38 = vpop.f32.mrf.mxu0 }
 0x3da   :  { %v1162_v39 = vadd.f32 %v1160_v36, %v7429_v24  ;;  %v1242_v45 = vadd.f32 %v1240_v42, %v7432_v30 }
 0x3dc   :  { %v5511_v41 = vmul.f32 -1.442695, %v1162_v39  ;;  %v5513_v47 = vmul.f32 -1.442695, %v1242_v45 }
 0x3de   :  { %6533 = vpow2.f32 %v5511_v41 }
 0x3df   :  { %v1315_v43 = vpop.f32.mrf.mxu1  ;;  %6535 = vpow2.f32 %v5513_v47 }
 0x3e0   :  { %v1316_v51 = vadd.f32 %v1315_v43, %v7435_v40 }
 0x3e1   :  { %v5994_v46 = vpop.f32.mrf.mxu1 }
 0x3e2   :  { %v1320_v53 = vrot.slane %v1316_v51, 6 }
 0x3eb   :  { %v6534_v48 = vpop.eup %6533 }
 0x3ec   :  { %v1166_v49 = vadd.f32 1.0, %v6534_v48  ;;  %v6536_v50 = vpop.eup %6535 }
 0x3ed   :  { %v1246_v52 = vadd.f32 1.0, %v6536_v50 }
 0x3ee   :  { %6537 = vrcp.f32 %v1166_v49 }
 0x3ef   :  { %6539 = vrcp.f32 %v1246_v52 }
 0x3fb   :  { %v6538_v54 = vpop.eup %6537 }
 0x3fc   :  { %v1322_v55 = vmul.f32 %v6538_v54, %v1320_v53  ;;  %v6540_v57 = vpop.eup %6539 }
 0x3fd   :  { %v1325_v58 = vsub.f32 1.0, %v6540_v57  ;;  %v1329_v62 = vmul.f32 %v6540_v57, %v1327_v59 }
 0x3fe   :  { %v1323_v56 = vadd.f32 %v1322_v55, %v7438_v44 }
 0x400   :  { %6541 = vtanh.f32 %v1323_v56 }
 0x40d   :  { %v6542_v60 = vpop.eup %6541 }
 0x40e   :  { %v1326_v61 = vmul.f32 %v6542_v60, %v1325_v58 }
 0x410   :  { %v7527_v63 = vadd.f32 %v1329_v62, %v1326_v61 }
 0x412   :  { %1332 = vst.msk [vmem:[#allocation2] sm:$0x4] %vm1331_vm5, %v7527_v63  ;;  %v1334_v1 = vrot.slane %v7527_v63, 2  ;;  %v1575_v39 = vrot.slane %v7527_v63, 7 }
 0x414   :  { %6004 = vmatmul.mubr.msk.f32.vlgmr.msra.gmra.mxu0 %vm601_vm2, %v1334_v1  ;;  %6015 = vmatmul.mubr.msk.f32.vlgmr.msra.gmra.mxu1 %vm601_vm2, %v1334_v1 }
 0x415   :  { %6018 = vmatpush3.msra.mxu0 %v7393_v13  ;;  %6025 = vmatprep.mubr.msk.f32.mxu0 %vm7129_vm0, %v7128_v0 }
 0x416   :  { %6019 = vmatprep.subr.mxu0 %v7128_v0  ;;  %6029 = vmatpush3.msra.mxu1 %v7338_v4 }
 0x417   :  { %6020 = vmatpush3.msra.mxu0 %v7400_v14  ;;  %6030 = vmatprep.subr.mxu1 %v7128_v0 }
 0x418   :  { %6021 = vmatprep.subr.mxu0 %v7128_v0  ;;  %6031 = vmatpush3.msra.mxu1 %v7342_v6 }
 0x419   :  { %6022 = vmatpush3.msra.mxu0 %v7407_v15  ;;  %6032 = vmatprep.subr.mxu1 %v7128_v0 }
 0x41a   :  { %6023 = vmatprep.subr.mxu0 %v7128_v0  ;;  %6033 = vmatpush3.msra.mxu1 %v7349_v7 }
 0x41b   :  { %6024 = vmatpush3.msra.mxu0 %v7412_v16  ;;  %6034 = vmatprep.subr.mxu1 %v7128_v0 }
 0x41c   :  { %6026 = vmatmul.mubr.msk.f32.vlgmr.msra.gmra.mxu0 %vm601_vm2, %v1334_v1  ;;  %6039 = vmatprep.subr.mxu0 %v7128_v0 }
 0x41d   :  { %6040 = vmatpush3.msra.mxu0 %v7363_v9  ;;  %6035 = vmatpush3.msra.mxu1 %v7356_v8 }
 0x41e   :  { %6041 = vmatprep.subr.mxu0 %v7128_v0  ;;  %6036 = vmatprep.mubr.msk.f32.mxu1 %vm7129_vm0, %v7128_v0 }
 0x41f   :  { %6042 = vmatpush3.msra.mxu0 %v7371_v10  ;;  %6047 = vmatprep.mubr.msk.f32.mxu0 %vm7129_vm0, %v7128_v0 }
 0x420   :  { %6043 = vmatprep.subr.mxu0 %v7128_v0  ;;  %6050 = vmatprep.subr.mxu1 %v7128_v0 }
 0x421   :  { %6044 = vmatpush3.msra.mxu0 %v7378_v11 }
 0x422   :  { %6045 = vmatprep.subr.mxu0 %v7128_v0 }
 0x423   :  { %6046 = vmatpush3.msra.mxu0 %v7385_v12 }
 0x424   :  { %6061 = vmatprep.subr.mxu0 %v7128_v0 }
 0x4d4   :  { %v1403_v2 = vpop.f32.mrf.mxu0  ;;  %v1483_v3 = vpop.f32.mrf.mxu1 }
 0x4d5   :  { %v1408_v5 = vrot.slane %v1403_v2, 5  ;;  %v1488_v21 = vrot.slane %v1483_v3, 5 }
 0x4d6   :  { %v6005_v17 = vpop.f32.mrf.mxu0  ;;  %v6016_v18 = vpop.f32.mrf.mxu1 }
 0x4d7   :  { %v1410_v19 = vadd.f32 %v1408_v5, %v7429_v24  ;;  %v1490_v23 = vadd.f32 %v1488_v21, %v7432_v30 }
 0x4d9   :  { %v5516_v20 = vmul.f32 -1.442695, %v1410_v19  ;;  %v5518_v26 = vmul.f32 -1.442695, %v1490_v23 }
 0x4db   :  { %6543 = vpow2.f32 %v5516_v20 }
 0x4dc   :  { %v1563_v22 = vpop.f32.mrf.mxu0  ;;  %6545 = vpow2.f32 %v5518_v26 }
 0x4dd   :  { %v1564_v31 = vadd.f32 %v1563_v22, %v7435_v40 }
 0x4de   :  { %v6027_v25 = vpop.f32.mrf.mxu0 }
 0x4df   :  { %v1568_v33 = vrot.slane %v1564_v31, 5 }
 0x4e8   :  { %v6544_v27 = vpop.eup %6543 }
 0x4e9   :  { %v1414_v28 = vadd.f32 1.0, %v6544_v27  ;;  %v6546_v29 = vpop.eup %6545 }
 0x4ea   :  { %v1494_v32 = vadd.f32 1.0, %v6546_v29 }
 0x4eb   :  { %6547 = vrcp.f32 %v1414_v28 }
 0x4ec   :  { %6549 = vrcp.f32 %v1494_v32 }
 0x4f8   :  { %v6548_v34 = vpop.eup %6547 }
 0x4f9   :  { %v1570_v35 = vmul.f32 %v6548_v34, %v1568_v33  ;;  %v6550_v37 = vpop.eup %6549 }
 0x4fa   :  { %v1573_v38 = vsub.f32 1.0, %v6550_v37  ;;  %v1577_v43 = vmul.f32 %v6550_v37, %v1575_v39 }
 0x4fb   :  { %v1571_v36 = vadd.f32 %v1570_v35, %v7438_v44 }
 0x4fd   :  { %6551 = vtanh.f32 %v1571_v36 }
 0x50a   :  { %v6552_v41 = vpop.eup %6551 }
 0x50b   :  { %v1574_v42 = vmul.f32 %v6552_v41, %v1573_v38 }
 0x50d   :  { %v7569_v45 = vadd.f32 %v1577_v43, %v1574_v42 }
 0x50f   :  { %1580 = vst.msk [vmem:[#allocation2] sm:$0x8] %vm1579_vm6, %v7569_v45  ;;  %v1582_v46 = vrot.slane %v7569_v45, 3  ;;  %v1823_v19 = vrot.slane %v7569_v45, 7 }
 0x511   :  { %6037 = vmatmul.mubr.msk.f32.vlgmr.msra.gmra.mxu1 %vm601_vm2, %v1582_v46  ;;  %6048 = vmatmul.mubr.msk.f32.vlgmr.msra.gmra.mxu0 %vm601_vm2, %v1582_v46 }
 0x512   :  { %6051 = vmatpush3.msra.mxu1 %v7393_v13  ;;  %6058 = vmatprep.mubr.msk.f32.mxu1 %vm7129_vm0, %v7128_v0 }
 0x513   :  { %6052 = vmatprep.subr.mxu1 %v7128_v0  ;;  %6062 = vmatpush3.msra.mxu0 %v7338_v4 }
 0x514   :  { %6053 = vmatpush3.msra.mxu1 %v7400_v14  ;;  %6063 = vmatprep.subr.mxu0 %v7128_v0 }
 0x515   :  { %6054 = vmatprep.subr.mxu1 %v7128_v0  ;;  %6064 = vmatpush3.msra.mxu0 %v7342_v6 }
 0x516   :  { %6055 = vmatpush3.msra.mxu1 %v7407_v15  ;;  %6065 = vmatprep.subr.mxu0 %v7128_v0 }
 0x517   :  { %6056 = vmatprep.subr.mxu1 %v7128_v0  ;;  %6066 = vmatpush3.msra.mxu0 %v7349_v7 }
 0x518   :  { %6057 = vmatpush3.msra.mxu1 %v7412_v16  ;;  %6067 = vmatprep.subr.mxu0 %v7128_v0 }
 0x519   :  { %6059 = vmatmul.mubr.msk.f32.vlgmr.msra.gmra.mxu1 %vm601_vm2, %v1582_v46  ;;  %6072 = vmatprep.subr.mxu1 %v7128_v0 }
 0x51a   :  { %6073 = vmatpush3.msra.mxu1 %v7363_v9  ;;  %6068 = vmatpush3.msra.mxu0 %v7356_v8 }
 0x51b   :  { %6074 = vmatprep.subr.mxu1 %v7128_v0  ;;  %6069 = vmatprep.mubr.msk.f32.mxu0 %vm7129_vm0, %v7128_v0 }
 0x51c   :  { %6075 = vmatpush3.msra.mxu1 %v7371_v10  ;;  %6080 = vmatprep.mubr.msk.f32.mxu1 %vm7129_vm0, %v7128_v0 }
 0x51d   :  { %6076 = vmatprep.subr.mxu1 %v7128_v0  ;;  %6083 = vmatprep.subr.mxu0 %v7128_v0 }
 0x51e   :  { %6077 = vmatpush3.msra.mxu1 %v7378_v11 }
 0x51f   :  { %6078 = vmatprep.subr.mxu1 %v7128_v0 }
 0x520   :  { %6079 = vmatpush3.msra.mxu1 %v7385_v12 }
 0x521   :  { %6094 = vmatprep.subr.mxu1 %v7128_v0 }
 0x5d1   :  { %v1651_v47 = vpop.f32.mrf.mxu1  ;;  %v1731_v48 = vpop.f32.mrf.mxu0 }
 0x5d2   :  { %v1656_v49 = vrot.slane %v1651_v47, 4  ;;  %v1736_v54 = vrot.slane %v1731_v48, 4 }
 0x5d3   :  { %v6038_v50 = vpop.f32.mrf.mxu1  ;;  %v6049_v51 = vpop.f32.mrf.mxu0 }
 0x5d4   :  { %v1658_v52 = vadd.f32 %v1656_v49, %v7429_v24  ;;  %v1738_v56 = vadd.f32 %v1736_v54, %v7432_v30 }
 0x5d6   :  { %v5521_v53 = vmul.f32 -1.442695, %v1658_v52  ;;  %v5523_v58 = vmul.f32 -1.442695, %v1738_v56 }
 0x5d8   :  { %6553 = vpow2.f32 %v5521_v53 }
 0x5d9   :  { %v1811_v55 = vpop.f32.mrf.mxu1  ;;  %6555 = vpow2.f32 %v5523_v58 }
 0x5da   :  { %v1812_v62 = vadd.f32 %v1811_v55, %v7435_v40 }
 0x5db   :  { %v6060_v57 = vpop.f32.mrf.mxu1 }
 0x5dc   :  { %v1816_v1 = vrot.slane %v1812_v62, 4 }
 0x5e5   :  { %v6554_v59 = vpop.eup %6553 }
 0x5e6   :  { %v1662_v60 = vadd.f32 1.0, %v6554_v59  ;;  %v6556_v61 = vpop.eup %6555 }
 0x5e7   :  { %v1742_v63 = vadd.f32 1.0, %v6556_v61 }
 0x5e8   :  { %6557 = vrcp.f32 %v1662_v60 }
 0x5e9   :  { %6559 = vrcp.f32 %v1742_v63 }
 0x5f5   :  { %v6558_v2 = vpop.eup %6557 }
 0x5f6   :  { %v1818_v3 = vmul.f32 %v6558_v2, %v1816_v1  ;;  %v6560_v17 = vpop.eup %6559 }
 0x5f7   :  { %v1821_v18 = vsub.f32 1.0, %v6560_v17  ;;  %v1825_v22 = vmul.f32 %v6560_v17, %v1823_v19 }
 0x5f8   :  { %v1819_v5 = vadd.f32 %v1818_v3, %v7438_v44 }
 0x5fa   :  { %6561 = vtanh.f32 %v1819_v5 }
 0x607   :  { %v6562_v20 = vpop.eup %6561 }
 0x608   :  { %v1822_v21 = vmul.f32 %v6562_v20, %v1821_v18 }
 0x60a   :  { %v7611_v23 = vadd.f32 %v1825_v22, %v1822_v21 }
 0x60c   :  { %1828 = vst.msk [vmem:[#allocation2] sm:$0x10] %vm1827_vm7, %v7611_v23  ;;  %v1830_v25 = vrot.slane %v7611_v23, 4  ;;  %v2071_v52 = vrot.slane %v7611_v23, 7 }
 0x60e   :  { %6070 = vmatmul.mubr.msk.f32.vlgmr.msra.gmra.mxu0 %vm601_vm2, %v1830_v25  ;;  %6081 = vmatmul.mubr.msk.f32.vlgmr.msra.gmra.mxu1 %vm601_vm2, %v1830_v25 }
 0x60f   :  { %6084 = vmatpush3.msra.mxu0 %v7393_v13  ;;  %6091 = vmatprep.mubr.msk.f32.mxu0 %vm7129_vm0, %v7128_v0 }
 0x610   :  { %6085 = vmatprep.subr.mxu0 %v7128_v0  ;;  %6095 = vmatpush3.msra.mxu1 %v7338_v4 }
 0x611   :  { %6086 = vmatpush3.msra.mxu0 %v7400_v14  ;;  %6096 = vmatprep.subr.mxu1 %v7128_v0 }
 0x612   :  { %6087 = vmatprep.subr.mxu0 %v7128_v0  ;;  %6097 = vmatpush3.msra.mxu1 %v7342_v6 }
 0x613   :  { %6088 = vmatpush3.msra.mxu0 %v7407_v15  ;;  %6098 = vmatprep.subr.mxu1 %v7128_v0 }
 0x614   :  { %6089 = vmatprep.subr.mxu0 %v7128_v0  ;;  %6099 = vmatpush3.msra.mxu1 %v7349_v7 }
 0x615   :  { %6090 = vmatpush3.msra.mxu0 %v7412_v16  ;;  %6100 = vmatprep.subr.mxu1 %v7128_v0 }
 0x616   :  { %6092 = vmatmul.mubr.msk.f32.vlgmr.msra.gmra.mxu0 %vm601_vm2, %v1830_v25  ;;  %6105 = vmatprep.subr.mxu0 %v7128_v0 }
 0x617   :  { %6106 = vmatpush3.msra.mxu0 %v7363_v9  ;;  %6101 = vmatpush3.msra.mxu1 %v7356_v8 }
 0x618   :  { %6107 = vmatprep.subr.mxu0 %v7128_v0  ;;  %6102 = vmatprep.mubr.msk.f32.mxu1 %vm7129_vm0, %v7128_v0 }
 0x619   :  { %6108 = vmatpush3.msra.mxu0 %v7371_v10  ;;  %6113 = vmatprep.mubr.msk.f32.mxu0 %vm7129_vm0, %v7128_v0 }
 0x61a   :  { %6109 = vmatprep.subr.mxu0 %v7128_v0  ;;  %6116 = vmatprep.subr.mxu1 %v7128_v0 }
 0x61b   :  { %6110 = vmatpush3.msra.mxu0 %v7378_v11 }
 0x61c   :  { %6111 = vmatprep.subr.mxu0 %v7128_v0 }
 0x61d   :  { %6112 = vmatpush3.msra.mxu0 %v7385_v12 }
 0x61e   :  { %6127 = vmatprep.subr.mxu0 %v7128_v0 }
 0x6ce   :  { %v1899_v26 = vpop.f32.mrf.mxu0  ;;  %v1979_v27 = vpop.f32.mrf.mxu1 }
 0x6cf   :  { %v1904_v28 = vrot.slane %v1899_v26, 3  ;;  %v1984_v34 = vrot.slane %v1979_v27, 3 }
 0x6d0   :  { %v6071_v29 = vpop.f32.mrf.mxu0  ;;  %v6082_v31 = vpop.f32.mrf.mxu1 }
 0x6d1   :  { %v1906_v32 = vadd.f32 %v1904_v28, %v7429_v24  ;;  %v1986_v36 = vadd.f32 %v1984_v34, %v7432_v30  ;;  %v2576_v29 = vld [vmem:[%s8205_s10 + $0x10] sm:$0xff] }
 0x6d2   :  { %v2660_v31 = vld [vmem:[%s8206_s11 + $0x10] sm:$0xff] }
 0x6d3   :  { %v5526_v33 = vmul.f32 -1.442695, %v1906_v32  ;;  %v5528_v38 = vmul.f32 -1.442695, %v1986_v36  ;;  %v2574_v32 = vld [vmem:[%s8205_s10] sm:$0xff] }
 0x6d5   :  { %6563 = vpow2.f32 %v5526_v33  ;;  %v2658_v33 = vld [vmem:[%s8206_s11] sm:$0xff] }
 0x6d6   :  { %v2059_v35 = vpop.f32.mrf.mxu0  ;;  %6565 = vpow2.f32 %v5528_v38 }
 0x6d7   :  { %v2060_v43 = vadd.f32 %v2059_v35, %v7435_v40 }
 0x6d8   :  { %v6093_v37 = vpop.f32.mrf.mxu0 }
 0x6d9   :  { %v2064_v46 = vrot.slane %v2060_v43, 3 }
 0x6e2   :  { %v6564_v39 = vpop.eup %6563 }
 0x6e3   :  { %v1910_v41 = vadd.f32 1.0, %v6564_v39  ;;  %v6566_v42 = vpop.eup %6565 }
 0x6e4   :  { %v1990_v45 = vadd.f32 1.0, %v6566_v42 }
 0x6e5   :  { %6567 = vrcp.f32 %v1910_v41 }
 0x6e6   :  { %6569 = vrcp.f32 %v1990_v45 }
 0x6f2   :  { %v6568_v47 = vpop.eup %6567 }
 0x6f3   :  { %v2066_v48 = vmul.f32 %v6568_v47, %v2064_v46  ;;  %v6570_v50 = vpop.eup %6569 }
 0x6f4   :  { %v2069_v51 = vsub.f32 1.0, %v6570_v50  ;;  %v2073_v55 = vmul.f32 %v6570_v50, %v2071_v52 }
 0x6f5   :  { %v2067_v49 = vadd.f32 %v2066_v48, %v7438_v44 }
 0x6f7   :  { %6571 = vtanh.f32 %v2067_v49 }
 0x704   :  { %v6572_v53 = vpop.eup %6571 }
 0x705   :  { %v2070_v54 = vmul.f32 %v6572_v53, %v2069_v51 }
 0x707   :  { %v7653_v56 = vadd.f32 %v2073_v55, %v2070_v54 }
 0x709   :  { %2076 = vst.msk [vmem:[#allocation2] sm:$0x20] %vm2075_vm8, %v7653_v56  ;;  %v2078_v57 = vrot.slane %v7653_v56, 5  ;;  %v2319_v22 = vrot.slane %v7653_v56, 7 }
 0x70b   :  { %6103 = vmatmul.mubr.msk.f32.vlgmr.msra.gmra.mxu1 %vm601_vm2, %v2078_v57  ;;  %6114 = vmatmul.mubr.msk.f32.vlgmr.msra.gmra.mxu0 %vm601_vm2, %v2078_v57 }
 0x70c   :  { %6117 = vmatpush3.msra.mxu1 %v7393_v13  ;;  %6124 = vmatprep.mubr.msk.f32.mxu1 %vm7129_vm0, %v7128_v0 }
 0x70d   :  { %6118 = vmatprep.subr.mxu1 %v7128_v0  ;;  %6128 = vmatpush3.msra.mxu0 %v7338_v4 }
 0x70e   :  { %6119 = vmatpush3.msra.mxu1 %v7400_v14  ;;  %6129 = vmatprep.subr.mxu0 %v7128_v0 }
 0x70f   :  { %6120 = vmatprep.subr.mxu1 %v7128_v0  ;;  %6130 = vmatpush3.msra.mxu0 %v7342_v6 }
 0x710   :  { %6121 = vmatpush3.msra.mxu1 %v7407_v15  ;;  %6131 = vmatprep.subr.mxu0 %v7128_v0 }
 0x711   :  { %6122 = vmatprep.subr.mxu1 %v7128_v0  ;;  %6132 = vmatpush3.msra.mxu0 %v7349_v7 }
 0x712   :  { %6123 = vmatpush3.msra.mxu1 %v7412_v16  ;;  %6133 = vmatprep.subr.mxu0 %v7128_v0 }
 0x713   :  { %6125 = vmatmul.mubr.msk.f32.vlgmr.msra.gmra.mxu1 %vm601_vm2, %v2078_v57  ;;  %6138 = vmatprep.subr.mxu1 %v7128_v0 }
 0x714   :  { %6139 = vmatpush3.msra.mxu1 %v7363_v9  ;;  %6134 = vmatpush3.msra.mxu0 %v7356_v8 }
 0x715   :  { %6140 = vmatprep.subr.mxu1 %v7128_v0  ;;  %6135 = vmatprep.mubr.msk.f32.mxu0 %vm7129_vm0, %v7128_v0 }
 0x716   :  { %6141 = vmatpush3.msra.mxu1 %v7371_v10  ;;  %6146 = vmatprep.mubr.msk.f32.mxu1 %vm7129_vm0, %v7128_v0 }
 0x717   :  { %6142 = vmatprep.subr.mxu1 %v7128_v0  ;;  %6149 = vmatprep.subr.mxu0 %v7128_v0 }
 0x718   :  { %6143 = vmatpush3.msra.mxu1 %v7378_v11 }
 0x719   :  { %6144 = vmatprep.subr.mxu1 %v7128_v0 }
 0x71a   :  { %6145 = vmatpush3.msra.mxu1 %v7385_v12 }
 0x71b   :  { %6160 = vmatprep.subr.mxu1 %v7128_v0 }
 0x7cb   :  { %v2147_v4 = vpop.f32.mrf.mxu1  ;;  %v2227_v6 = vpop.f32.mrf.mxu0 }
 0x7cc   :  { %v2152_v7 = vrot.slane %v2147_v4, 2  ;;  %v2232_v59 = vrot.slane %v2227_v6, 2 }
 0x7cd   :  { %v6104_v8 = vpop.f32.mrf.mxu1  ;;  %v6115_v9 = vpop.f32.mrf.mxu0 }
 0x7ce   :  { %v2154_v10 = vadd.f32 %v2152_v7, %v7429_v24  ;;  %v2234_v61 = vadd.f32 %v2232_v59, %v7432_v30  ;;  %v2742_v9 = vld [vmem:[#allocation17 + $0x18] sm:$0xff]  ;;  %v2740_v59 = vld [vmem:[#allocation17 + $0x8] sm:$0xff] }
 0x7d0   :  { %v5531_v58 = vmul.f32 -1.442695, %v2154_v10  ;;  %v5533_v62 = vmul.f32 -1.442695, %v2234_v61  ;;  %v2739_v61 = vld [vmem:[#allocation17] sm:$0xff] }
 0x7d2   :  { %6573 = vpow2.f32 %v5531_v58  ;;  %v7741_v58 = vld [vmem:[#allocation18 + $0x10] sm:$0xff] }
 0x7d3   :  { %v2307_v60 = vpop.f32.mrf.mxu1  ;;  %6575 = vpow2.f32 %v5533_v62  ;;  %v7761_v62 = vld [vmem:[#allocation20 + $0x18] sm:$0xff] }
 0x7d4   :  { %v2308_v2 = vadd.f32 %v2307_v60, %v7435_v40  ;;  %v7746_v60 = vld [vmem:[#allocation18 + $0x8] sm:$0xff] }
 0x7d5   :  { %v6126_v11 = vpop.f32.mrf.mxu1 }
 0x7d6   :  { %v2312_v5 = vrot.slane %v2308_v2, 2  ;;  %v7752_v11 = vld [vmem:[#allocation18] sm:$0xff]  ;;  %v7777_v2 = vld [vmem:[#allocation20 + $0x8] sm:$0xff] }
 0x7df   :  { %v6574_v63 = vpop.eup %6573 }
 0x7e0   :  { %v2158_v12 = vadd.f32 1.0, %v6574_v63  ;;  %v6576_v1 = vpop.eup %6575  ;;  %v7765_v63 = vld [vmem:[#allocation21 + $0x18] sm:$0xff] }
 0x7e1   :  { %v2238_v3 = vadd.f32 1.0, %v6576_v1  ;;  %v7774_v1 = vld [vmem:[#allocation21 + $0x10] sm:$0xff] }
 0x7e2   :  { %6577 = vrcp.f32 %v2158_v12  ;;  %v7768_v12 = vld [vmem:[#allocation20 + $0x10] sm:$0xff] }
 0x7e3   :  { %6579 = vrcp.f32 %v2238_v3  ;;  %v7782_v3 = vld [vmem:[#allocation21 + $0x8] sm:$0xff] }
 0x7ef   :  { %v6578_v17 = vpop.eup %6577 }
 0x7f0   :  { %v2314_v18 = vmul.f32 %v6578_v17, %v2312_v5  ;;  %v6580_v20 = vpop.eup %6579  ;;  %v7785_v5 = vld [vmem:[#allocation20] sm:$0xff] }
 0x7f1   :  { %v2317_v21 = vsub.f32 1.0, %v6580_v20  ;;  %v2321_v26 = vmul.f32 %v6580_v20, %v2319_v22  ;;  %v7790_v17 = vld [vmem:[#allocation21] sm:$0xff] }
 0x7f2   :  { %v2315_v19 = vadd.f32 %v2314_v18, %v7438_v44  ;;  %v5540_v22 = vld [vmem:[#allocation23] ss:$0 sm:$0xff] }
 0x7f4   :  { %6581 = vtanh.f32 %v2315_v19 }
 0x801   :  { %v6582_v23 = vpop.eup %6581 }
 0x802   :  { %v2318_v25 = vmul.f32 %v6582_v23, %v2317_v21 }
 0x804   :  { %v7695_v27 = vadd.f32 %v2321_v26, %v2318_v25 }
 0x806   :  { %2324 = vst.msk [vmem:[#allocation2] sm:$0x40] %vm2323_vm9, %v7695_v27  ;;  %v2326_v28 = vrot.slane %v7695_v27, 6 }
 0x808   :  { %6136 = vmatmul.mubr.msk.f32.vlgmr.msra.gmra.mxu0 %vm601_vm2, %v2326_v28  ;;  %6147 = vmatmul.mubr.msk.f32.vlgmr.msra.gmra.mxu1 %vm601_vm2, %v2326_v28 }
 0x809   :  { %6150 = vmatpush3.msra.mxu0 %v7393_v13  ;;  %6157 = vmatprep.mubr.msk.f32.mxu0 %vm7129_vm0, %v7128_v0  ;;  %v2577_v13 = vld [vmem:[%s8205_s10 + $0x18] sm:$0xff] }
 0x80a   :  { %6151 = vmatprep.subr.mxu0 %v7128_v0  ;;  %6168 = vmatprep.mubr.msk.f32.mxu1 %vm7129_vm0, %v7128_v0 }
 0x80b   :  { %6152 = vmatpush3.msra.mxu0 %v7400_v14  ;;  %v2661_v14 = vld [vmem:[%s8206_s11 + $0x18] sm:$0xff]  ;;  %6161 = vmatpush3.msra.mxu1 %v2577_v13 }
 0x80c   :  { %6153 = vmatprep.subr.mxu0 %v7128_v0  ;;  %6162 = vmatprep.subr.mxu1 %v7128_v0 }
 0x80d   :  { %6154 = vmatpush3.msra.mxu0 %v7407_v15  ;;  %v2575_v15 = vld [vmem:[%s8205_s10 + $0x8] sm:$0xff]  ;;  %6163 = vmatpush3.msra.mxu1 %v2576_v29  ;;  %v5542_v29 = vld [vmem:[#allocation24] ss:$0 sm:$0xff] }
 0x80e   :  { %6155 = vmatprep.subr.mxu0 %v7128_v0  ;;  %6164 = vmatprep.subr.mxu1 %v7128_v0 }
 0x80f   :  { %6156 = vmatpush3.msra.mxu0 %v7412_v16  ;;  %v2659_v16 = vld [vmem:[%s8206_s11 + $0x8] sm:$0xff]  ;;  %6165 = vmatpush3.msra.mxu1 %v2575_v15 }
 0x810   :  { %6158 = vmatmul.mubr.msk.f32.vlgmr.msra.gmra.mxu0 %vm601_vm2, %v2326_v28  ;;  %6171 = vmatprep.subr.mxu0 %v7128_v0 }
 0x811   :  { %6179 = vmatprep.mubr.msk.f32.mxu0 %vm7129_vm0, %v7128_v0  ;;  %6172 = vmatpush3.msra.mxu0 %v2661_v14 }
 0x812   :  { %6173 = vmatprep.subr.mxu0 %v7128_v0  ;;  %6166 = vmatprep.subr.mxu1 %v7128_v0 }
 0x813   :  { %6174 = vmatpush3.msra.mxu0 %v2660_v31  ;;  %6167 = vmatpush3.msra.mxu1 %v2574_v32 }
 0x814   :  { %6175 = vmatprep.subr.mxu0 %v7128_v0  ;;  %6182 = vmatprep.subr.mxu1 %v7128_v0 }
 0x815   :  { %6176 = vmatpush3.msra.mxu0 %v2659_v16 }
 0x816   :  { %6177 = vmatprep.subr.mxu0 %v7128_v0 }
 0x817   :  { %6178 = vmatpush3.msra.mxu0 %v2658_v33 }
 0x818   :  { %6193 = vmatprep.subr.mxu0 %v7128_v0 }
 0x8c8   :  { %v2395_v34 = vpop.f32.mrf.mxu0  ;;  %v2475_v35 = vpop.f32.mrf.mxu1 }
 0x8c9   :  { %v2400_v36 = vrot.slane %v2395_v34, 1  ;;  %v2480_v42 = vrot.slane %v2475_v35, 1 }
 0x8ca   :  { %v6137_v37 = vpop.f32.mrf.mxu0  ;;  %v6148_v38 = vpop.f32.mrf.mxu1 }
 0x8cb   :  { %v2402_v39 = vadd.f32 %v2400_v36, %v7429_v24  ;;  %v2482_v45 = vadd.f32 %v2480_v42, %v7432_v30  ;;  %v2567_v30 = vrot.slane %v7695_v27, 7 }
 0x8cd   :  { %v5536_v41 = vmul.f32 -1.442695, %v2402_v39  ;;  %v5538_v47 = vmul.f32 -1.442695, %v2482_v45  ;;  %v7829_v39 = vld [vmem:[#allocation27] sm:$0x1] }
 0x8cf   :  { %6583 = vpow2.f32 %v5536_v41 }
 0x8d0   :  { %v2555_v43 = vpop.f32.mrf.mxu0  ;;  %6585 = vpow2.f32 %v5538_v47 }
 0x8d1   :  { %v2556_v51 = vadd.f32 %v2555_v43, %v7435_v40  ;;  %v7737_v40 = vld [vmem:[#allocation18 + $0x18] sm:$0xff]  ;;  %v5544_v43 = vld [vmem:[#allocation26] ss:$0 sm:$0xff] }
 0x8d2   :  { %v6159_v46 = vpop.f32.mrf.mxu0 }
 0x8d3   :  { %v2560_v53 = vrot.slane %v2556_v51, 1 }
 0x8dc   :  { %v6584_v48 = vpop.eup %6583 }
 0x8dd   :  { %v2406_v49 = vadd.f32 1.0, %v6584_v48  ;;  %v6586_v50 = vpop.eup %6585 }
 0x8de   :  { %v2486_v52 = vadd.f32 1.0, %v6586_v50 }
 0x8df   :  { %6587 = vrcp.f32 %v2406_v49 }
 0x8e0   :  { %6589 = vrcp.f32 %v2486_v52 }
 0x8ec   :  { %v6588_v54 = vpop.eup %6587 }
 0x8ed   :  { %v2562_v24 = vmul.f32 %v6588_v54, %v2560_v53  ;;  %v6590_v56 = vpop.eup %6589 }
 0x8ee   :  { %v2565_v57 = vsub.f32 1.0, %v6590_v56  ;;  %v2569_v6 = vmul.f32 %v6590_v56, %v2567_v30 }
 0x8ef   :  { %v2563_v55 = vadd.f32 %v2562_v24, %v7438_v44  ;;  %v2741_v44 = vld [vmem:[#allocation17 + $0x10] sm:$0xff] }
 0x8f1   :  { %6591 = vtanh.f32 %v2563_v55 }
 0x8fe   :  { %v6592_v4 = vpop.eup %6591 }
 0x8ff   :  { %v2566_v7 = vmul.f32 %v6592_v4, %v2565_v57 }
 0x901   :  { %v2570_v8 = vadd.f32 %v2569_v6, %v2566_v7 }
 0x903   :  { %2572 = vst.msk [vmem:[#allocation2] sm:$0x80] %vm2571_vm10, %v2570_v8 }
 0x90a   :  { %v2573_v10 = vld [vmem:[#allocation2] sm:$0xff] }
 0x90b   :  { %6169 = vmatmul.mubr.msk.f32.vlgmr.msra.gmra.mxu1 %vm601_vm2, %v2573_v10  ;;  %6180 = vmatmul.mubr.msk.f32.vlgmr.msra.gmra.mxu0 %vm601_vm2, %v2573_v10 }
 0x90c   :  { %6183 = vmatpush3.msra.mxu1 %v2742_v9  ;;  %6194 = vmatpush3.msra.mxu0 %v7737_v40 }
 0x90d   :  { %6184 = vmatprep.subr.mxu1 %v7128_v0  ;;  %6195 = vmatprep.subr.mxu0 %v7128_v0 }
 0x90e   :  { %6185 = vmatpush3.msra.mxu1 %v2741_v44  ;;  %6196 = vmatpush3.msra.mxu0 %v7741_v58 }
 0x90f   :  { %6186 = vmatprep.subr.mxu1 %v7128_v0  ;;  %6197 = vmatprep.subr.mxu0 %v7128_v0 }
 0x910   :  { %6187 = vmatpush3.msra.mxu1 %v2740_v59  ;;  %6198 = vmatpush3.msra.mxu0 %v7746_v60 }
 0x911   :  { %6188 = vmatprep.subr.mxu1 %v7128_v0  ;;  %6199 = vmatprep.subr.mxu0 %v7128_v0 }
 0x912   :  { %6189 = vmatpush3.msra.mxu1 %v2739_v61  ;;  %6190 = vmatprep.mubr.msk.f32.mxu1 %vm7129_vm0, %v7128_v0 }
 0x913   :  { %6200 = vmatpush3.msra.mxu0 %v7752_v11  ;;  %6201 = vmatprep.mubr.msk.f32.mxu0 %vm7129_vm0, %v7128_v0 }
 0x914   :  { %6191 = vmatmul.mubr.msk.f32.vlgmr.msra.gmra.mxu1 %vm601_vm2, %v2573_v10  ;;  %6202 = vmatmul.mubr.f32.vlgmr.msra.gmra.mxu0 %v7128_v0 }
 0x915   :  { %6204 = vmatprep.subr.mxu1 %v7128_v0  ;;  %6212 = vmatprep.mubr.msk.f32.mxu1 %vm7129_vm0, %v7128_v0 }
 0x916   :  { %6205 = vmatpush3.msra.mxu1 %v7761_v62  ;;  %6215 = vmatprep.subr.mxu0 %v7128_v0 }
 0x917   :  { %6206 = vmatprep.subr.mxu1 %v7128_v0  ;;  %6216 = vmatpush3.msra.mxu0 %v7765_v63 }
 0x918   :  { %6207 = vmatpush3.msra.mxu1 %v7768_v12  ;;  %6217 = vmatprep.subr.mxu0 %v7128_v0 }
 0x919   :  { %6208 = vmatprep.subr.mxu1 %v7128_v0  ;;  %6218 = vmatpush3.msra.mxu0 %v7774_v1 }
 0x91a   :  { %6209 = vmatpush3.msra.mxu1 %v7777_v2  ;;  %6219 = vmatprep.subr.mxu0 %v7128_v0 }
 0x91b   :  { %6210 = vmatprep.subr.mxu1 %v7128_v0  ;;  %6220 = vmatpush3.msra.mxu0 %v7782_v3 }
 0x91c   :  { %6211 = vmatpush3.msra.mxu1 %v7785_v5  ;;  %6221 = vmatprep.subr.mxu0 %v7128_v0 }
 0x91d   :  { %6213 = vmatmul.mubr.f32.vlgmr.msra.gmra.mxu1 %v7128_v0  ;;  %6222 = vmatpush3.msra.mxu0 %v7790_v17 }
 0x91e   :  { %6223 = vmatprep.mubr.msk.f32.mxu0 %vm7129_vm0, %v7128_v0  ;;  %6226 = vmatprep.subr.mxu1 %v7128_v0 }
 0x91f   :  { %6224 = vmatmul.mubr.f32.vlgmr.msra.gmra.mxu0 %v7128_v0  ;;  %6227 = vmatpush3.msra.mxu1 %v7737_v40 }
 0x920   :  { %6237 = vmatprep.subr.mxu0 %v7128_v0  ;;  %6228 = vmatprep.subr.mxu1 %v7128_v0 }
 0x921   :  { %6238 = vmatpush3.msra.mxu0 %v7761_v62  ;;  %6229 = vmatpush3.msra.mxu1 %v7741_v58 }
 0x922   :  { %6239 = vmatprep.subr.mxu0 %v7128_v0  ;;  %6230 = vmatprep.subr.mxu1 %v7128_v0 }
 0x923   :  { %6240 = vmatpush3.msra.mxu0 %v7768_v12  ;;  %6231 = vmatpush3.msra.mxu1 %v7746_v60 }
 0x924   :  { %6241 = vmatprep.subr.mxu0 %v7128_v0  ;;  %6232 = vmatprep.subr.mxu1 %v7128_v0 }
 0x925   :  { %6242 = vmatpush3.msra.mxu0 %v7777_v2  ;;  %6233 = vmatpush3.msra.mxu1 %v7752_v11 }
 0x926   :  { %6243 = vmatprep.subr.mxu0 %v7128_v0  ;;  %6234 = vmatprep.mubr.msk.f32.mxu1 %vm7129_vm0, %v7128_v0 }
 0x927   :  { %6244 = vmatpush3.msra.mxu0 %v7785_v5  ;;  %6245 = vmatprep.mubr.msk.f32.mxu0 %vm7129_vm0, %v7128_v0 }
 0x928   :  { %6248 = vmatprep.subr.mxu1 %v7128_v0  ;;  %6259 = vmatprep.subr.mxu0 %v7128_v0 }
 0x9cb   :  { %v2654_v18 = vpop.f32.mrf.mxu1  ;;  %v2735_v19 = vpop.f32.mrf.mxu0 }
 0x9cc   :  { %v7823_v23 = vadd.f32 %v5540_v22, %v2654_v18  ;;  %v7826_v31 = vadd.f32 %v5542_v29, %v2735_v19 }
 0x9cd   :  { %v6170_v20 = vpop.f32.mrf.mxu1  ;;  %v6181_v21 = vpop.f32.mrf.mxu0 }
 0x9d4   :  { %v2816_v25 = vpop.f32.mrf.mxu1  ;;  %v2899_v26 = vpop.f32.mrf.mxu0 }
 0x9d5   :  { %v2903_v27 = vadd.f32 %v2899_v26, %v7823_v23  ;;  %v7832_v46 = vadd.f32 %v5544_v43, %v2816_v25 }
 0x9d6   :  { %v6192_v28 = vpop.f32.mrf.mxu1  ;;  %v6203_v13 = vpop.f32.mrf.mxu0 }
 0x9d7   :  { %v5546_v14 = vmul.f32 -1.442695, %v2903_v27 }
 0x9d9   :  { %6593 = vpow2.f32 %v5546_v14 }
 0x9dd   :  { %v2976_v15 = vpop.f32.mrf.mxu1 }
 0x9de   :  { %v2980_v16 = vadd.f32 %v2976_v15, %v7826_v31 }
 0x9df   :  { %v6214_v32 = vpop.f32.mrf.mxu1  ;;  %v3053_v33 = vpop.f32.mrf.mxu0 }
 0x9e0   :  { %v5547_v34 = vmul.f32 -1.442695, %v2980_v16  ;;  %v3054_v42 = vadd.f32 %v3053_v33, %v7829_v39 }
 0x9e1   :  { %v6225_v35 = vpop.f32.mrf.mxu0 }
 0x9e2   :  { %6595 = vpow2.f32 %v5547_v34 }
 0x9e6   :  { %v6594_v36 = vpop.eup %6593 }
 0x9e7   :  { %v2907_v37 = vadd.f32 1.0, %v6594_v36 }
 0x9e9   :  { %6597 = vrcp.f32 %v2907_v37 }
 0x9ef   :  { %v6596_v38 = vpop.eup %6595 }
 0x9f0   :  { %v2984_v41 = vadd.f32 1.0, %v6596_v38 }
 0x9f2   :  { %6599 = vrcp.f32 %v2984_v41 }
 0x9f6   :  { %v6598_v45 = vpop.eup %6597 }
 0x9f7   :  { %v3057_v47 = vmul.f32 %v6598_v45, %v3054_v42 }
 0x9f9   :  { %v3058_v48 = vadd.f32 %v3057_v47, %v7832_v46 }
 0x9fb   :  { %6601 = vtanh.f32 %v3058_v48 }
 0x9ff   :  { %v6600_v49 = vpop.eup %6599 }
 0xa00   :  { %v3060_v50 = vsub.f32 1.0, %v6600_v49  ;;  %v3062_v53 = vmul.f32 0.0, %v6600_v49 }
 0xa08   :  { %v6602_v51 = vpop.eup %6601 }
 0xa09   :  { %v3061_v52 = vmul.f32 %v6602_v51, %v3060_v50 }
 0xa0b   :  { %v7835_v54 = vadd.f32 %v3062_v53, %v3061_v52 }
 0xa0d   :  { %6235 = vmatmul.mubr.msk.f32.vlgmr.msra.gmra.mxu1 %vm601_vm2, %v7835_v54  ;;  %6246 = vmatmul.mubr.msk.f32.vlgmr.msra.gmra.mxu0 %vm601_vm2, %v7835_v54  ;;  %v3305_v13 = vrot.slane %v7835_v54, 7 }
 0xa0e   :  { %6249 = vmatpush3.msra.mxu1 %v7765_v63  ;;  %6256 = vmatprep.mubr.msk.f32.mxu1 %vm7129_vm0, %v7128_v0 }
 0xa0f   :  { %6250 = vmatprep.subr.mxu1 %v7128_v0  ;;  %6260 = vmatpush3.msra.mxu0 %v7737_v40 }
 0xa10   :  { %6251 = vmatpush3.msra.mxu1 %v7774_v1  ;;  %6261 = vmatprep.subr.mxu0 %v7128_v0 }
 0xa11   :  { %6252 = vmatprep.subr.mxu1 %v7128_v0  ;;  %6262 = vmatpush3.msra.mxu0 %v7741_v58 }
 0xa12   :  { %6253 = vmatpush3.msra.mxu1 %v7782_v3  ;;  %6263 = vmatprep.subr.mxu0 %v7128_v0 }
 0xa13   :  { %6254 = vmatprep.subr.mxu1 %v7128_v0  ;;  %6264 = vmatpush3.msra.mxu0 %v7746_v60 }
 0xa14   :  { %6255 = vmatpush3.msra.mxu1 %v7790_v17  ;;  %6265 = vmatprep.subr.mxu0 %v7128_v0 }
 0xa15   :  { %6257 = vmatmul.mubr.msk.f32.vlgmr.msra.gmra.mxu1 %vm601_vm2, %v7835_v54  ;;  %6270 = vmatprep.subr.mxu1 %v7128_v0 }
 0xa16   :  { %6271 = vmatpush3.msra.mxu1 %v7761_v62  ;;  %6266 = vmatpush3.msra.mxu0 %v7752_v11 }
 0xa17   :  { %6272 = vmatprep.subr.mxu1 %v7128_v0  ;;  %6267 = vmatprep.mubr.msk.f32.mxu0 %vm7129_vm0, %v7128_v0 }
 0xa18   :  { %6273 = vmatpush3.msra.mxu1 %v7768_v12  ;;  %6278 = vmatprep.mubr.msk.f32.mxu1 %vm7129_vm0, %v7128_v0 }
 0xa19   :  { %6274 = vmatprep.subr.mxu1 %v7128_v0  ;;  %6281 = vmatprep.subr.mxu0 %v7128_v0 }
 0xa1a   :  { %6275 = vmatpush3.msra.mxu1 %v7777_v2 }
 0xa1b   :  { %6276 = vmatprep.subr.mxu1 %v7128_v0 }
 0xa1c   :  { %6277 = vmatpush3.msra.mxu1 %v7785_v5 }
 0xa1d   :  { %6292 = vmatprep.subr.mxu1 %v7128_v0 }
 0xacd   :  { %v3133_v24 = vpop.f32.mrf.mxu1  ;;  %v3213_v55 = vpop.f32.mrf.mxu0 }
 0xace   :  { %v3138_v56 = vrot.slane %v3133_v24, 7  ;;  %v3218_v7 = vrot.slane %v3213_v55, 7 }
 0xacf   :  { %v6236_v30 = vpop.f32.mrf.mxu1  ;;  %v6247_v57 = vpop.f32.mrf.mxu0 }
 0xad0   :  { %v3140_v4 = vadd.f32 %v3138_v56, %v7823_v23  ;;  %v3220_v9 = vadd.f32 %v3218_v7, %v7826_v31 }
 0xad2   :  { %v5549_v6 = vmul.f32 -1.442695, %v3140_v4  ;;  %v5551_v44 = vmul.f32 -1.442695, %v3220_v9 }
 0xad4   :  { %6603 = vpow2.f32 %v5549_v6 }
 0xad5   :  { %v3293_v8 = vpop.f32.mrf.mxu1  ;;  %6605 = vpow2.f32 %v5551_v44 }
 0xad6   :  { %v3294_v19 = vadd.f32 %v3293_v8, %v7829_v39 }
 0xad7   :  { %v6258_v10 = vpop.f32.mrf.mxu1 }
 0xad8   :  { %v3298_v21 = vrot.slane %v3294_v19, 7 }
 0xae1   :  { %v6604_v59 = vpop.eup %6603 }
 0xae2   :  { %v3144_v61 = vadd.f32 1.0, %v6604_v59  ;;  %v6606_v18 = vpop.eup %6605 }
 0xae3   :  { %v3224_v20 = vadd.f32 1.0, %v6606_v18 }
 0xae4   :  { %6607 = vrcp.f32 %v3144_v61 }
 0xae5   :  { %6609 = vrcp.f32 %v3224_v20 }
 0xaf1   :  { %v6608_v22 = vpop.eup %6607 }
 0xaf2   :  { %v3300_v25 = vmul.f32 %v6608_v22, %v3298_v21  ;;  %v6610_v27 = vpop.eup %6609 }
 0xaf3   :  { %v3303_v28 = vsub.f32 1.0, %v6610_v27  ;;  %v3307_v15 = vmul.f32 %v6610_v27, %v3305_v13 }
 0xaf4   :  { %v3301_v26 = vadd.f32 %v3300_v25, %v7832_v46 }
 0xaf6   :  { %6611 = vtanh.f32 %v3301_v26 }
 0xb03   :  { %v6612_v14 = vpop.eup %6611 }
 0xb04   :  { %v3304_v29 = vmul.f32 %v6612_v14, %v3303_v28 }
 0xb06   :  { %v7878_v16 = vadd.f32 %v3307_v15, %v3304_v29 }
 0xb08   :  { %v3310_v32 = vrot.slane %v7878_v16, 1  ;;  %v3551_v57 = vrot.slane %v7878_v16, 7 }
 0xb0a   :  { %6268 = vmatmul.mubr.msk.f32.vlgmr.msra.gmra.mxu0 %vm601_vm2, %v3310_v32  ;;  %6279 = vmatmul.mubr.msk.f32.vlgmr.msra.gmra.mxu1 %vm601_vm2, %v3310_v32 }
 0xb0b   :  { %6282 = vmatpush3.msra.mxu0 %v7765_v63  ;;  %6289 = vmatprep.mubr.msk.f32.mxu0 %vm7129_vm0, %v7128_v0 }
 0xb0c   :  { %6283 = vmatprep.subr.mxu0 %v7128_v0  ;;  %6293 = vmatpush3.msra.mxu1 %v7737_v40 }
 0xb0d   :  { %6284 = vmatpush3.msra.mxu0 %v7774_v1  ;;  %6294 = vmatprep.subr.mxu1 %v7128_v0 }
 0xb0e   :  { %6285 = vmatprep.subr.mxu0 %v7128_v0  ;;  %6295 = vmatpush3.msra.mxu1 %v7741_v58 }
 0xb0f   :  { %6286 = vmatpush3.msra.mxu0 %v7782_v3  ;;  %6296 = vmatprep.subr.mxu1 %v7128_v0 }
 0xb10   :  { %6287 = vmatprep.subr.mxu0 %v7128_v0  ;;  %6297 = vmatpush3.msra.mxu1 %v7746_v60 }
 0xb11   :  { %6288 = vmatpush3.msra.mxu0 %v7790_v17  ;;  %6298 = vmatprep.subr.mxu1 %v7128_v0 }
 0xb12   :  { %6290 = vmatmul.mubr.msk.f32.vlgmr.msra.gmra.mxu0 %vm601_vm2, %v3310_v32  ;;  %6303 = vmatprep.subr.mxu0 %v7128_v0 }
 0xb13   :  { %6304 = vmatpush3.msra.mxu0 %v7761_v62  ;;  %6299 = vmatpush3.msra.mxu1 %v7752_v11 }
 0xb14   :  { %6305 = vmatprep.subr.mxu0 %v7128_v0  ;;  %6300 = vmatprep.mubr.msk.f32.mxu1 %vm7129_vm0, %v7128_v0 }
 0xb15   :  { %6306 = vmatpush3.msra.mxu0 %v7768_v12  ;;  %6311 = vmatprep.mubr.msk.f32.mxu0 %vm7129_vm0, %v7128_v0 }
 0xb16   :  { %6307 = vmatprep.subr.mxu0 %v7128_v0  ;;  %6314 = vmatprep.subr.mxu1 %v7128_v0 }
 0xb17   :  { %6308 = vmatpush3.msra.mxu0 %v7777_v2 }
 0xb18   :  { %6309 = vmatprep.subr.mxu0 %v7128_v0 }
 0xb19   :  { %6310 = vmatpush3.msra.mxu0 %v7785_v5 }
 0xb1a   :  { %6325 = vmatprep.subr.mxu0 %v7128_v0 }
 0xbca   :  { %v3379_v33 = vpop.f32.mrf.mxu0  ;;  %v3459_v34 = vpop.f32.mrf.mxu1 }
 0xbcb   :  { %v3384_v35 = vrot.slane %v3379_v33, 6  ;;  %v3464_v42 = vrot.slane %v3459_v34, 6 }
 0xbcc   :  { %v6269_v36 = vpop.f32.mrf.mxu0  ;;  %v6280_v37 = vpop.f32.mrf.mxu1 }
 0xbcd   :  { %v3386_v38 = vadd.f32 %v3384_v35, %v7823_v23  ;;  %v3466_v45 = vadd.f32 %v3464_v42, %v7826_v31 }
 0xbcf   :  { %v5554_v41 = vmul.f32 -1.442695, %v3386_v38  ;;  %v5556_v48 = vmul.f32 -1.442695, %v3466_v45 }
 0xbd1   :  { %6613 = vpow2.f32 %v5554_v41 }
 0xbd2   :  { %v3539_v43 = vpop.f32.mrf.mxu0  ;;  %6615 = vpow2.f32 %v5556_v48 }
 0xbd3   :  { %v3540_v52 = vadd.f32 %v3539_v43, %v7829_v39 }
 0xbd4   :  { %v6291_v47 = vpop.f32.mrf.mxu0 }
 0xbd5   :  { %v3544_v54 = vrot.slane %v3540_v52, 6 }
 0xbde   :  { %v6614_v49 = vpop.eup %6613 }
 0xbdf   :  { %v3390_v50 = vadd.f32 1.0, %v6614_v49  ;;  %v6616_v51 = vpop.eup %6615 }
 0xbe0   :  { %v3470_v53 = vadd.f32 1.0, %v6616_v51 }
 0xbe1   :  { %6617 = vrcp.f32 %v3390_v50 }
 0xbe2   :  { %6619 = vrcp.f32 %v3470_v53 }
 0xbee   :  { %v6618_v24 = vpop.eup %6617 }
 0xbef   :  { %v3546_v55 = vmul.f32 %v6618_v24, %v3544_v54  ;;  %v6620_v30 = vpop.eup %6619 }
 0xbf0   :  { %v3549_v4 = vsub.f32 1.0, %v6620_v30  ;;  %v3553_v8 = vmul.f32 %v6620_v30, %v3551_v57 }
 0xbf1   :  { %v3547_v56 = vadd.f32 %v3546_v55, %v7832_v46 }
 0xbf3   :  { %6621 = vtanh.f32 %v3547_v56 }
 0xc00   :  { %v6622_v6 = vpop.eup %6621 }
 0xc01   :  { %v3550_v7 = vmul.f32 %v6622_v6, %v3549_v4 }
 0xc03   :  { %v7919_v9 = vadd.f32 %v3553_v8, %v3550_v7 }
 0xc05   :  { %v3556_v10 = vrot.slane %v7919_v9, 2  ;;  %v3797_v37 = vrot.slane %v7919_v9, 7 }
 0xc07   :  { %6301 = vmatmul.mubr.msk.f32.vlgmr.msra.gmra.mxu1 %vm601_vm2, %v3556_v10  ;;  %6312 = vmatmul.mubr.msk.f32.vlgmr.msra.gmra.mxu0 %vm601_vm2, %v3556_v10 }
 0xc08   :  { %6315 = vmatpush3.msra.mxu1 %v7765_v63  ;;  %6322 = vmatprep.mubr.msk.f32.mxu1 %vm7129_vm0, %v7128_v0 }
 0xc09   :  { %6316 = vmatprep.subr.mxu1 %v7128_v0  ;;  %6326 = vmatpush3.msra.mxu0 %v7737_v40 }
 0xc0a   :  { %6317 = vmatpush3.msra.mxu1 %v7774_v1  ;;  %6327 = vmatprep.subr.mxu0 %v7128_v0 }
 0xc0b   :  { %6318 = vmatprep.subr.mxu1 %v7128_v0  ;;  %6328 = vmatpush3.msra.mxu0 %v7741_v58 }
 0xc0c   :  { %6319 = vmatpush3.msra.mxu1 %v7782_v3  ;;  %6329 = vmatprep.subr.mxu0 %v7128_v0 }
 0xc0d   :  { %6320 = vmatprep.subr.mxu1 %v7128_v0  ;;  %6330 = vmatpush3.msra.mxu0 %v7746_v60 }
 0xc0e   :  { %6321 = vmatpush3.msra.mxu1 %v7790_v17  ;;  %6331 = vmatprep.subr.mxu0 %v7128_v0 }
 0xc0f   :  { %6323 = vmatmul.mubr.msk.f32.vlgmr.msra.gmra.mxu1 %vm601_vm2, %v3556_v10  ;;  %6336 = vmatprep.subr.mxu1 %v7128_v0 }
 0xc10   :  { %6337 = vmatpush3.msra.mxu1 %v7761_v62  ;;  %6332 = vmatpush3.msra.mxu0 %v7752_v11 }
 0xc11   :  { %6338 = vmatprep.subr.mxu1 %v7128_v0  ;;  %6333 = vmatprep.mubr.msk.f32.mxu0 %vm7129_vm0, %v7128_v0 }
 0xc12   :  { %6339 = vmatpush3.msra.mxu1 %v7768_v12  ;;  %6344 = vmatprep.mubr.msk.f32.mxu1 %vm7129_vm0, %v7128_v0 }
 0xc13   :  { %6340 = vmatprep.subr.mxu1 %v7128_v0  ;;  %6347 = vmatprep.subr.mxu0 %v7128_v0 }
 0xc14   :  { %6341 = vmatpush3.msra.mxu1 %v7777_v2 }
 0xc15   :  { %6342 = vmatprep.subr.mxu1 %v7128_v0 }
 0xc16   :  { %6343 = vmatpush3.msra.mxu1 %v7785_v5 }
 0xc17   :  { %6358 = vmatprep.subr.mxu1 %v7128_v0 }
 0xcc7   :  { %v3625_v44 = vpop.f32.mrf.mxu1  ;;  %v3705_v59 = vpop.f32.mrf.mxu0 }
 0xcc8   :  { %v3630_v61 = vrot.slane %v3625_v44, 5  ;;  %v3710_v22 = vrot.slane %v3705_v59, 5 }
 0xcc9   :  { %v6302_v18 = vpop.f32.mrf.mxu1  ;;  %v6313_v19 = vpop.f32.mrf.mxu0 }
 0xcca   :  { %v3632_v20 = vadd.f32 %v3630_v61, %v7823_v23  ;;  %v3712_v26 = vadd.f32 %v3710_v22, %v7826_v31 }
 0xccc   :  { %v5559_v21 = vmul.f32 -1.442695, %v3632_v20  ;;  %v5561_v28 = vmul.f32 -1.442695, %v3712_v26 }
 0xcce   :  { %6623 = vpow2.f32 %v5559_v21 }
 0xccf   :  { %v3785_v25 = vpop.f32.mrf.mxu1  ;;  %6625 = vpow2.f32 %v5561_v28 }
 0xcd0   :  { %v3786_v15 = vadd.f32 %v3785_v25, %v7829_v39 }
 0xcd1   :  { %v6324_v27 = vpop.f32.mrf.mxu1 }
 0xcd2   :  { %v3790_v32 = vrot.slane %v3786_v15, 5 }
 0xcdb   :  { %v6624_v13 = vpop.eup %6623 }
 0xcdc   :  { %v3636_v14 = vadd.f32 1.0, %v6624_v13  ;;  %v6626_v29 = vpop.eup %6625 }
 0xcdd   :  { %v3716_v16 = vadd.f32 1.0, %v6626_v29 }
 0xcde   :  { %6627 = vrcp.f32 %v3636_v14 }
 0xcdf   :  { %6629 = vrcp.f32 %v3716_v16 }
 0xceb   :  { %v6628_v33 = vpop.eup %6627 }
 0xcec   :  { %v3792_v34 = vmul.f32 %v6628_v33, %v3790_v32  ;;  %v6630_v36 = vpop.eup %6629 }
 0xced   :  { %v3795_v38 = vsub.f32 1.0, %v6630_v36  ;;  %v3799_v43 = vmul.f32 %v6630_v36, %v3797_v37 }
 0xcee   :  { %v3793_v35 = vadd.f32 %v3792_v34, %v7832_v46 }
 0xcf0   :  { %6631 = vtanh.f32 %v3793_v35 }
 0xcfd   :  { %v6632_v41 = vpop.eup %6631 }
 0xcfe   :  { %v3796_v42 = vmul.f32 %v6632_v41, %v3795_v38 }
 0xd00   :  { %v7960_v45 = vadd.f32 %v3799_v43, %v3796_v42 }
 0xd02   :  { %v3802_v47 = vrot.slane %v7960_v45, 3  ;;  %v4043_v19 = vrot.slane %v7960_v45, 7 }
 0xd04   :  { %6334 = vmatmul.mubr.msk.f32.vlgmr.msra.gmra.mxu0 %vm601_vm2, %v3802_v47  ;;  %6345 = vmatmul.mubr.msk.f32.vlgmr.msra.gmra.mxu1 %vm601_vm2, %v3802_v47 }
 0xd05   :  { %6348 = vmatpush3.msra.mxu0 %v7765_v63  ;;  %6355 = vmatprep.mubr.msk.f32.mxu0 %vm7129_vm0, %v7128_v0 }
 0xd06   :  { %6349 = vmatprep.subr.mxu0 %v7128_v0  ;;  %6359 = vmatpush3.msra.mxu1 %v7737_v40 }
 0xd07   :  { %6350 = vmatpush3.msra.mxu0 %v7774_v1  ;;  %6360 = vmatprep.subr.mxu1 %v7128_v0 }
 0xd08   :  { %6351 = vmatprep.subr.mxu0 %v7128_v0  ;;  %6361 = vmatpush3.msra.mxu1 %v7741_v58 }
 0xd09   :  { %6352 = vmatpush3.msra.mxu0 %v7782_v3  ;;  %6362 = vmatprep.subr.mxu1 %v7128_v0 }
 0xd0a   :  { %6353 = vmatprep.subr.mxu0 %v7128_v0  ;;  %6363 = vmatpush3.msra.mxu1 %v7746_v60 }
 0xd0b   :  { %6354 = vmatpush3.msra.mxu0 %v7790_v17  ;;  %6364 = vmatprep.subr.mxu1 %v7128_v0 }
 0xd0c   :  { %6356 = vmatmul.mubr.msk.f32.vlgmr.msra.gmra.mxu0 %vm601_vm2, %v3802_v47  ;;  %6369 = vmatprep.subr.mxu0 %v7128_v0 }
 0xd0d   :  { %6370 = vmatpush3.msra.mxu0 %v7761_v62  ;;  %6365 = vmatpush3.msra.mxu1 %v7752_v11 }
 0xd0e   :  { %6371 = vmatprep.subr.mxu0 %v7128_v0  ;;  %6366 = vmatprep.mubr.msk.f32.mxu1 %vm7129_vm0, %v7128_v0 }
 0xd0f   :  { %6372 = vmatpush3.msra.mxu0 %v7768_v12  ;;  %6377 = vmatprep.mubr.msk.f32.mxu0 %vm7129_vm0, %v7128_v0 }
 0xd10   :  { %6373 = vmatprep.subr.mxu0 %v7128_v0  ;;  %6380 = vmatprep.subr.mxu1 %v7128_v0 }
 0xd11   :  { %6374 = vmatpush3.msra.mxu0 %v7777_v2 }
 0xd12   :  { %6375 = vmatprep.subr.mxu0 %v7128_v0 }
 0xd13   :  { %6376 = vmatpush3.msra.mxu0 %v7785_v5 }
 0xd14   :  { %6391 = vmatprep.subr.mxu0 %v7128_v0 }
 0xdc4   :  { %v3871_v48 = vpop.f32.mrf.mxu0  ;;  %v3951_v49 = vpop.f32.mrf.mxu1 }
 0xdc5   :  { %v3876_v50 = vrot.slane %v3871_v48, 4  ;;  %v3956_v24 = vrot.slane %v3951_v49, 4 }
 0xdc6   :  { %v6335_v51 = vpop.f32.mrf.mxu0  ;;  %v6346_v52 = vpop.f32.mrf.mxu1 }
 0xdc7   :  { %v3878_v53 = vadd.f32 %v3876_v50, %v7823_v23  ;;  %v3958_v56 = vadd.f32 %v3956_v24, %v7826_v31 }
 0xdc9   :  { %v5564_v54 = vmul.f32 -1.442695, %v3878_v53  ;;  %v5566_v57 = vmul.f32 -1.442695, %v3958_v56 }
 0xdcb   :  { %6633 = vpow2.f32 %v5564_v54 }
 0xdcc   :  { %v4031_v55 = vpop.f32.mrf.mxu0  ;;  %6635 = vpow2.f32 %v5566_v57 }
 0xdcd   :  { %v4032_v8 = vadd.f32 %v4031_v55, %v7829_v39 }
 0xdce   :  { %v6357_v30 = vpop.f32.mrf.mxu0 }
 0xdcf   :  { %v4036_v10 = vrot.slane %v4032_v8, 4 }
 0xdd8   :  { %v6634_v4 = vpop.eup %6633 }
 0xdd9   :  { %v3882_v6 = vadd.f32 1.0, %v6634_v4  ;;  %v6636_v7 = vpop.eup %6635 }
 0xdda   :  { %v3962_v9 = vadd.f32 1.0, %v6636_v7 }
 0xddb   :  { %6637 = vrcp.f32 %v3882_v6 }
 0xddc   :  { %6639 = vrcp.f32 %v3962_v9 }
 0xde8   :  { %v6638_v44 = vpop.eup %6637 }
 0xde9   :  { %v4038_v59 = vmul.f32 %v6638_v44, %v4036_v10  ;;  %v6640_v18 = vpop.eup %6639 }
 0xdea   :  { %v4041_v20 = vsub.f32 1.0, %v6640_v18  ;;  %v4045_v25 = vmul.f32 %v6640_v18, %v4043_v19 }
 0xdeb   :  { %v4039_v61 = vadd.f32 %v4038_v59, %v7832_v46 }
 0xded   :  { %6641 = vtanh.f32 %v4039_v61 }
 0xdfa   :  { %v6642_v21 = vpop.eup %6641 }
 0xdfb   :  { %v4042_v22 = vmul.f32 %v6642_v21, %v4041_v20 }
 0xdfd   :  { %v8001_v26 = vadd.f32 %v4045_v25, %v4042_v22 }
 0xdff   :  { %v4048_v27 = vrot.slane %v8001_v26, 4  ;;  %v4289_v52 = vrot.slane %v8001_v26, 7 }
 0xe01   :  { %6367 = vmatmul.mubr.msk.f32.vlgmr.msra.gmra.mxu1 %vm601_vm2, %v4048_v27  ;;  %6378 = vmatmul.mubr.msk.f32.vlgmr.msra.gmra.mxu0 %vm601_vm2, %v4048_v27 }
 0xe02   :  { %6381 = vmatpush3.msra.mxu1 %v7765_v63  ;;  %6388 = vmatprep.mubr.msk.f32.mxu1 %vm7129_vm0, %v7128_v0 }
 0xe03   :  { %6382 = vmatprep.subr.mxu1 %v7128_v0  ;;  %6392 = vmatpush3.msra.mxu0 %v7737_v40 }
 0xe04   :  { %6383 = vmatpush3.msra.mxu1 %v7774_v1  ;;  %6393 = vmatprep.subr.mxu0 %v7128_v0 }
 0xe05   :  { %6384 = vmatprep.subr.mxu1 %v7128_v0  ;;  %6394 = vmatpush3.msra.mxu0 %v7741_v58 }
 0xe06   :  { %6385 = vmatpush3.msra.mxu1 %v7782_v3  ;;  %6395 = vmatprep.subr.mxu0 %v7128_v0 }
 0xe07   :  { %6386 = vmatprep.subr.mxu1 %v7128_v0  ;;  %6396 = vmatpush3.msra.mxu0 %v7746_v60 }
 0xe08   :  { %6387 = vmatpush3.msra.mxu1 %v7790_v17  ;;  %6397 = vmatprep.subr.mxu0 %v7128_v0 }
 0xe09   :  { %6389 = vmatmul.mubr.msk.f32.vlgmr.msra.gmra.mxu1 %vm601_vm2, %v4048_v27  ;;  %6402 = vmatprep.subr.mxu1 %v7128_v0 }
 0xe0a   :  { %6403 = vmatpush3.msra.mxu1 %v7761_v62  ;;  %6398 = vmatpush3.msra.mxu0 %v7752_v11 }
 0xe0b   :  { %6404 = vmatprep.subr.mxu1 %v7128_v0  ;;  %6399 = vmatprep.mubr.msk.f32.mxu0 %vm7129_vm0, %v7128_v0 }
 0xe0c   :  { %6405 = vmatpush3.msra.mxu1 %v7768_v12  ;;  %6410 = vmatprep.mubr.msk.f32.mxu1 %vm7129_vm0, %v7128_v0 }
 0xe0d   :  { %6406 = vmatprep.subr.mxu1 %v7128_v0  ;;  %6413 = vmatprep.subr.mxu0 %v7128_v0 }
 0xe0e   :  { %6407 = vmatpush3.msra.mxu1 %v7777_v2 }
 0xe0f   :  { %6408 = vmatprep.subr.mxu1 %v7128_v0 }
 0xe10   :  { %6409 = vmatpush3.msra.mxu1 %v7785_v5 }
 0xe11   :  { %6424 = vmatprep.subr.mxu1 %v7128_v0 }
 0xec1   :  { %v4117_v28 = vpop.f32.mrf.mxu1  ;;  %v4197_v13 = vpop.f32.mrf.mxu0 }
 0xec2   :  { %v4122_v14 = vrot.slane %v4117_v28, 3  ;;  %v4202_v33 = vrot.slane %v4197_v13, 3 }
 0xec3   :  { %v6368_v29 = vpop.f32.mrf.mxu1  ;;  %v6379_v15 = vpop.f32.mrf.mxu0 }
 0xec4   :  { %v4124_v16 = vadd.f32 %v4122_v14, %v7823_v23  ;;  %v4204_v35 = vadd.f32 %v4202_v33, %v7826_v31  ;;  %v4800_v29 = vld [vmem:[%s8207_s12 + $0x78] sm:$0xff]  ;;  %v4794_v15 = vld [vmem:[%s8207_s12 + $0x48] sm:$0xff] }
 0xec5   :  { %v4792_v33 = vld [vmem:[%s8207_s12 + $0x38] sm:$0xff] }
 0xec6   :  { %v5569_v32 = vmul.f32 -1.442695, %v4124_v16  ;;  %v5571_v37 = vmul.f32 -1.442695, %v4204_v35  ;;  %v4796_v16 = vld [vmem:[%s8207_s12 + $0x58] sm:$0xff]  ;;  %v4791_v35 = vld [vmem:[%s8207_s12 + $0x30] sm:$0xff] }
 0xec8   :  { %6643 = vpow2.f32 %v5569_v32  ;;  %v4795_v32 = vld [vmem:[%s8207_s12 + $0x50] sm:$0xff] }
 0xec9   :  { %v4277_v34 = vpop.f32.mrf.mxu1  ;;  %6645 = vpow2.f32 %v5571_v37  ;;  %v4788_v37 = vld [vmem:[%s8207_s12 + $0x18] sm:$0xff] }
 0xeca   :  { %v4278_v43 = vadd.f32 %v4277_v34, %v7829_v39  ;;  %v4789_v34 = vld [vmem:[%s8207_s12 + $0x20] sm:$0xff] }
 0xecb   :  { %v6390_v36 = vpop.f32.mrf.mxu1 }
 0xecc   :  { %v4282_v47 = vrot.slane %v4278_v43, 3  ;;  %v4786_v36 = vld [vmem:[%s8207_s12 + $0x8] sm:$0xff]  ;;  %v5120_v43 = vld [vmem:[#allocation30 + $0x2f8] sm:$0xff] }
 0xed5   :  { %v6644_v38 = vpop.eup %6643 }
 0xed6   :  { %v4128_v41 = vadd.f32 1.0, %v6644_v38  ;;  %v6646_v42 = vpop.eup %6645  ;;  %v4785_v38 = vld [vmem:[%s8207_s12] sm:$0xff] }
 0xed7   :  { %v4208_v45 = vadd.f32 1.0, %v6646_v42  ;;  %v5056_v42 = vld [vmem:[#allocation30 + $0xf8] sm:$0xff] }
 0xed8   :  { %6647 = vrcp.f32 %v4128_v41  ;;  %v4787_v41 = vld [vmem:[%s8207_s12 + $0x10] sm:$0xff] }
 0xed9   :  { %6649 = vrcp.f32 %v4208_v45 }
 0xee5   :  { %v6648_v48 = vpop.eup %6647 }
 0xee6   :  { %v4284_v49 = vmul.f32 %v6648_v48, %v4282_v47  ;;  %v6650_v51 = vpop.eup %6649 }
 0xee7   :  { %v4287_v53 = vsub.f32 1.0, %v6650_v51  ;;  %v4291_v55 = vmul.f32 %v6650_v51, %v4289_v52 }
 0xee8   :  { %v4285_v50 = vadd.f32 %v4284_v49, %v7832_v46 }
 0xeea   :  { %6651 = vtanh.f32 %v4285_v50 }
 0xef7   :  { %v6652_v54 = vpop.eup %6651 }
 0xef8   :  { %v4288_v24 = vmul.f32 %v6652_v54, %v4287_v53 }
 0xefa   :  { %v8042_v56 = vadd.f32 %v4291_v55, %v4288_v24 }
 0xefc   :  { %v4294_v30 = vrot.slane %v8042_v56, 5  ;;  %v4535_v22 = vrot.slane %v8042_v56, 7 }
 0xefe   :  { %6400 = vmatmul.mubr.msk.f32.vlgmr.msra.gmra.mxu0 %vm601_vm2, %v4294_v30  ;;  %6411 = vmatmul.mubr.msk.f32.vlgmr.msra.gmra.mxu1 %vm601_vm2, %v4294_v30 }
 0xeff   :  { %6414 = vmatpush3.msra.mxu0 %v7765_v63  ;;  %6421 = vmatprep.mubr.msk.f32.mxu0 %vm7129_vm0, %v7128_v0 }
 0xf00   :  { %6415 = vmatprep.subr.mxu0 %v7128_v0  ;;  %6425 = vmatpush3.msra.mxu1 %v7737_v40 }
 0xf01   :  { %6416 = vmatpush3.msra.mxu0 %v7774_v1  ;;  %6426 = vmatprep.subr.mxu1 %v7128_v0 }
 0xf02   :  { %6417 = vmatprep.subr.mxu0 %v7128_v0  ;;  %6427 = vmatpush3.msra.mxu1 %v7741_v58 }
 0xf03   :  { %6418 = vmatpush3.msra.mxu0 %v7782_v3  ;;  %6428 = vmatprep.subr.mxu1 %v7128_v0 }
 0xf04   :  { %6419 = vmatprep.subr.mxu0 %v7128_v0  ;;  %6429 = vmatpush3.msra.mxu1 %v7746_v60 }
 0xf05   :  { %6420 = vmatpush3.msra.mxu0 %v7790_v17  ;;  %6430 = vmatprep.subr.mxu1 %v7128_v0 }
 0xf06   :  { %6422 = vmatmul.mubr.msk.f32.vlgmr.msra.gmra.mxu0 %vm601_vm2, %v4294_v30  ;;  %6435 = vmatprep.subr.mxu0 %v7128_v0 }
 0xf07   :  { %6436 = vmatpush3.msra.mxu0 %v7761_v62  ;;  %6431 = vmatpush3.msra.mxu1 %v7752_v11 }
 0xf08   :  { %6437 = vmatprep.subr.mxu0 %v7128_v0  ;;  %6432 = vmatprep.mubr.msk.f32.mxu1 %vm7129_vm0, %v7128_v0 }
 0xf09   :  { %6438 = vmatpush3.msra.mxu0 %v7768_v12  ;;  %6443 = vmatprep.mubr.msk.f32.mxu0 %vm7129_vm0, %v7128_v0 }
 0xf0a   :  { %6439 = vmatprep.subr.mxu0 %v7128_v0  ;;  %6446 = vmatprep.subr.mxu1 %v7128_v0 }
 0xf0b   :  { %6440 = vmatpush3.msra.mxu0 %v7777_v2 }
 0xf0c   :  { %6441 = vmatprep.subr.mxu0 %v7128_v0 }
 0xf0d   :  { %6442 = vmatpush3.msra.mxu0 %v7785_v5 }
 0xfbe   :  { %v4363_v40 = vpop.f32.mrf.mxu0  ;;  %v4443_v58 = vpop.f32.mrf.mxu1 }
 0xfbf   :  { %v4368_v60 = vrot.slane %v4363_v40, 2  ;;  %v4448_v4 = vrot.slane %v4443_v58, 2 }
 0xfc0   :  { %v6401_v11 = vpop.f32.mrf.mxu0  ;;  %v6412_v62 = vpop.f32.mrf.mxu1 }
 0xfc1   :  { %v4370_v12 = vadd.f32 %v4368_v60, %v7823_v23  ;;  %v4450_v7 = vadd.f32 %v4448_v4, %v7826_v31 }
 0xfc3   :  { %v5574_v57 = vmul.f32 -1.442695, %v4370_v12  ;;  %v5576_v9 = vmul.f32 -1.442695, %v4450_v7 }
 0xfc5   :  { %6653 = vpow2.f32 %v5574_v57 }
 0xfc6   :  { %v4523_v6 = vpop.f32.mrf.mxu0  ;;  %6655 = vpow2.f32 %v5576_v9 }
 0xfc7   :  { %v4524_v44 = vadd.f32 %v4523_v6, %v7829_v39 }
 0xfc8   :  { %v6423_v8 = vpop.f32.mrf.mxu0 }
 0xfc9   :  { %v4528_v61 = vrot.slane %v4524_v44, 2  ;;  %v5119_v44 = vld [vmem:[#allocation30 + $0x2f0] sm:$0xff] }
 0xfd2   :  { %v6654_v2 = vpop.eup %6653 }
 0xfd3   :  { %v4374_v10 = vadd.f32 1.0, %v6654_v2  ;;  %v6656_v5 = vpop.eup %6655 }
 0xfd4   :  { %v4454_v59 = vadd.f32 1.0, %v6656_v5  ;;  %v5055_v5 = vld [vmem:[#allocation30 + $0xf0] sm:$0xff] }
 0xfd5   :  { %6657 = vrcp.f32 %v4374_v10 }
 0xfd6   :  { %6659 = vrcp.f32 %v4454_v59  ;;  %v5118_v59 = vld [vmem:[#allocation30 + $0x2e8] sm:$0xff] }
 0xfe2   :  { %v6658_v18 = vpop.eup %6657 }
 0xfe3   :  { %v4530_v19 = vmul.f32 %v6658_v18, %v4528_v61  ;;  %v6660_v21 = vpop.eup %6659  ;;  %v5053_v61 = vld [vmem:[#allocation30 + $0xe0] sm:$0xff]  ;;  %v5052_v18 = vld [vmem:[#allocation30 + $0xd8] sm:$0xff] }
 0xfe4   :  { %v4533_v25 = vsub.f32 1.0, %v6660_v21  ;;  %v4537_v28 = vmul.f32 %v6660_v21, %v4535_v22  ;;  %v5115_v21 = vld [vmem:[#allocation30 + $0x2d0] sm:$0xff]  ;;  %v5050_v22 = vld [vmem:[#allocation30 + $0xc8] sm:$0xff] }
 0xfe5   :  { %v4531_v20 = vadd.f32 %v4530_v19, %v7832_v46  ;;  %v5116_v19 = vld [vmem:[#allocation30 + $0x2d8] sm:$0xff] }
 0xfe7   :  { %6661 = vtanh.f32 %v4531_v20  ;;  %v5051_v20 = vld [vmem:[#allocation30 + $0xd0] sm:$0xff] }
 0xff4   :  { %v6662_v26 = vpop.eup %6661 }
 0xff5   :  { %v4534_v27 = vmul.f32 %v6662_v26, %v4533_v25  ;;  %v5114_v25 = vld [vmem:[#allocation30 + $0x2c8] sm:$0xff]  ;;  %v5049_v26 = vld [vmem:[#allocation30 + $0xc0] sm:$0xff] }
 0xff7   :  { %v8082_v13 = vadd.f32 %v4537_v28, %v4534_v27  ;;  %v5113_v27 = vld [vmem:[#allocation30 + $0x2c0] sm:$0xff]  ;;  %v5048_v28 = vld [vmem:[#allocation30 + $0xb8] sm:$0xff] }
 0xff9   :  { %v4540_v14 = vrot.slane %v8082_v13, 6 }
 0xffb   :  { %6433 = vmatmul.mubr.msk.f32.vlgmr.msra.gmra.mxu1 %vm601_vm2, %v4540_v14  ;;  %6444 = vmatmul.mubr.msk.f32.vlgmr.msra.gmra.mxu0 %vm601_vm2, %v4540_v14 }
 0xffc   :  { %6447 = vmatpush3.msra.mxu1 %v7765_v63  ;;  %6454 = vmatprep.mubr.msk.f32.mxu1 %vm7129_vm0, %v7128_v0  ;;  %v4798_v63 = vld [vmem:[%s8207_s12 + $0x68] sm:$0xff] }
 0xffd   :  { %6448 = vmatprep.subr.mxu1 %v7128_v0  ;;  %4891 = vmatprep.mubr.f32.mxu0 %v7128_v0 }
 0xffe   :  { %6449 = vmatpush3.msra.mxu1 %v7774_v1  ;;  %v4797_v1 = vld [vmem:[%s8207_s12 + $0x60] sm:$0xff]  ;;  %4851 = vmatprep.subr.mxu0 %v4798_v63  ;;  %v5111_v63 = vld [vmem:[#allocation30 + $0x2b0] sm:$0xff] }
 0xfff   :  { %6450 = vmatprep.subr.mxu1 %v7128_v0  ;;  %4852 = vmatpush1.msra.mxu0 %v4797_v1  ;;  %v5110_v1 = vld [vmem:[#allocation30 + $0x2a8] sm:$0xff] }
0x1000   :  { %6451 = vmatpush3.msra.mxu1 %v7782_v3  ;;  %v4799_v3 = vld [vmem:[%s8207_s12 + $0x70] sm:$0xff]  ;;  %4853 = vmatprep.subr.mxu0 %v4794_v15  ;;  %v5109_v15 = vld [vmem:[#allocation30 + $0x2a0] sm:$0xff] }
0x1001   :  { %6452 = vmatprep.subr.mxu1 %v7128_v0 }
0x1002   :  { %6453 = vmatpush3.msra.mxu1 %v7790_v17  ;;  %v4793_v17 = vld [vmem:[%s8207_s12 + $0x40] sm:$0xff] }
0x1003   :  { %6455 = vmatmul.mubr.msk.f32.vlgmr.msra.gmra.mxu1 %vm601_vm2, %v4540_v14  ;;  %4922 = vmatprep.subr.mxu1 %v4800_v29  ;;  %v5047_v14 = vld [vmem:[#allocation30 + $0xb0] sm:$0xff]  ;;  %v5046_v29 = vld [vmem:[#allocation30 + $0xa8] sm:$0xff] }
0x1004   :  { %4962 = vmatprep.mubr.f32.mxu1 %v7128_v0  ;;  %4923 = vmatpush1.msra.mxu1 %v4799_v3  ;;  %v4790_v0 = vld [vmem:[%s8207_s12 + $0x28] sm:$0xff]  ;;  %v5045_v3 = vld [vmem:[#allocation30 + $0xa0] sm:$0xff] }
0x1005   :  { %4924 = vmatprep.subr.mxu1 %v4796_v16  ;;  %4854 = vmatpush1.msra.mxu0 %v4793_v17  ;;  %v5044_v16 = vld [vmem:[#allocation30 + $0x98] sm:$0xff] }
0x1006   :  { %4925 = vmatpush1.msra.mxu1 %v4795_v32  ;;  %4855 = vmatprep.subr.mxu0 %v4790_v0  ;;  %v5108_v17 = vld [vmem:[#allocation30 + $0x298] sm:$0xff]  ;;  %v5043_v32 = vld [vmem:[#allocation30 + $0x90] sm:$0xff] }
0x1007   :  { %4926 = vmatprep.subr.mxu1 %v4792_v33  ;;  %4856 = vmatpush1.msra.mxu0 %v4789_v34  ;;  %v5107_v0 = vld [vmem:[#allocation30 + $0x290] sm:$0xff]  ;;  %v5042_v33 = vld [vmem:[#allocation30 + $0x88] sm:$0xff] }
0x1008   :  { %4927 = vmatpush1.msra.mxu1 %v4791_v35  ;;  %4857 = vmatprep.subr.mxu0 %v4786_v36  ;;  %v5106_v34 = vld [vmem:[#allocation30 + $0x288] sm:$0xff]  ;;  %v5041_v35 = vld [vmem:[#allocation30 + $0x80] sm:$0xff] }
0x1009   :  { %4928 = vmatprep.subr.mxu1 %v4788_v37  ;;  %4858 = vmatpush1.msra.mxu0 %v4785_v38  ;;  %v5105_v36 = vld [vmem:[#allocation30 + $0x280] sm:$0xff]  ;;  %v5040_v37 = vld [vmem:[#allocation30 + $0x78] sm:$0xff] }
0x100a   :  { %4929 = vmatpush1.msra.mxu1 %v4787_v41  ;;  %5165 = vmatprep.subr.mxu0 %v5056_v42  ;;  %v5104_v38 = vld [vmem:[#allocation30 + $0x278] sm:$0xff]  ;;  %v5039_v41 = vld [vmem:[#allocation30 + $0x70] sm:$0xff] }
0x100b   :  { %5236 = vmatprep.subr.mxu1 %v5120_v43  ;;  %v5103_v42 = vld [vmem:[#allocation30 + $0x270] sm:$0xff]  ;;  %v5038_v43 = vld [vmem:[#allocation30 + $0x68] sm:$0xff] }
0x10bb   :  { %v4609_v45 = vpop.f32.mrf.mxu1  ;;  %v4689_v47 = vpop.f32.mrf.mxu0 }
0x10bc   :  { %v4614_v48 = vrot.slane %v4609_v45, 1  ;;  %v4694_v53 = vrot.slane %v4689_v47, 1  ;;  %v5102_v45 = vld [vmem:[#allocation30 + $0x268] sm:$0xff]  ;;  %v5037_v47 = vld [vmem:[#allocation30 + $0x60] sm:$0xff] }
0x10bd   :  { %v6434_v49 = vpop.f32.mrf.mxu1  ;;  %v6445_v50 = vpop.f32.mrf.mxu0 }
0x10be   :  { %v4616_v51 = vadd.f32 %v4614_v48, %v7823_v23  ;;  %v4696_v24 = vadd.f32 %v4694_v53, %v7826_v31  ;;  %v4781_v31 = vrot.slane %v8082_v13, 7  ;;  %v5112_v13 = vld [vmem:[#allocation30 + $0x2b8] sm:$0xff]  ;;  %v5101_v48 = vld [vmem:[#allocation30 + $0x260] sm:$0xff]  ;;  %v5034_v53 = vld [vmem:[#allocation30 + $0x48] sm:$0xff] }
0x10bf   :  { %v5036_v49 = vld [vmem:[#allocation30 + $0x58] sm:$0xff] }
0x10c0   :  { %v5579_v52 = vmul.f32 -1.442695, %v4616_v51  ;;  %v5581_v56 = vmul.f32 -1.442695, %v4696_v24  ;;  %v5100_v50 = vld [vmem:[#allocation30 + $0x258] sm:$0xff]  ;;  %v5035_v51 = vld [vmem:[#allocation30 + $0x50] sm:$0xff] }
0x10c1   :  { %v5033_v24 = vld [vmem:[#allocation30 + $0x40] sm:$0xff] }
0x10c2   :  { %6663 = vpow2.f32 %v5579_v52  ;;  %v5099_v52 = vld [vmem:[#allocation30 + $0x250] sm:$0xff] }
0x10c3   :  { %v4769_v54 = vpop.f32.mrf.mxu1  ;;  %6665 = vpow2.f32 %v5581_v56  ;;  %v5032_v56 = vld [vmem:[#allocation30 + $0x38] sm:$0xff] }
0x10c4   :  { %v4770_v60 = vadd.f32 %v4769_v54, %v7829_v39  ;;  %v5054_v39 = vld [vmem:[#allocation30 + $0xe8] sm:$0xff] }
0x10c5   :  { %v6456_v55 = vpop.f32.mrf.mxu1  ;;  %v5098_v54 = vld [vmem:[#allocation30 + $0x248] sm:$0xff] }
0x10c6   :  { %v4774_v62 = vrot.slane %v4770_v60, 1  ;;  %v5097_v55 = vld [vmem:[#allocation30 + $0x240] sm:$0xff]  ;;  %v5030_v60 = vld [vmem:[#allocation30 + $0x28] sm:$0xff] }
0x10cf   :  { %v6664_v30 = vpop.eup %6663 }
0x10d0   :  { %v4620_v40 = vadd.f32 1.0, %v6664_v30  ;;  %v6666_v58 = vpop.eup %6665  ;;  %v5096_v30 = vld [vmem:[#allocation30 + $0x238] sm:$0xff] }
0x10d1   :  { %v4700_v11 = vadd.f32 1.0, %v6666_v58  ;;  %v5095_v58 = vld [vmem:[#allocation30 + $0x230] sm:$0xff] }
0x10d2   :  { %6667 = vrcp.f32 %v4620_v40  ;;  %v5031_v40 = vld [vmem:[#allocation30 + $0x30] sm:$0xff] }
0x10d3   :  { %6669 = vrcp.f32 %v4700_v11  ;;  %v5094_v11 = vld [vmem:[#allocation30 + $0x228] sm:$0xff] }
0x10df   :  { %v6668_v12 = vpop.eup %6667 }
0x10e0   :  { %v4776_v23 = vmul.f32 %v6668_v12, %v4774_v62  ;;  %v6670_v4 = vpop.eup %6669  ;;  %v5029_v62 = vld [vmem:[#allocation30 + $0x20] sm:$0xff] }
0x10e1   :  { %v4779_v6 = vsub.f32 1.0, %v6670_v4  ;;  %v4783_v9 = vmul.f32 %v6670_v4, %v4781_v31  ;;  %v5093_v12 = vld [vmem:[#allocation30 + $0x220] sm:$0xff]  ;;  %v5027_v4 = vld [vmem:[#allocation30 + $0x10] sm:$0xff] }
0x10e2   :  { %v4777_v57 = vadd.f32 %v4776_v23, %v7832_v46  ;;  %v5117_v46 = vld [vmem:[#allocation30 + $0x2e0] sm:$0xff]  ;;  %v5028_v23 = vld [vmem:[#allocation30 + $0x18] sm:$0xff]  ;;  %v5091_v31 = vld [vmem:[#allocation30 + $0x210] sm:$0xff] }
0x10e4   :  { %6671 = vtanh.f32 %v4777_v57  ;;  %v5092_v57 = vld [vmem:[#allocation30 + $0x218] sm:$0xff] }
0x10f1   :  { %v6672_v7 = vpop.eup %6671 }
0x10f2   :  { %v4780_v8 = vmul.f32 %v6672_v7, %v4779_v6  ;;  %v5026_v6 = vld [vmem:[#allocation30 + $0x8] sm:$0xff] }
0x10f3   :  { %v5090_v7 = vld [vmem:[#allocation30 + $0x208] sm:$0xff] }
0x10f4   :  { %v4784_v2 = vadd.f32 %v4783_v9, %v4780_v8  ;;  %v5025_v8 = vld [vmem:[#allocation30] sm:$0xff] }
0x10f5   :  { %v5089_v9 = vld [vmem:[#allocation30 + $0x200] sm:$0xff] }
0x10f6   :  { %v4803_v10 = vrot.slane %v4784_v2, 7  ;;  %v5088_v2 = vld [vmem:[#allocation30 + $0x1f8] sm:$0xff] }
0x10f8   :  { %5583 = vmatmul.mubr.msk.f32.vlgmr.msra.gmra.mxu0 %vm601_vm2, %v4803_v10  ;;  %5584 = vmatmul.mubr.msk.f32.vlgmr.msra.gmra.mxu1 %vm601_vm2, %v4803_v10  ;;  %v5152_v10 = vld [vmem:[#allocation30 + $0x3f8] sm:$0xff] }
0x10f9   :  { %5166 = vmatpush1.msra.mxu0 %v5055_v5  ;;  %5237 = vmatpush1.msra.mxu1 %v5119_v44  ;;  %v5087_v5 = vld [vmem:[#allocation30 + $0x1f0] sm:$0xff] }
0x10fa   :  { %5167 = vmatprep.subr.mxu0 %v5054_v39  ;;  %5238 = vmatprep.subr.mxu1 %v5118_v59  ;;  %v5151_v44 = vld [vmem:[#allocation30 + $0x3f0] sm:$0xff]  ;;  %v5086_v39 = vld [vmem:[#allocation30 + $0x1e8] sm:$0xff] }
0x10fb   :  { %5168 = vmatpush1.msra.mxu0 %v5053_v61  ;;  %5239 = vmatpush1.msra.mxu1 %v5117_v46  ;;  %v5150_v59 = vld [vmem:[#allocation30 + $0x3e8] sm:$0xff]  ;;  %v5085_v61 = vld [vmem:[#allocation30 + $0x1e0] sm:$0xff] }
0x10fc   :  { %5169 = vmatprep.subr.mxu0 %v5052_v18  ;;  %5240 = vmatprep.subr.mxu1 %v5116_v19  ;;  %v5149_v46 = vld [vmem:[#allocation30 + $0x3e0] sm:$0xff]  ;;  %v5084_v18 = vld [vmem:[#allocation30 + $0x1d8] sm:$0xff] }
0x10fd   :  { %5170 = vmatpush1.msra.mxu0 %v5051_v20  ;;  %5241 = vmatpush1.msra.mxu1 %v5115_v21  ;;  %v5148_v19 = vld [vmem:[#allocation30 + $0x3d8] sm:$0xff]  ;;  %v5083_v20 = vld [vmem:[#allocation30 + $0x1d0] sm:$0xff] }
0x10fe   :  { %5171 = vmatprep.subr.mxu0 %v5050_v22  ;;  %5242 = vmatprep.subr.mxu1 %v5114_v25  ;;  %v5147_v21 = vld [vmem:[#allocation30 + $0x3d0] sm:$0xff]  ;;  %v5082_v22 = vld [vmem:[#allocation30 + $0x1c8] sm:$0xff] }
0x10ff   :  { %5172 = vmatpush1.msra.mxu0 %v5049_v26  ;;  %5243 = vmatpush1.msra.mxu1 %v5113_v27  ;;  %v5146_v25 = vld [vmem:[#allocation30 + $0x3c8] sm:$0xff]  ;;  %v5081_v26 = vld [vmem:[#allocation30 + $0x1c0] sm:$0xff] }
0x1100   :  { %5173 = vmatprep.subr.mxu0 %v5048_v28  ;;  %5244 = vmatprep.subr.mxu1 %v5112_v13  ;;  %v5145_v27 = vld [vmem:[#allocation30 + $0x3c0] sm:$0xff]  ;;  %v5080_v28 = vld [vmem:[#allocation30 + $0x1b8] sm:$0xff] }
0x1101   :  { %5174 = vmatpush1.msra.mxu0 %v5047_v14  ;;  %5245 = vmatpush1.msra.mxu1 %v5111_v63  ;;  %v5144_v13 = vld [vmem:[#allocation30 + $0x3b8] sm:$0xff]  ;;  %v5079_v14 = vld [vmem:[#allocation30 + $0x1b0] sm:$0xff] }
0x1102   :  { %5175 = vmatprep.subr.mxu0 %v5046_v29  ;;  %5246 = vmatprep.subr.mxu1 %v5110_v1  ;;  %v5143_v63 = vld [vmem:[#allocation30 + $0x3b0] sm:$0xff]  ;;  %v5078_v29 = vld [vmem:[#allocation30 + $0x1a8] sm:$0xff] }
0x1103   :  { %5176 = vmatpush1.msra.mxu0 %v5045_v3  ;;  %5247 = vmatpush1.msra.mxu1 %v5109_v15  ;;  %v5142_v1 = vld [vmem:[#allocation30 + $0x3a8] sm:$0xff]  ;;  %v5077_v3 = vld [vmem:[#allocation30 + $0x1a0] sm:$0xff] }
0x1104   :  { %5177 = vmatprep.subr.mxu0 %v5044_v16  ;;  %5248 = vmatprep.subr.mxu1 %v5108_v17  ;;  %v5141_v15 = vld [vmem:[#allocation30 + $0x3a0] sm:$0xff]  ;;  %v5076_v16 = vld [vmem:[#allocation30 + $0x198] sm:$0xff] }
0x1105   :  { %5178 = vmatpush1.msra.mxu0 %v5043_v32  ;;  %5249 = vmatpush1.msra.mxu1 %v5107_v0  ;;  %v5140_v17 = vld [vmem:[#allocation30 + $0x398] sm:$0xff]  ;;  %v5075_v32 = vld [vmem:[#allocation30 + $0x190] sm:$0xff] }
0x1106   :  { %5179 = vmatprep.subr.mxu0 %v5042_v33  ;;  %5250 = vmatprep.subr.mxu1 %v5106_v34  ;;  %v5139_v0 = vld [vmem:[#allocation30 + $0x390] sm:$0xff]  ;;  %v5074_v33 = vld [vmem:[#allocation30 + $0x188] sm:$0xff] }
0x1107   :  { %5180 = vmatpush1.msra.mxu0 %v5041_v35  ;;  %5251 = vmatpush1.msra.mxu1 %v5105_v36  ;;  %v5138_v34 = vld [vmem:[#allocation30 + $0x388] sm:$0xff]  ;;  %v5073_v35 = vld [vmem:[#allocation30 + $0x180] sm:$0xff] }
0x1108   :  { %5181 = vmatprep.subr.mxu0 %v5040_v37  ;;  %5252 = vmatprep.subr.mxu1 %v5104_v38  ;;  %v5137_v36 = vld [vmem:[#allocation30 + $0x380] sm:$0xff]  ;;  %v5072_v37 = vld [vmem:[#allocation30 + $0x178] sm:$0xff] }
0x1109   :  { %5182 = vmatpush1.msra.mxu0 %v5039_v41  ;;  %5253 = vmatpush1.msra.mxu1 %v5103_v42  ;;  %v5136_v38 = vld [vmem:[#allocation30 + $0x378] sm:$0xff]  ;;  %v5071_v41 = vld [vmem:[#allocation30 + $0x170] sm:$0xff] }
0x110a   :  { %5183 = vmatprep.subr.mxu0 %v5038_v43  ;;  %5254 = vmatprep.subr.mxu1 %v5102_v45  ;;  %v5135_v42 = vld [vmem:[#allocation30 + $0x370] sm:$0xff]  ;;  %v5070_v43 = vld [vmem:[#allocation30 + $0x168] sm:$0xff] }
0x110b   :  { %5184 = vmatpush1.msra.mxu0 %v5037_v47  ;;  %5255 = vmatpush1.msra.mxu1 %v5101_v48  ;;  %v5134_v45 = vld [vmem:[#allocation30 + $0x368] sm:$0xff]  ;;  %v5069_v47 = vld [vmem:[#allocation30 + $0x160] sm:$0xff] }
0x110c   :  { %5185 = vmatprep.subr.mxu0 %v5036_v49  ;;  %5256 = vmatprep.subr.mxu1 %v5100_v50  ;;  %v5133_v48 = vld [vmem:[#allocation30 + $0x360] sm:$0xff]  ;;  %v5068_v49 = vld [vmem:[#allocation30 + $0x158] sm:$0xff] }
0x110d   :  { %5186 = vmatpush1.msra.mxu0 %v5035_v51  ;;  %5257 = vmatpush1.msra.mxu1 %v5099_v52  ;;  %v5132_v50 = vld [vmem:[#allocation30 + $0x358] sm:$0xff]  ;;  %v5067_v51 = vld [vmem:[#allocation30 + $0x150] sm:$0xff] }
0x110e   :  { %5187 = vmatprep.subr.mxu0 %v5034_v53  ;;  %5258 = vmatprep.subr.mxu1 %v5098_v54  ;;  %v5131_v52 = vld [vmem:[#allocation30 + $0x350] sm:$0xff]  ;;  %v5066_v53 = vld [vmem:[#allocation30 + $0x148] sm:$0xff] }
0x110f   :  { %5188 = vmatpush1.msra.mxu0 %v5033_v24  ;;  %5259 = vmatpush1.msra.mxu1 %v5097_v55  ;;  %v5130_v54 = vld [vmem:[#allocation30 + $0x348] sm:$0xff]  ;;  %v5065_v24 = vld [vmem:[#allocation30 + $0x140] sm:$0xff] }
0x1110   :  { %5189 = vmatprep.subr.mxu0 %v5032_v56  ;;  %5260 = vmatprep.subr.mxu1 %v5096_v30  ;;  %v5129_v55 = vld [vmem:[#allocation30 + $0x340] sm:$0xff]  ;;  %v5064_v56 = vld [vmem:[#allocation30 + $0x138] sm:$0xff] }
0x1111   :  { %5190 = vmatpush1.msra.mxu0 %v5031_v40  ;;  %5261 = vmatpush1.msra.mxu1 %v5095_v58  ;;  %v5128_v30 = vld [vmem:[#allocation30 + $0x338] sm:$0xff]  ;;  %v5063_v40 = vld [vmem:[#allocation30 + $0x130] sm:$0xff] }
0x1112   :  { %5191 = vmatprep.subr.mxu0 %v5030_v60  ;;  %5262 = vmatprep.subr.mxu1 %v5094_v11  ;;  %v5127_v58 = vld [vmem:[#allocation30 + $0x330] sm:$0xff]  ;;  %v5062_v60 = vld [vmem:[#allocation30 + $0x128] sm:$0xff] }
0x1113   :  { %5192 = vmatpush1.msra.mxu0 %v5029_v62  ;;  %5263 = vmatpush1.msra.mxu1 %v5093_v12  ;;  %v5126_v11 = vld [vmem:[#allocation30 + $0x328] sm:$0xff]  ;;  %v5061_v62 = vld [vmem:[#allocation30 + $0x120] sm:$0xff] }
0x1114   :  { %5193 = vmatprep.subr.mxu0 %v5028_v23  ;;  %5264 = vmatprep.subr.mxu1 %v5092_v57  ;;  %v5125_v12 = vld [vmem:[#allocation30 + $0x320] sm:$0xff]  ;;  %v5060_v23 = vld [vmem:[#allocation30 + $0x118] sm:$0xff] }
0x1115   :  { %5194 = vmatpush1.msra.mxu0 %v5027_v4  ;;  %5265 = vmatpush1.msra.mxu1 %v5091_v31  ;;  %v5124_v57 = vld [vmem:[#allocation30 + $0x318] sm:$0xff]  ;;  %v5059_v4 = vld [vmem:[#allocation30 + $0x110] sm:$0xff] }
0x1116   :  { %5195 = vmatprep.subr.mxu0 %v5026_v6  ;;  %5266 = vmatprep.subr.mxu1 %v5090_v7  ;;  %v5123_v31 = vld [vmem:[#allocation30 + $0x310] sm:$0xff]  ;;  %v5058_v6 = vld [vmem:[#allocation30 + $0x108] sm:$0xff] }
0x1117   :  { %5196 = vmatpush1.msra.mxu0 %v5025_v8  ;;  %5267 = vmatpush1.msra.mxu1 %v5089_v9  ;;  %v5122_v7 = vld [vmem:[#allocation30 + $0x308] sm:$0xff]  ;;  %v5057_v8 = vld [vmem:[#allocation30 + $0x100] sm:$0xff] }
0x1118   :  { %5197 = vmatprep.subr.mxu0 %v5088_v2  ;;  %5268 = vmatprep.subr.mxu1 %v5152_v10  ;;  %v5121_v9 = vld [vmem:[#allocation30 + $0x300] sm:$0xff]  ;;  %v4805_v10 = vlaneseq }
0x1119   :  { %5198 = vmatpush2.msra.mxu0 %v5087_v5  ;;  %5269 = vmatpush2.msra.mxu1 %v5151_v44  ;;  %v5368_v2 = vld [vmem:[%s7284_s25 + $0xf8] sm:$0xff] }
0x111a   :  { %5199 = vmatprep.subr.mxu0 %v5086_v39  ;;  %5270 = vmatprep.subr.mxu1 %v5150_v59  ;;  %v4806_v5 = vshrl.u32 %v4805_v10, 7  ;;  %v4801_v59 = vld [vmem:[%s8208_s3] sm:$0xf]  ;;  %v5356_v10 = vld [vmem:[%s7284_s25 + $0x98] sm:$0xff] }
0x111b   :  { %5200 = vmatpush2.msra.mxu0 %v5085_v61  ;;  %5271 = vmatpush2.msra.mxu1 %v5149_v46 }
0x111c   :  { %5201 = vmatprep.subr.mxu0 %v5084_v18  ;;  %5272 = vmatprep.subr.mxu1 %v5148_v19  ;;  %v8123_v44 = vsub.s32 0, %v4806_v5  ;;  %v4815_v39 = vsub.s32 2, %v4806_v5  ;;  %v8126_v61 = vsub.s32 1, %v4806_v5  ;;  %v4819_v46 = vsub.s32 3, %v4806_v5  ;;  %v4969_v18 = vld [vmem:[%s8209_s14] sm:$0xf] }
0x111d   :  { %5202 = vmatpush2.msra.mxu0 %v5083_v20  ;;  %5273 = vmatpush2.msra.mxu1 %v5147_v21  ;;  %v5340_v5 = vld [vmem:[%s7284_s25 + $0x18] sm:$0xff] }
0x111e   :  { %5203 = vmatprep.subr.mxu0 %v5082_v22  ;;  %5274 = vmatprep.subr.mxu1 %v5146_v25  ;;  %v4808_v19 = vrot.slane %v4801_v59, %v8123_v44  ;;  %v4816_v20 = vrot.slane %v4801_v59, %v4815_v39  ;;  %v4974_v21 = vrot.slane %v4969_v18, %v8123_v44  ;;  %v4995_v22 = vld [vmem:[#allocation29] sm:$0xf] }
0x111f   :  { %5204 = vmatpush2.msra.mxu0 %v5081_v26  ;;  %5275 = vmatpush2.msra.mxu1 %v5145_v27  ;;  %v4982_v25 = vrot.slane %v4969_v18, %v4815_v39  ;;  %v4812_v26 = vrot.slane %v4801_v59, %v8126_v61  ;;  %v4820_v27 = vrot.slane %v4801_v59, %v4819_v46  ;;  %v5339_v59 = vld [vmem:[%s7284_s25 + $0x10] sm:$0xff] }
0x1120   :  { %5205 = vmatprep.subr.mxu0 %v5080_v28  ;;  %5276 = vmatprep.subr.mxu1 %v5144_v13 }
0x1121   :  { %5206 = vmatpush2.msra.mxu0 %v5079_v14  ;;  %5277 = vmatpush2.msra.mxu1 %v5143_v63 }
0x1122   :  { %5207 = vmatprep.subr.mxu0 %v5078_v29  ;;  %5278 = vmatprep.subr.mxu1 %v5142_v1  ;;  %v4978_v29 = vrot.slane %v4969_v18, %v8126_v61  ;;  %v4986_v1 = vrot.slane %v4969_v18, %v4819_v46  ;;  %v5338_v18 = vld [vmem:[%s7284_s25 + $0x8] sm:$0xff] }
0x1123   :  { %5208 = vmatpush2.msra.mxu0 %v5077_v3  ;;  %5279 = vmatpush2.msra.mxu1 %v5141_v15  ;;  %v5000_v3 = vrot.slane %v4995_v22, %v8123_v44  ;;  %v5008_v15 = vrot.slane %v4995_v22, %v4815_v39  ;;  %v5355_v39 = vld [vmem:[%s7284_s25 + $0x90] sm:$0xff] }
0x1124   :  { %5209 = vmatprep.subr.mxu0 %v5076_v16  ;;  %5280 = vmatprep.subr.mxu1 %v5140_v17 }
0x1125   :  { %5210 = vmatpush2.msra.mxu0 %v5075_v32  ;;  %5281 = vmatpush2.msra.mxu1 %v5139_v0  ;;  %v5004_v32 = vrot.slane %v4995_v22, %v8126_v61  ;;  %v5012_v0 = vrot.slane %v4995_v22, %v4819_v46  ;;  %v5354_v46 = vld [vmem:[%s7284_s25 + $0x88] sm:$0xff] }
0x1126   :  { %5211 = vmatprep.subr.mxu0 %v5074_v33  ;;  %5282 = vmatprep.subr.mxu1 %v5138_v34 }
0x1127   :  { %5212 = vmatpush2.msra.mxu0 %v5073_v35  ;;  %5283 = vmatpush2.msra.mxu1 %v5137_v36 }
0x1128   :  { %5213 = vmatprep.subr.mxu0 %v5072_v37  ;;  %5284 = vmatprep.subr.mxu1 %v5136_v38 }
0x1129   :  { %5214 = vmatpush2.msra.mxu0 %v5071_v41  ;;  %5285 = vmatpush2.msra.mxu1 %v5135_v42 }
0x112a   :  { %5215 = vmatprep.subr.mxu0 %v5070_v43  ;;  %5286 = vmatprep.subr.mxu1 %v5134_v45 }
0x112b   :  { %5216 = vmatpush2.msra.mxu0 %v5069_v47  ;;  %5287 = vmatpush2.msra.mxu1 %v5133_v48 }
0x112c   :  { %5217 = vmatprep.subr.mxu0 %v5068_v49  ;;  %5288 = vmatprep.subr.mxu1 %v5132_v50 }
0x112d   :  { %5218 = vmatpush2.msra.mxu0 %v5067_v51  ;;  %5289 = vmatpush2.msra.mxu1 %v5131_v52  ;;  %v5352_v51 = vld [vmem:[%s7284_s25 + $0x78] sm:$0xff]  ;;  %v5367_v52 = vld [vmem:[%s7284_s25 + $0xf0] sm:$0xff] }
0x112e   :  { %5219 = vmatprep.subr.mxu0 %v5066_v53  ;;  %5290 = vmatprep.subr.mxu1 %v5130_v54  ;;  %v5351_v53 = vld [vmem:[%s7284_s25 + $0x70] sm:$0xff]  ;;  %v5366_v54 = vld [vmem:[%s7284_s25 + $0xe8] sm:$0xff] }
0x112f   :  { %5220 = vmatpush2.msra.mxu0 %v5065_v24  ;;  %5291 = vmatpush2.msra.mxu1 %v5129_v55  ;;  %v5350_v24 = vld [vmem:[%s7284_s25 + $0x68] sm:$0xff]  ;;  %v5365_v55 = vld [vmem:[%s7284_s25 + $0xe0] sm:$0xff] }
0x1130   :  { %5221 = vmatprep.subr.mxu0 %v5064_v56  ;;  %5292 = vmatprep.subr.mxu1 %v5128_v30  ;;  %v5349_v56 = vld [vmem:[%s7284_s25 + $0x60] sm:$0xff]  ;;  %v5364_v30 = vld [vmem:[%s7284_s25 + $0xd8] sm:$0xff] }
0x1131   :  { %5222 = vmatpush2.msra.mxu0 %v5063_v40  ;;  %5293 = vmatpush2.msra.mxu1 %v5127_v58  ;;  %v5348_v40 = vld [vmem:[%s7284_s25 + $0x58] sm:$0xff]  ;;  %v5363_v58 = vld [vmem:[%s7284_s25 + $0xd0] sm:$0xff] }
0x1132   :  { %5223 = vmatprep.subr.mxu0 %v5062_v60  ;;  %5294 = vmatprep.subr.mxu1 %v5126_v11  ;;  %v5347_v60 = vld [vmem:[%s7284_s25 + $0x50] sm:$0xff]  ;;  %v5362_v11 = vld [vmem:[%s7284_s25 + $0xc8] sm:$0xff] }
0x1133   :  { %5224 = vmatpush2.msra.mxu0 %v5061_v62  ;;  %5295 = vmatpush2.msra.mxu1 %v5125_v12  ;;  %v5346_v62 = vld [vmem:[%s7284_s25 + $0x48] sm:$0xff]  ;;  %v5361_v12 = vld [vmem:[%s7284_s25 + $0xc0] sm:$0xff] }
0x1134   :  { %5225 = vmatprep.subr.mxu0 %v5060_v23  ;;  %5296 = vmatprep.subr.mxu1 %v5124_v57  ;;  %v5345_v23 = vld [vmem:[%s7284_s25 + $0x40] sm:$0xff]  ;;  %v5360_v57 = vld [vmem:[%s7284_s25 + $0xb8] sm:$0xff] }
0x1135   :  { %5226 = vmatpush2.msra.mxu0 %v5059_v4  ;;  %5297 = vmatpush2.msra.mxu1 %v5123_v31  ;;  %v5344_v4 = vld [vmem:[%s7284_s25 + $0x38] sm:$0xff]  ;;  %v5359_v31 = vld [vmem:[%s7284_s25 + $0xb0] sm:$0xff] }
0x1136   :  { %5227 = vmatprep.subr.mxu0 %v5058_v6  ;;  %5298 = vmatprep.subr.mxu1 %v5122_v7  ;;  %v5343_v6 = vld [vmem:[%s7284_s25 + $0x30] sm:$0xff]  ;;  %v5358_v7 = vld [vmem:[%s7284_s25 + $0xa8] sm:$0xff] }
0x1137   :  { %5228 = vmatpush2.msra.mxu0 %v5057_v8  ;;  %5299 = vmatpush2.msra.mxu1 %v5121_v9  ;;  %v5342_v8 = vld [vmem:[%s7284_s25 + $0x28] sm:$0xff]  ;;  %v5357_v9 = vld [vmem:[%s7284_s25 + $0xa0] sm:$0xff] }
0x1138   :  { %5846 = vmatprep.subr.mxu0 %v5368_v2  ;;  %v5341_v2 = vld [vmem:[%s7284_s25 + $0x20] sm:$0xff] }
0x11b8   :  { %v4893_v28 = vpop.f32.mrf.mxu0  ;;  %v4964_v13 = vpop.f32.mrf.mxu1 }
0x11b9   :  { %v4894_v14 = vadd.f32 %v4893_v28, %v4808_v19  ;;  %v4965_v63 = vadd.f32 %v4964_v13, %v4816_v20  ;;  %v5353_v19 = vld [vmem:[%s7284_s25 + $0x80] sm:$0xff] }
0x11ba   :  { %v4895_v16 = vpop.f32.mrf.mxu0  ;;  %v4966_v17 = vpop.f32.mrf.mxu1  ;;  %v5337_v20 = vld [vmem:[%s7284_s25] sm:$0xff]  ;;  %s7130_s25 = smov [#allocation32]  }
0x11bb   :  { %v4991_v33 = vmul.f32 %v4974_v21, %v4894_v14  ;;  %v4993_v34 = vmul.f32 %v4982_v25, %v4965_v63  ;;  %v4896_v35 = vadd.f32 %v4895_v16, %v4812_v26  ;;  %v4967_v36 = vadd.f32 %v4966_v17, %v4820_v27  ;;  %v5153_v21 = vld [vmem:[%s8210_s15] sm:$0x3] }
0x11bc   :  { %v5158_v22 = vrot.slane %v5153_v21, %v8123_v44  ;;  %v5307_v25 = vld [vmem:[%s8211_s16] sm:$0x3]  ;;  %v5162_v26 = vrot.slane %v5153_v21, %v8126_v61 }
0x11bd   :  { %v4992_v37 = vmul.f32 %v4978_v29, %v4896_v35  ;;  %v4994_v38 = vmul.f32 %v4986_v1, %v4967_v36  ;;  %v5017_v41 = vadd.f32 %v5000_v3, %v4991_v33  ;;  %v5019_v42 = vadd.f32 %v5008_v15, %v4993_v34  ;;  %v5321_v63 = vld [vmem:[%s7279_s4] sm:$0x3]  ;;  %s5448_s4 = sshll.u32 %s7130_s25, 4  ;;  %s5449_s4 = int_to_ptr.vmem [resolvable:$true] %s5448_s4 }
0x11be   :  { %v5312_v14 = vrot.slane %v5307_v25, %v8123_v44  ;;  %v5316_v15 = vrot.slane %v5307_v25, %v8126_v61  ;;  %v5326_v16 = vrot.slane %v5321_v63, %v8123_v44  ;;  %v5330_v33 = vrot.slane %v5321_v63, %v8126_v61  ;;  %s7033_s27 = scalar_lea.vmem %s5449_s4, 16  ;;  %s7037_s9 = scalar_lea.vmem %s5449_s4, 32 }
0x11bf   :  { %v5018_v43 = vadd.f32 %v5004_v32, %v4992_v37  ;;  %v5020_v45 = vadd.f32 %v5012_v0, %v4994_v38  ;;  %v5021_v49 = vmax.f32 %v5017_v41, 0.0  ;;  %v5023_v50 = vmax.f32 %v5019_v42, 0.0  ;;  %v5369_v42 = vld [vmem:[%s7289_s21] sm:$0x1]  ;;  %p7034_p6 = scmp.ne.s32.totalorder %s5449_s4, %s7033_s27  ;;  %p7038_p7 = scmp.lt.s32.totalorder %s5449_s4, %s5449_s4 }
0x11c0   :  { %p7039_p8 = scmp.lt.s32.totalorder %s7037_s9, %s7033_s27 }
0x11c1   :  { %v5022_v47 = vmax.f32 %v5018_v43, 0.0  ;;  %v5024_v48 = vmax.f32 %v5020_v45, 0.0 }
0x11c2   :  { %p7040_p9 = por %p7039_p8, %p7038_p7 }
0x11c3   :  { %5229 = vmatprep.mubr.f32.mxu0 %v5022_v47  ;;  %5300 = vmatprep.mubr.f32.mxu1 %v5024_v48 }
0x11c4   :  { %5230 = vmatmul.mubr.f32.vlgmr.msra.gmra.mxu0 %v5021_v49  ;;  %5301 = vmatmul.mubr.f32.vlgmr.msra.gmra.mxu1 %v5023_v50  ;;  %p7041_p10 = pnand %p7040_p9, %p7034_p6 }
0x11c5   :  { %5847 = vmatpush3.msra.mxu0 %v5352_v51 }
0x11c6   :  { %5848 = vmatprep.subr.mxu0 %v5367_v52 }
0x11c7   :  { %5849 = vmatpush3.msra.mxu0 %v5351_v53 }
0x11c8   :  { %5850 = vmatprep.subr.mxu0 %v5366_v54 }
0x11c9   :  { %5851 = vmatpush3.msra.mxu0 %v5350_v24 }
0x11ca   :  { %5852 = vmatprep.subr.mxu0 %v5365_v55 }
0x11cb   :  { %5853 = vmatpush3.msra.mxu0 %v5349_v56 }
0x11cc   :  { %5854 = vmatprep.subr.mxu0 %v5364_v30 }
0x11cd   :  { %5855 = vmatpush3.msra.mxu0 %v5348_v40 }
0x11ce   :  { %5856 = vmatprep.subr.mxu0 %v5363_v58 }
0x11cf   :  { %5857 = vmatpush3.msra.mxu0 %v5347_v60 }
0x11d0   :  { %5858 = vmatprep.subr.mxu0 %v5362_v11 }
0x11d1   :  { %5859 = vmatpush3.msra.mxu0 %v5346_v62 }
0x11d2   :  { %5860 = vmatprep.subr.mxu0 %v5361_v12 }
0x11d3   :  { %5861 = vmatpush3.msra.mxu0 %v5345_v23 }
0x11d4   :  { %5862 = vmatprep.subr.mxu0 %v5360_v57 }
0x11d5   :  { %5863 = vmatpush3.msra.mxu0 %v5344_v4 }
0x11d6   :  { %5864 = vmatprep.subr.mxu0 %v5359_v31 }
0x11d7   :  { %5865 = vmatpush3.msra.mxu0 %v5343_v6 }
0x11d8   :  { %5866 = vmatprep.subr.mxu0 %v5358_v7 }
0x11d9   :  { %5867 = vmatpush3.msra.mxu0 %v5342_v8 }
0x11da   :  { %5868 = vmatprep.subr.mxu0 %v5357_v9 }
0x11db   :  { %5869 = vmatpush3.msra.mxu0 %v5341_v2 }
0x11dc   :  { %5870 = vmatprep.subr.mxu0 %v5356_v10 }
0x11dd   :  { %5871 = vmatpush3.msra.mxu0 %v5340_v5 }
0x11de   :  { %5872 = vmatprep.subr.mxu0 %v5355_v39 }
0x11df   :  { %5873 = vmatpush3.msra.mxu0 %v5339_v59 }
0x11e0   :  { %5874 = vmatprep.subr.mxu0 %v5354_v46 }
0x11e1   :  { %5875 = vmatpush3.msra.mxu0 %v5338_v18 }
0x11e2   :  { %5876 = vmatprep.subr.mxu0 %v5353_v19 }
0x11e3   :  { %5877 = vmatpush3.msra.mxu0 %v5337_v20 }
0x1284   :  { %v5231_v27 = vpop.f32.mrf.mxu0  ;;  %v5302_v28 = vpop.f32.mrf.mxu1 }
0x1285   :  { %v5232_v13 = vadd.f32 %v5231_v27, %v5158_v22 }
0x1286   :  { %v5233_v29 = vpop.f32.mrf.mxu0  ;;  %v5304_v17 = vpop.f32.mrf.mxu1 }
0x1287   :  { %v5303_v1 = vadd.f32 %v5302_v28, %v5232_v13  ;;  %v5234_v3 = vadd.f32 %v5233_v29, %v5162_v26 }
0x1289   :  { %v5319_v32 = vmul.f32 %v5312_v14, %v5303_v1  ;;  %v5305_v0 = vadd.f32 %v5304_v17, %v5234_v3 }
0x128b   :  { %v5320_v34 = vmul.f32 %v5316_v15, %v5305_v0  ;;  %v5333_v35 = vadd.f32 %v5326_v16, %v5319_v32 }
0x128d   :  { %v5334_v36 = vadd.f32 %v5330_v33, %v5320_v34  ;;  %v5335_v38 = vmax.f32 %v5333_v35, 0.0 }
0x128f   :  { %v5336_v37 = vmax.f32 %v5334_v36, 0.0 }
0x1291   :  { %5434 = vmatprep.mubr.f32.mxu0 %v5336_v37 }
0x1292   :  { %5435 = vmatmul.mubr.f32.vlgmr.msra.gmra.mxu0 %v5335_v38 }
0x1352   :  { %v5878_v41 = vpop.f32.mrf.mxu0 }
0x1354   :  { %v5879_v43 = vpop.f32.mrf.mxu0 }
0x1355   :  { %v5880_v45 = vadd.f32 %v5879_v43, %v5878_v41 }
0x1357   :  { %v5437_v44 = vadd.f32 %v5880_v45, %v5369_v42 }
0x1359   :  { %5441 = vst.msk [vmem:[#allocation32] sm:$0x1] %vm5440_vm11, %v5437_v44 }
0x135a   :  { %7044 = shalt.err (!%p7041_p10)
}
0x135b   :  { %5451 = dma.vmem_to_hbm [thread:$0]  %s5449_s4, 16, %s7294_s24, [#allocation5]  }
0x135c   :  { %7073 = dma.done.wait [#allocation5], 16  }
0x135d   :  { %7074 = vsyncadd [#allocation5], 4294967280 }
0x135e   :  { %5455 = vsyncpa [#allocation4], 1 }
0x135f   :  { %5456 = vsyncpa [#allocation7], 1 }
0x1360   :  { %5457 = vsyncpa [#allocation10], 1 }
0x1361   :  { %5458 = vsyncpa [#allocation13], 1 }
0x1362   :  { %5459 = vsyncpa [#allocation16], 1 }
0x1363   :  { %5460 = vsyncpa [#allocation19], 1 }
0x1364   :  { %5461 = vsyncpa [#allocation22], 1 }
0x1365   :  { %5462 = vsyncpa [#allocation25], 1 }
0x1366   :  { %5463 = vsyncpa [#allocation28], 1 }
0x1367   :  { %5464 = vsyncpa [#allocation31], 1 }
0x1368   :  { %5465 = vsyncpa [#allocation5], 1 }

</bundles_post_ra>
